<compile_context>
chip_gen: v5e
topology: v5e:2x2
jax: 0.10.0
libtpu: 0.0.40
codegen_flags: <defaults>
</compile_context>

<pallas_src>
import jax
import jax.numpy as jnp
from jax.experimental import pallas as pl
from jax.experimental.pallas import tpu as pltpu


OUT_PAD = 128        # pad the 1-wide sigmoid head to a full lane width (lane-dense stores)
MAX_TILE_B = 1024    # batch rows per grid step (fits all of v5e/v6e/v7x with bf16 activations)


def _round_up(n, m):
    return ((n + m - 1) // m) * m


def _physical_vmem_bytes():
    """Best-effort physical VMEM query; conservative (v7x = 64 MiB) fallback."""
    try:
        return int(pltpu.get_tpu_info().vmem_capacity_bytes)
    except Exception:
        return 64 * 1024 * 1024


def _choose_tile_b(batch):
    """Pick the batch tile per the perf review.

    * batch <= 16: whole batch rounded to 8 sublanes -> no jnp.pad HBM round trip in the
      latency-bound regime.
    * 16 < batch < 512: single tile rounded to 16 (bf16 sublane packing).
    * batch >= 512: >= 2 grid steps, 256-row (MXU granularity) aligned, capped at
      MAX_TILE_B -> both v7x TensorCores get balanced work and per-step overhead is
      amortized on v5e/v6e too.
    """
    if batch <= 16:
        return _round_up(batch, 8)
    if batch < 512:
        return min(MAX_TILE_B, _round_up(batch, 16))
    return min(MAX_TILE_B, _round_up(pl.cdiv(batch, 2), 256))


def adv_net_kernel(x_ref, w1_ref, b1_ref, w2_ref, b2_ref, w3_ref, b3_ref, o_ref):
    # GRL is identity in the forward pass; Dropout(0.5) is identity in eval mode.
    x = x_ref[...]

    # Linear(in_feature, 1024) + ReLU.  bf16 MXU inputs, f32 accumulate, bf16 epilogue cast.
    h1 = jnp.dot(x.astype(jnp.bfloat16), w1_ref[...],
                 preferred_element_type=jnp.float32) + b1_ref[...]
    h1 = jnp.maximum(h1, 0.0).astype(jnp.bfloat16)

    # Linear(1024, 1024) + ReLU.
    h2 = jnp.dot(h1, w2_ref[...], preferred_element_type=jnp.float32) + b2_ref[...]
    h2 = jnp.maximum(h2, 0.0).astype(jnp.bfloat16)

    # Linear(1024, 1) + Sigmoid  (head padded to OUT_PAD lanes; column 0 is the real head).
    logits = jnp.dot(h2, w3_ref[...], preferred_element_type=jnp.float32) + b3_ref[...]
    o_ref[...] = jax.nn.sigmoid(logits).astype(o_ref.dtype)


def prepare_params(params):
    """One-time parameter prep: weights -> bf16, 1-wide head padded to OUT_PAD lanes.

    Biases stay f32 (epilogue is f32). Do NOT call this per forward pass.
    """
    w1, b1, w2, b2, w3, b3 = params
    hidden = w1.shape[1]
    w3p = jnp.zeros((hidden, OUT_PAD), jnp.float32).at[:, 0:1].set(w3)
    b3p = jnp.zeros((1, OUT_PAD), jnp.float32).at[:, 0:1].set(b3)
    return (
        w1.astype(jnp.bfloat16), b1.astype(jnp.float32),
        w2.astype(jnp.bfloat16), b2.astype(jnp.float32),
        w3p.astype(jnp.bfloat16), b3p.astype(jnp.float32),
    )


def adversarial_network_forward(x, prepared_params):
    """x: (batch, in_feature) float32. Returns (batch, 1) float32 in [0, 1]."""
    w1, b1, w2, b2, w3p, b3p = prepared_params
    batch, in_feature = x.shape
    hidden = w1.shape[1]

    tile_b = _choose_tile_b(batch)
    padded_batch = _round_up(batch, tile_b)
    if padded_batch != batch:
        x = jnp.pad(x, ((0, padded_batch - batch), (0, 0)))
    grid = (padded_batch // tile_b,)

    # VMEM budget: weights single-buffered (Buffered(1)), x/out tiles double-buffered,
    # bf16 h1/h2 intermediates, plus slack for compiler scratch.
    weight_bytes = (in_feature * hidden + hidden * hidden + hidden * OUT_PAD) * 2  # bf16, x1
    bias_bytes = (2 * hidden + OUT_PAD) * 4
    io_bytes = 2 * tile_b * in_feature * 4 + 2 * tile_b * OUT_PAD * 4              # x / out, x2
    act_bytes = 2 * tile_b * hidden * 2 + tile_b * hidden * 4 + tile_b * OUT_PAD * 4
    phys_vmem = _physical_vmem_bytes()
    vmem_cap = (96 << 20) if phys_vmem >= (128 << 20) else (48 << 20)
    vmem_limit = min(weight_bytes + bias_bytes + io_bytes + act_bytes + (8 << 20), vmem_cap)

    cost = pl.CostEstimate(
        flops=2 * padded_batch * (in_feature * hidden + hidden * hidden + hidden * OUT_PAD),
        transcendentals=padded_batch * OUT_PAD,
        bytes_accessed=(weight_bytes + bias_bytes
                        + padded_batch * in_feature * 4
                        + padded_batch * OUT_PAD * 4),
    )

    def resident(shape):
        # Weights/biases: same block every grid step -> resident in VMEM, single-buffered.
        return pl.BlockSpec(shape, lambda i: (0,) * len(shape),
                            pipeline_mode=pl.Buffered(1))

    out_padded = pl.pallas_call(
        adv_net_kernel,
        out_shape=jax.ShapeDtypeStruct((padded_batch, OUT_PAD), jnp.float32),
        grid=grid,
        in_specs=[
            pl.BlockSpec((tile_b, in_feature), lambda i: (i, 0)),   # x: pipelined over batch
            resident((in_feature, hidden)),
            resident((1, hidden)),
            resident((hidden, hidden)),
            resident((1, hidden)),
            resident((hidden, OUT_PAD)),
            resident((1, OUT_PAD)),
        ],
        out_specs=pl.BlockSpec((tile_b, OUT_PAD), lambda i: (i, 0)),
        compiler_params=pltpu.CompilerParams(
            dimension_semantics=("parallel",),   # shard batch tiles across v7x's 2 TCs
            vmem_limit_bytes=int(vmem_limit),
        ),
        cost_estimate=cost,
    )(x, w1, b1, w2, b2, w3p, b3p)

    return out_padded[:batch, 0:1]


def init_params(key, in_feature, hidden=1024):
    """Deterministic synthetic init (PyTorch-Linear-like uniform fan-in scaling), f32."""
    ks = jax.random.split(key, 6)

    def lin(kw, kb, fan_in, fan_out):
        bound = 1.0 / jnp.sqrt(float(fan_in))
        w = jax.random.uniform(kw, (fan_in, fan_out), jnp.float32, -bound, bound)
        b = jax.random.uniform(kb, (1, fan_out), jnp.float32, -bound, bound)
        return w, b

    w1, b1 = lin(ks[0], ks[1], in_feature, hidden)
    w2, b2 = lin(ks[2], ks[3], hidden, hidden)
    w3, b3 = lin(ks[4], ks[5], hidden, 1)
    return (w1, b1, w2, b2, w3, b3)


def reference_forward(x, prepared_params):
    """Pure-JAX reference using the same bf16 weights/activations, f32 accumulation."""
    w1, b1, w2, b2, w3p, b3p = prepared_params

    def lin(a, w, b):
        return jnp.dot(a, w, preferred_element_type=jnp.float32) + b

    h1 = jnp.maximum(lin(x.astype(jnp.bfloat16), w1, b1), 0.0).astype(jnp.bfloat16)
    h2 = jnp.maximum(lin(h1, w2, b2), 0.0).astype(jnp.bfloat16)
    return jax.nn.sigmoid(lin(h2, w3p, b3p))[:, 0:1]


if __name__ == "__main__":
    key = jax.random.PRNGKey(0)
    k_x, k_p, k_x2 = jax.random.split(key, 3)

    in_feature = 256
    params = init_params(k_p, in_feature)
    prepared = prepare_params(params)   # one-time: bf16 weights + padded head

    # Small, latency-regime batch (no padding path: tile_b == 8).
    batch = 8
    x = jax.random.normal(k_x, (batch, in_feature), jnp.float32)
    y = jax.block_until_ready(adversarial_network_forward(x, prepared))
    y_ref = reference_forward(x, prepared)
    assert y.shape == (batch, 1)
    assert jnp.all(jnp.isfinite(y))
    assert jnp.allclose(y, y_ref, atol=1e-4, rtol=1e-4), "mismatch vs reference (batch=8)"

    # Second shape exercising 16-aligned tiling + batch padding.
    batch2 = 40
    x2 = jax.random.normal(k_x2, (batch2, in_feature), jnp.float32)
    y2 = jax.block_until_ready(adversarial_network_forward(x2, prepared))
    y2_ref = reference_forward(x2, prepared)
    assert y2.shape == (batch2, 1)
    assert jnp.all(jnp.isfinite(y2))
    assert jnp.allclose(y2, y2_ref, atol=1e-4, rtol=1e-4), "mismatch vs reference (batch=40)"

    print("KERNEL_OK")
</pallas_src>

<mosaic_0001>
module attributes {stable_mosaic.version = 11 : i64} {
  func.func @adv_net_kernel(%arg0: i32, %arg1: memref<8x256xf32, #tpu.memory_space<vmem>>, %arg2: memref<256x1024xbf16, #tpu.memory_space<vmem>>, %arg3: memref<1x1024xf32, #tpu.memory_space<vmem>>, %arg4: memref<1024x1024xbf16, #tpu.memory_space<vmem>>, %arg5: memref<1x1024xf32, #tpu.memory_space<vmem>>, %arg6: memref<1024x128xbf16, #tpu.memory_space<vmem>>, %arg7: memref<1x128xf32, #tpu.memory_space<vmem>>, %arg8: memref<8x128xf32, #tpu.memory_space<vmem>>) attributes {dimension_semantics = [#tpu.dimension_semantics<parallel>], iteration_bounds = array<i64: 1>, scalar_prefetch = 0 : i64, scratch_operands = 0 : i64, tpu.core_type = #tpu.core_type<tc>, window_params = [{transform_indices = @transform_0, window_bounds = array<i64: 8, 256>}, {pipeline_mode = #tpu.pipeline_mode<synchronous>, transform_indices = @transform_1, window_bounds = array<i64: 256, 1024>}, {pipeline_mode = #tpu.pipeline_mode<synchronous>, transform_indices = @transform_2, window_bounds = array<i64: 1, 1024>}, {pipeline_mode = #tpu.pipeline_mode<synchronous>, transform_indices = @transform_3, window_bounds = array<i64: 1024, 1024>}, {pipeline_mode = #tpu.pipeline_mode<synchronous>, transform_indices = @transform_4, window_bounds = array<i64: 1, 1024>}, {pipeline_mode = #tpu.pipeline_mode<synchronous>, transform_indices = @transform_5, window_bounds = array<i64: 1024, 128>}, {pipeline_mode = #tpu.pipeline_mode<synchronous>, transform_indices = @transform_6, window_bounds = array<i64: 1, 128>}, {transform_indices = @transform_7, window_bounds = array<i64: 8, 128>}]} {
    %c0 = arith.constant 0 : index
    %c0_0 = arith.constant 0 : index
    %0 = vector.load %arg1[%c0, %c0_0] : memref<8x256xf32, #tpu.memory_space<vmem>>, vector<8x256xf32>
    %1 = arith.truncf %0 : vector<8x256xf32> to vector<8x256xbf16>
    %c0_1 = arith.constant 0 : index
    %c0_2 = arith.constant 0 : index
    %2 = vector.load %arg2[%c0_1, %c0_2] : memref<256x1024xbf16, #tpu.memory_space<vmem>>, vector<256x1024xbf16>
    %cst = arith.constant dense<0.000000e+00> : vector<8x1024xf32>
    %3 = tpu.matmul %1, %2, %cst {dimension_numbers = #tpu.dot_dimension_numbers<[1], [0], [0], [1], [0, 0, 1, 1], [], []>} : vector<8x256xbf16>, vector<256x1024xbf16>, vector<8x1024xf32> -> vector<8x1024xf32>
    %c0_3 = arith.constant 0 : index
    %c0_4 = arith.constant 0 : index
    %4 = vector.load %arg3[%c0_3, %c0_4] : memref<1x1024xf32, #tpu.memory_space<vmem>>, vector<1x1024xf32>
    %5 = vector.broadcast %4 : vector<1x1024xf32> to vector<8x1024xf32>
    %6 = arith.addf %3, %5 : vector<8x1024xf32>
    %cst_5 = arith.constant 0.000000e+00 : f32
    %7 = vector.broadcast %cst_5 : f32 to vector<8x1024xf32>
    %8 = arith.maximumf %6, %7 : vector<8x1024xf32>
    %9 = arith.truncf %8 : vector<8x1024xf32> to vector<8x1024xbf16>
    %c0_6 = arith.constant 0 : index
    %c0_7 = arith.constant 0 : index
    %10 = vector.load %arg4[%c0_6, %c0_7] : memref<1024x1024xbf16, #tpu.memory_space<vmem>>, vector<1024x1024xbf16>
    %cst_8 = arith.constant dense<0.000000e+00> : vector<8x1024xf32>
    %11 = tpu.matmul %9, %10, %cst_8 {dimension_numbers = #tpu.dot_dimension_numbers<[1], [0], [0], [1], [0, 0, 1, 1], [], []>} : vector<8x1024xbf16>, vector<1024x1024xbf16>, vector<8x1024xf32> -> vector<8x1024xf32>
    %c0_9 = arith.constant 0 : index
    %c0_10 = arith.constant 0 : index
    %12 = vector.load %arg5[%c0_9, %c0_10] : memref<1x1024xf32, #tpu.memory_space<vmem>>, vector<1x1024xf32>
    %13 = vector.broadcast %12 : vector<1x1024xf32> to vector<8x1024xf32>
    %14 = arith.addf %11, %13 : vector<8x1024xf32>
    %cst_11 = arith.constant 0.000000e+00 : f32
    %15 = vector.broadcast %cst_11 : f32 to vector<8x1024xf32>
    %16 = arith.maximumf %14, %15 : vector<8x1024xf32>
    %17 = arith.truncf %16 : vector<8x1024xf32> to vector<8x1024xbf16>
    %c0_12 = arith.constant 0 : index
    %c0_13 = arith.constant 0 : index
    %18 = vector.load %arg6[%c0_12, %c0_13] : memref<1024x128xbf16, #tpu.memory_space<vmem>>, vector<1024x128xbf16>
    %cst_14 = arith.constant dense<0.000000e+00> : vector<8x128xf32>
    %19 = tpu.matmul %17, %18, %cst_14 {dimension_numbers = #tpu.dot_dimension_numbers<[1], [0], [0], [1], [0, 0, 1, 1], [], []>} : vector<8x1024xbf16>, vector<1024x128xbf16>, vector<8x128xf32> -> vector<8x128xf32>
    %c0_15 = arith.constant 0 : index
    %c0_16 = arith.constant 0 : index
    %20 = vector.load %arg7[%c0_15, %c0_16] : memref<1x128xf32, #tpu.memory_space<vmem>>, vector<1x128xf32>
    %21 = vector.broadcast %20 : vector<1x128xf32> to vector<8x128xf32>
    %22 = arith.addf %19, %21 : vector<8x128xf32>
    %23 = arith.negf %22 : vector<8x128xf32>
    %24 = math.exp %23 : vector<8x128xf32>
    %cst_17 = arith.constant 1.000000e+00 : f32
    %25 = vector.broadcast %cst_17 : f32 to vector<8x128xf32>
    %26 = arith.addf %25, %24 : vector<8x128xf32>
    %27 = arith.divf %25, %26 : vector<8x128xf32>
    %c0_18 = arith.constant 0 : index
    %c0_19 = arith.constant 0 : index
    %28 = vector.load %arg8[%c0_18, %c0_19] : memref<8x128xf32, #tpu.memory_space<vmem>>, vector<8x128xf32>
    tpu.vector_store %arg8[%c0_18, %c0_19], %27 {strides = array<i32>} : memref<8x128xf32, #tpu.memory_space<vmem>>, vector<8x128xf32>,
    return
  }
  func.func @transform_0(%arg0: i32) -> (i32, i32) {
    %c0_i32 = arith.constant 0 : i32
    %c0_i32_0 = arith.constant 0 : i32
    return %arg0, %c0_i32 : i32, i32
  }
  func.func @transform_1(%arg0: i32) -> (i32, i32) {
    %c0_i32 = arith.constant 0 : i32
    %c0_i32_0 = arith.constant 0 : i32
    %c0_i32_1 = arith.constant 0 : i32
    return %c0_i32, %c0_i32_0 : i32, i32
  }
  func.func @transform_2(%arg0: i32) -> (i32, i32) {
    %c0_i32 = arith.constant 0 : i32
    %c0_i32_0 = arith.constant 0 : i32
    %c0_i32_1 = arith.constant 0 : i32
    return %c0_i32, %c0_i32_0 : i32, i32
  }
  func.func @transform_3(%arg0: i32) -> (i32, i32) {
    %c0_i32 = arith.constant 0 : i32
    %c0_i32_0 = arith.constant 0 : i32
    %c0_i32_1 = arith.constant 0 : i32
    return %c0_i32, %c0_i32_0 : i32, i32
  }
  func.func @transform_4(%arg0: i32) -> (i32, i32) {
    %c0_i32 = arith.constant 0 : i32
    %c0_i32_0 = arith.constant 0 : i32
    %c0_i32_1 = arith.constant 0 : i32
    return %c0_i32, %c0_i32_0 : i32, i32
  }
  func.func @transform_5(%arg0: i32) -> (i32, i32) {
    %c0_i32 = arith.constant 0 : i32
    %c0_i32_0 = arith.constant 0 : i32
    %c0_i32_1 = arith.constant 0 : i32
    return %c0_i32, %c0_i32_0 : i32, i32
  }
  func.func @transform_6(%arg0: i32) -> (i32, i32) {
    %c0_i32 = arith.constant 0 : i32
    %c0_i32_0 = arith.constant 0 : i32
    %c0_i32_1 = arith.constant 0 : i32
    return %c0_i32, %c0_i32_0 : i32, i32
  }
  func.func @transform_7(%arg0: i32) -> (i32, i32) {
    %c0_i32 = arith.constant 0 : i32
    %c0_i32_0 = arith.constant 0 : i32
    return %arg0, %c0_i32 : i32, i32
  }
}

</mosaic_0001>

<bundles_post_ra>
// kernel: tpu_custom_call.1
= control target key start
LH: loop header
LB: loop body
LE: loop exit
PB: predicated region body
PF: predicated region fallthrough
CT: control target
= control target key end

     0   :  { %12 = vsyncpa [#allocation3], 0  ;;  %s9771_s0 = inlined_call_operand.hbm [shape: f32[8,256], index: 0, kind: input, shape index: {}]   ;;  %s9772_s1 = inlined_call_operand.hbm [shape: bf16[256,1024], index: 1, kind: input, shape index: {}]   ;;  %s9773_s2 = inlined_call_operand.hbm [shape: f32[1,1024], index: 2, kind: input, shape index: {}]   ;;  %s9774_s3 = inlined_call_operand.hbm [shape: bf16[1024,1024], index: 3, kind: input, shape index: {}]   ;;  %s9775_s4 = inlined_call_operand.hbm [shape: f32[1,1024], index: 4, kind: input, shape index: {}]   ;;  %s9776_s5 = inlined_call_operand.hbm [shape: bf16[1024,128], index: 5, kind: input, shape index: {}]   ;;  %s9777_s6 = inlined_call_operand.hbm [shape: f32[1,128], index: 6, kind: input, shape index: {}]   ;;  %s9778_s7 = inlined_call_operand.hbm [shape: f32[8,128], index: 7, kind: output, shape index: {}]  }
   0x1   :  { %13 = vsyncpa [#allocation6], 0 }
   0x2   :  { %14 = vsyncpa [#allocation9], 0 }
   0x3   :  { %15 = vsyncpa [#allocation12], 0  ;;  %s32_s26 = sshll.u32 %s9772_s1, 4  ;;  %s33_s26 = int_to_ptr.hbm [resolvable:$true] %s32_s26 }
   0x4   :  { %16 = vsyncpa [#allocation4], 0  ;;  %s9483_s27 = smov [#allocation5]   ;;  %s56_s8 = sshll.u32 %s9774_s3, 4  ;;  %s57_s8 = int_to_ptr.hbm [resolvable:$true] %s56_s8 }
   0x5   :  { %s34_s28 = sshll.u32 %s9483_s27, 4  ;;  %s9484_s9 = smov 512   ;;  %s35_s28 = int_to_ptr.vmem [resolvable:$true] %s34_s28 }
   0x6   :  { %s9485_s10 = smov 32   ;;  %s9486_s11 = smov [#allocation8]  }
   0x7   :  { %40 = dma.hbm_to_vmem [thread:$0]  %s33_s26, 16384, %s35_s28, [#allocation6], %s9484_s9, %s9484_s9, %s9485_s10  }
   0x8   :  { %s58_s12 = sshll.u32 %s9486_s11, 4  ;;  %s80_s15 = sshll.u32 %s9776_s5, 4  ;;  %s59_s12 = int_to_ptr.vmem [resolvable:$true] %s58_s12  ;;  %s81_s15 = int_to_ptr.hbm [resolvable:$true] %s80_s15 }
   0x9   :  { %64 = dma.hbm_to_vmem [thread:$0]  %s57_s8, 65536, %s59_s12, [#allocation9], %s9484_s9, %s9484_s9, %s9485_s10  }
   0xa   :  { %s9487_s1 = smov [#allocation11]   ;;  %s22_s3 = sshll.u32 %s9771_s0, 4  ;;  %s23_s3 = int_to_ptr.hbm [resolvable:$true] %s22_s3 }
   0xb   :  { %s82_s16 = sshll.u32 %s9487_s1, 4  ;;  %s9488_s19 = smov 64   ;;  %s83_s16 = int_to_ptr.vmem [resolvable:$true] %s82_s16 }
   0xc   :  { %s9489_s20 = smov 4   ;;  %s9490_s21 = smov [#allocation2]  }
   0xd   :  { %88 = dma.hbm_to_vmem [thread:$0]  %s81_s15, 8192, %s83_s16, [#allocation12], %s9488_s19, %s9488_s19, %s9489_s20  }
   0xe   :  { %s24_s22 = sshll.u32 %s9490_s21, 4  ;;  %s46_s5 = sshll.u32 %s9773_s2, 4  ;;  %s25_s22 = int_to_ptr.vmem [resolvable:$true] %s24_s22  ;;  %s47_s5 = int_to_ptr.hbm [resolvable:$true] %s46_s5 }
   0xf   :  { %27 = dma.hbm_to_vmem [thread:$0]  %s23_s3, 256, %s25_s22, [#allocation3]  }
  0x10   :  { %s70_s27 = sshll.u32 %s9775_s4, 4  ;;  %s9491_s28 = smov [#allocation7]   ;;  %s71_s27 = int_to_ptr.hbm [resolvable:$true] %s70_s27 }
  0x11   :  { %s48_s29 = sshll.u32 %s9491_s28, 4  ;;  %s9492_s0 = smov [#allocation10]   ;;  %s49_s29 = int_to_ptr.vmem [resolvable:$true] %s48_s29 }
  0x12   :  { %51 = dma.hbm_to_vmem [thread:$0]  %s47_s5, 128, %s49_s29, [#allocation6]  }
  0x13   :  { %s72_s30 = sshll.u32 %s9492_s0, 4  ;;  %s94_s10 = sshll.u32 %s9777_s6, 4  ;;  %s73_s30 = int_to_ptr.vmem [resolvable:$true] %s72_s30  ;;  %s95_s10 = int_to_ptr.hbm [resolvable:$true] %s94_s10 }
  0x14   :  { %75 = dma.hbm_to_vmem [thread:$0]  %s71_s27, 128, %s73_s30, [#allocation9]  }
  0x15   :  { %s9493_s2 = smov [#allocation13]  }
  0x16   :  { %s96_s11 = sshll.u32 %s9493_s2, 4  ;;  %s97_s11 = int_to_ptr.vmem [resolvable:$true] %s96_s11 }
  0x17   :  { %99 = dma.hbm_to_vmem [thread:$0]  %s95_s10, 16, %s97_s11, [#allocation12]  }
  0x18   :  { %9473 = dma.done.wait [#allocation3], 256  }
  0x19   :  { %9474 = vsyncadd [#allocation3], 4294967040 }
  0x1a   :  { %9475 = dma.done.wait [#allocation6], 16512  }
  0x1b   :  { %9476 = vsyncadd [#allocation6], 4294950784 }
  0x1c   :  { %9477 = dma.done.wait [#allocation9], 65664  }
  0x1d   :  { %9478 = vsyncadd [#allocation9], 4294901632 }
  0x1e   :  { %9479 = dma.done.wait [#allocation12], 8208  }
  0x1f   :  { %9480 = vsyncadd [#allocation12], 4294959088  ;;  %v5966_v0 = vld [vmem:[#allocation5 + $0x1c0] sm:$0xf]  ;;  %v8613_v5 = vld [vmem:[#allocation5 + $0x1c4] sm:$0xf] }
  0x20   :  { %v8617_v1 = vld [vmem:[#allocation5 + $0x1dc] sm:$0xf0]  ;;  %v5968_v6 = vld [vmem:[#allocation5 + $0x1e0] sm:$0xf0]  ;;  %s9494_s4 = smov [#allocation14]   ;;  %s5727_s14 = sshll.u32 %s9778_s7, 4  ;;  %s5728_s14 = int_to_ptr.hbm [resolvable:$true] %s5727_s14 }
  0x21   :  { %v6222_v2 = vld [vmem:[#allocation5 + $0x3c0] sm:$0xf]  ;;  %v5967_v3 = vor.u32 %v8617_v1, %v5966_v0  ;;  %v5971_v8 = vor.u32 %v8613_v5, %v5968_v6  ;;  %v8677_v9 = vld [vmem:[#allocation5 + $0x3c4] sm:$0xf]  ;;  %s5725_s6 = sshll.u32 %s9494_s4, 4  ;;  %s5726_s6 = int_to_ptr.vmem [resolvable:$true] %s5725_s6 }
  0x22   :  { %v8681_v4 = vld [vmem:[#allocation5 + $0x3dc] sm:$0xf0]  ;;  %v6224_v10 = vld [vmem:[#allocation5 + $0x3e0] sm:$0xf0] }
  0x23   :  { %v6223_v7 = vor.u32 %v8681_v4, %v6222_v2  ;;  %v5934_v11 = vld [vmem:[#allocation5 + $0x180] sm:$0xf]  ;;  %918 = vmatpush.bf16.msra.mxu0 %v5967_v3  ;;  %v6227_v12 = vor.u32 %v8677_v9, %v6224_v10  ;;  %944 = vmatpush.bf16.msra.mxu2 %v5971_v8  ;;  %v8605_v18 = vld [vmem:[#allocation5 + $0x184] sm:$0xf] }
  0x24   :  { %v8609_v13 = vld [vmem:[#allocation5 + $0x19c] sm:$0xf0]  ;;  %v5936_v19 = vld [vmem:[#allocation5 + $0x1a0] sm:$0xf0] }
  0x25   :  { %v6190_v14 = vld [vmem:[#allocation5 + $0x380] sm:$0xf]  ;;  %931 = vmatpush.bf16.msra.mxu1 %v6223_v7  ;;  %v5935_v16 = vor.u32 %v8609_v13, %v5934_v11  ;;  %v8669_v20 = vld [vmem:[#allocation5 + $0x384] sm:$0xf]  ;;  %957 = vmatpush.bf16.msra.mxu3 %v6227_v12  ;;  %v5939_v21 = vor.u32 %v8605_v18, %v5936_v19 }
  0x26   :  { %v8673_v15 = vld [vmem:[#allocation5 + $0x39c] sm:$0xf0]  ;;  %v6192_v22 = vld [vmem:[#allocation5 + $0x3a0] sm:$0xf0] }
  0x27   :  { %v6191_v17 = vor.u32 %v8673_v15, %v6190_v14  ;;  %v5902_v23 = vld [vmem:[#allocation5 + $0x140] sm:$0xf]  ;;  %v6195_v25 = vor.u32 %v8669_v20, %v6192_v22  ;;  %v8597_v28 = vld [vmem:[#allocation5 + $0x144] sm:$0xf]  ;;  %919 = vmatpush.bf16.msra.mxu0 %v5935_v16  ;;  %945 = vmatpush.bf16.msra.mxu2 %v5939_v21 }
  0x28   :  { %v8601_v24 = vld [vmem:[#allocation5 + $0x15c] sm:$0xf0]  ;;  %v5904_v30 = vld [vmem:[#allocation5 + $0x160] sm:$0xf0] }
  0x29   :  { %v6158_v26 = vld [vmem:[#allocation5 + $0x340] sm:$0xf]  ;;  %v5903_v29 = vor.u32 %v8601_v24, %v5902_v23  ;;  %v8661_v31 = vld [vmem:[#allocation5 + $0x344] sm:$0xf]  ;;  %932 = vmatpush.bf16.msra.mxu1 %v6191_v17  ;;  %v5907_v34 = vor.u32 %v8597_v28, %v5904_v30  ;;  %958 = vmatpush.bf16.msra.mxu3 %v6195_v25  ;;  %v5974_v28 = vld [vmem:[#allocation5 + $0x1c8] sm:$0xf] }
  0x2a   :  { %v8665_v27 = vld [vmem:[#allocation5 + $0x35c] sm:$0xf0]  ;;  %v6160_v32 = vld [vmem:[#allocation5 + $0x360] sm:$0xf0]  ;;  %v6230_v30 = vld [vmem:[#allocation5 + $0x3c8] sm:$0xf] }
  0x2b   :  { %v6159_v33 = vor.u32 %v8665_v27, %v6158_v26  ;;  %v5870_v35 = vld [vmem:[#allocation5 + $0x100] sm:$0xf]  ;;  %v6163_v38 = vor.u32 %v8661_v31, %v6160_v32  ;;  %v8589_v40 = vld [vmem:[#allocation5 + $0x104] sm:$0xf]  ;;  %920 = vmatpush.bf16.msra.mxu0 %v5903_v29  ;;  %946 = vmatpush.bf16.msra.mxu2 %v5907_v34  ;;  %v8618_v29 = vld [vmem:[#allocation5 + $0x1e4] sm:$0xf0] }
  0x2c   :  { %v8593_v36 = vld [vmem:[#allocation5 + $0x11c] sm:$0xf0]  ;;  %v5872_v41 = vld [vmem:[#allocation5 + $0x120] sm:$0xf0]  ;;  %v8682_v32 = vld [vmem:[#allocation5 + $0x3e4] sm:$0xf0] }
  0x2d   :  { %v6126_v37 = vld [vmem:[#allocation5 + $0x300] sm:$0xf]  ;;  %v8653_v42 = vld [vmem:[#allocation5 + $0x304] sm:$0xf]  ;;  %v5871_v44 = vor.u32 %v8593_v36, %v5870_v35  ;;  %933 = vmatpush.bf16.msra.mxu1 %v6159_v33  ;;  %v5875_v46 = vor.u32 %v8589_v40, %v5872_v41  ;;  %959 = vmatpush.bf16.msra.mxu3 %v6163_v38  ;;  %v8614_v33 = vld [vmem:[#allocation5 + $0x1cc] sm:$0xf]  ;;  %v5975_v40 = vor.u32 %v8618_v29, %v5974_v28 }
  0x2e   :  { %v8657_v39 = vld [vmem:[#allocation5 + $0x31c] sm:$0xf0]  ;;  %v6128_v43 = vld [vmem:[#allocation5 + $0x320] sm:$0xf0]  ;;  %v5976_v34 = vld [vmem:[#allocation5 + $0x1e8] sm:$0xf0]  ;;  %v6231_v41 = vor.u32 %v8682_v32, %v6230_v30 }
  0x2f   :  { %v6127_v45 = vor.u32 %v8657_v39, %v6126_v37  ;;  %v5838_v47 = vld [vmem:[#allocation5 + $0xc0] sm:$0xf]  ;;  %v6131_v50 = vor.u32 %v8653_v42, %v6128_v43  ;;  %v8581_v52 = vld [vmem:[#allocation5 + $0xc4] sm:$0xf]  ;;  %921 = vmatpush.bf16.msra.mxu0 %v5871_v44  ;;  %947 = vmatpush.bf16.msra.mxu2 %v5875_v46  ;;  %v8678_v37 = vld [vmem:[#allocation5 + $0x3cc] sm:$0xf]  ;;  %v5979_v42 = vor.u32 %v8614_v33, %v5976_v34 }
  0x30   :  { %v8585_v48 = vld [vmem:[#allocation5 + $0xdc] sm:$0xf0]  ;;  %v5840_v53 = vld [vmem:[#allocation5 + $0xe0] sm:$0xf0]  ;;  %v6232_v38 = vld [vmem:[#allocation5 + $0x3e8] sm:$0xf0] }
  0x31   :  { %v6094_v49 = vld [vmem:[#allocation5 + $0x2c0] sm:$0xf]  ;;  %v8645_v54 = vld [vmem:[#allocation5 + $0x2c4] sm:$0xf]  ;;  %v5839_v56 = vor.u32 %v8585_v48, %v5838_v47  ;;  %934 = vmatpush.bf16.msra.mxu1 %v6127_v45  ;;  %v5843_v58 = vor.u32 %v8581_v52, %v5840_v53  ;;  %960 = vmatpush.bf16.msra.mxu3 %v6131_v50  ;;  %v5942_v43 = vld [vmem:[#allocation5 + $0x188] sm:$0xf]  ;;  %v6235_v46 = vor.u32 %v8678_v37, %v6232_v38 }
  0x32   :  { %v8649_v51 = vld [vmem:[#allocation5 + $0x2dc] sm:$0xf0]  ;;  %v6096_v55 = vld [vmem:[#allocation5 + $0x2e0] sm:$0xf0]  ;;  %v8610_v44 = vld [vmem:[#allocation5 + $0x1a4] sm:$0xf0] }
  0x33   :  { %v6095_v57 = vor.u32 %v8649_v51, %v6094_v49  ;;  %v5806_v59 = vld [vmem:[#allocation5 + $0x80] sm:$0xf]  ;;  %v6099_v62 = vor.u32 %v8645_v54, %v6096_v55  ;;  %v8573_v0 = vld [vmem:[#allocation5 + $0x84] sm:$0xf]  ;;  %922 = vmatpush.bf16.msra.mxu0 %v5839_v56  ;;  %948 = vmatpush.bf16.msra.mxu2 %v5843_v58  ;;  %v6198_v45 = vld [vmem:[#allocation5 + $0x388] sm:$0xf]  ;;  %v5943_v53 = vor.u32 %v8610_v44, %v5942_v43 }
  0x34   :  { %v8577_v60 = vld [vmem:[#allocation5 + $0x9c] sm:$0xf0]  ;;  %v5808_v1 = vld [vmem:[#allocation5 + $0xa0] sm:$0xf0]  ;;  %v8674_v47 = vld [vmem:[#allocation5 + $0x3a4] sm:$0xf0] }
  0x35   :  { %v6062_v61 = vld [vmem:[#allocation5 + $0x280] sm:$0xf]  ;;  %v8637_v2 = vld [vmem:[#allocation5 + $0x284] sm:$0xf]  ;;  %v5807_v4 = vor.u32 %v8577_v60, %v5806_v59  ;;  %935 = vmatpush.bf16.msra.mxu1 %v6095_v57  ;;  %v5811_v6 = vor.u32 %v8573_v0, %v5808_v1  ;;  %961 = vmatpush.bf16.msra.mxu3 %v6099_v62  ;;  %v8606_v48 = vld [vmem:[#allocation5 + $0x18c] sm:$0xf]  ;;  %v6199_v56 = vor.u32 %v8674_v47, %v6198_v45 }
  0x36   :  { %v8641_v63 = vld [vmem:[#allocation5 + $0x29c] sm:$0xf0]  ;;  %v6064_v3 = vld [vmem:[#allocation5 + $0x2a0] sm:$0xf0]  ;;  %v5944_v49 = vld [vmem:[#allocation5 + $0x1a8] sm:$0xf0] }
  0x37   :  { %v6063_v5 = vor.u32 %v8641_v63, %v6062_v61  ;;  %v5774_v7 = vld [vmem:[#allocation5 + $0x40] sm:$0xf]  ;;  %v6067_v10 = vor.u32 %v8637_v2, %v6064_v3  ;;  %v8565_v12 = vld [vmem:[#allocation5 + $0x44] sm:$0xf]  ;;  %923 = vmatpush.bf16.msra.mxu0 %v5807_v4  ;;  %949 = vmatpush.bf16.msra.mxu2 %v5811_v6  ;;  %v8670_v50 = vld [vmem:[#allocation5 + $0x38c] sm:$0xf]  ;;  %v5947_v57 = vor.u32 %v8606_v48, %v5944_v49 }
  0x38   :  { %v8569_v8 = vld [vmem:[#allocation5 + $0x5c] sm:$0xf0]  ;;  %v5776_v13 = vld [vmem:[#allocation5 + $0x60] sm:$0xf0]  ;;  %v6200_v51 = vld [vmem:[#allocation5 + $0x3a8] sm:$0xf0] }
  0x39   :  { %v6030_v9 = vld [vmem:[#allocation5 + $0x240] sm:$0xf]  ;;  %v8629_v14 = vld [vmem:[#allocation5 + $0x244] sm:$0xf]  ;;  %v5775_v16 = vor.u32 %v8569_v8, %v5774_v7  ;;  %936 = vmatpush.bf16.msra.mxu1 %v6063_v5  ;;  %v5779_v20 = vor.u32 %v8565_v12, %v5776_v13  ;;  %962 = vmatpush.bf16.msra.mxu3 %v6067_v10  ;;  %v128_v52 = vld [vmem:[#allocation2] sm:$0xff]  ;;  %v6203_v61 = vor.u32 %v8670_v50, %v6200_v51 }
  0x3a   :  { %v8633_v11 = vld [vmem:[#allocation5 + $0x25c] sm:$0xf0]  ;;  %v6032_v15 = vld [vmem:[#allocation5 + $0x260] sm:$0xf0]  ;;  %v5910_v54 = vld [vmem:[#allocation5 + $0x148] sm:$0xf]  ;;  %v9556_v55 = vpack.c.bf16 %v128_v52, %v128_v52 }
  0x3b   :  { %v5742_v17 = vld [vmem:[#allocation5] sm:$0xf]  ;;  %v6031_v19 = vor.u32 %v8633_v11, %v6030_v9  ;;  %v8557_v23 = vld [vmem:[#allocation5 + $0x4] sm:$0xf]  ;;  %v6035_v24 = vor.u32 %v8629_v14, %v6032_v15  ;;  %924 = vmatpush.bf16.msra.mxu0 %v5775_v16  ;;  %950 = vmatpush.bf16.msra.mxu2 %v5779_v20  ;;  %v8602_v58 = vld [vmem:[#allocation5 + $0x164] sm:$0xf0] }
  0x3c   :  { %v8561_v18 = vld [vmem:[#allocation5 + $0x1c] sm:$0xf0]  ;;  %v5744_v25 = vld [vmem:[#allocation5 + $0x20] sm:$0xf0]  ;;  %v6166_v59 = vld [vmem:[#allocation5 + $0x348] sm:$0xf]  ;;  %v5911_v4 = vor.u32 %v8602_v58, %v5910_v54 }
  0x3d   :  { %v5998_v21 = vld [vmem:[#allocation5 + $0x200] sm:$0xf]  ;;  %v8621_v26 = vld [vmem:[#allocation5 + $0x204] sm:$0xf]  ;;  %v5743_v31 = vor.u32 %v8561_v18, %v5742_v17  ;;  %937 = vmatpush.bf16.msra.mxu1 %v6031_v19  ;;  %v5747_v36 = vor.u32 %v8557_v23, %v5744_v25  ;;  %963 = vmatpush.bf16.msra.mxu3 %v6035_v24  ;;  %v8666_v60 = vld [vmem:[#allocation5 + $0x364] sm:$0xf0] }
  0x3e   :  { %v8625_v22 = vld [vmem:[#allocation5 + $0x21c] sm:$0xf0]  ;;  %v6000_v27 = vld [vmem:[#allocation5 + $0x220] sm:$0xf0]  ;;  %v8598_v62 = vld [vmem:[#allocation5 + $0x14c] sm:$0xf]  ;;  %v6167_v5 = vor.u32 %v8666_v60, %v6166_v59 }
  0x3f   :  { %v5999_v35 = vor.u32 %v8625_v22, %v5998_v21  ;;  %v6003_v39 = vor.u32 %v8621_v26, %v6000_v27  ;;  %925 = vmatpush.bf16.msra.mxu0 %v5743_v31  ;;  %951 = vmatpush.bf16.msra.mxu2 %v5747_v36  ;;  %v5912_v63 = vld [vmem:[#allocation5 + $0x168] sm:$0xf0]  ;;  %v129_v0 = vld [vmem:[#allocation2 + $0x8] sm:$0xff]  ;;  %v5878_v7 = vld [vmem:[#allocation5 + $0x108] sm:$0xf] }
  0x40   :  { %v8662_v1 = vld [vmem:[#allocation5 + $0x34c] sm:$0xf]  ;;  %v9560_v3 = vpack.c.bf16 %v129_v0, %v129_v0  ;;  %v5915_v6 = vor.u32 %v8598_v62, %v5912_v63  ;;  %v8594_v8 = vld [vmem:[#allocation5 + $0x124] sm:$0xf0] }
  0x41   :  { %938 = vmatpush.bf16.msra.mxu1 %v5999_v35  ;;  %964 = vmatpush.bf16.msra.mxu3 %v6003_v39  ;;  %v6168_v2 = vld [vmem:[#allocation5 + $0x368] sm:$0xf0]  ;;  %v6134_v9 = vld [vmem:[#allocation5 + $0x308] sm:$0xf]  ;;  %v5879_v16 = vor.u32 %v8594_v8, %v5878_v7  ;;  %v8615_v7 = vld [vmem:[#allocation5 + $0x1d4] sm:$0xf] }
  0x42   :  { %926 = vmatmul.bf16.vlgmr.msra.gmra.mxu0 %v9556_v55  ;;  %952 = vmatmul.bf16.vlgmr.msra.gmra.mxu2 %v9556_v55  ;;  %v6171_v10 = vor.u32 %v8662_v1, %v6168_v2  ;;  %v8658_v11 = vld [vmem:[#allocation5 + $0x324] sm:$0xf0]  ;;  %v8590_v12 = vld [vmem:[#allocation5 + $0x10c] sm:$0xf]  ;;  %v5982_v1 = vld [vmem:[#allocation5 + $0x1d0] sm:$0xf] }
  0x43   :  { %970 = vmatpush.bf16.msrb.mxu0 %v5975_v40  ;;  %996 = vmatpush.bf16.msrb.mxu2 %v5979_v42  ;;  %v5880_v13 = vld [vmem:[#allocation5 + $0x128] sm:$0xf0]  ;;  %v6135_v17 = vor.u32 %v8658_v11, %v6134_v9  ;;  %v5846_v19 = vld [vmem:[#allocation5 + $0xc8] sm:$0xf]  ;;  %v8619_v2 = vld [vmem:[#allocation5 + $0x1ec] sm:$0xf0] }
  0x44   :  { %939 = vmatmul.bf16.vlgmr.msra.gmra.mxu1 %v9560_v3  ;;  %v8654_v14 = vld [vmem:[#allocation5 + $0x30c] sm:$0xf]  ;;  %965 = vmatmul.bf16.vlgmr.msra.gmra.mxu3 %v9560_v3  ;;  %v5883_v18 = vor.u32 %v8590_v12, %v5880_v13  ;;  %v8586_v20 = vld [vmem:[#allocation5 + $0xe4] sm:$0xf0]  ;;  %v5984_v8 = vld [vmem:[#allocation5 + $0x1f0] sm:$0xf0] }
  0x45   :  { %983 = vmatpush.bf16.msrb.mxu1 %v6231_v41  ;;  %1009 = vmatpush.bf16.msrb.mxu3 %v6235_v46  ;;  %v6136_v15 = vld [vmem:[#allocation5 + $0x328] sm:$0xf0]  ;;  %v6102_v21 = vld [vmem:[#allocation5 + $0x2c8] sm:$0xf]  ;;  %v5847_v28 = vor.u32 %v8586_v20, %v5846_v19  ;;  %v8679_v11 = vld [vmem:[#allocation5 + $0x3d4] sm:$0xf] }
  0x46   :  { %v6139_v22 = vor.u32 %v8654_v14, %v6136_v15  ;;  %v8650_v23 = vld [vmem:[#allocation5 + $0x2e4] sm:$0xf0]  ;;  %v8582_v24 = vld [vmem:[#allocation5 + $0xcc] sm:$0xf]  ;;  %v6240_v12 = vld [vmem:[#allocation5 + $0x3f0] sm:$0xf0]  ;;  %v5983_v14 = vor.u32 %v8619_v2, %v5982_v1 }
  0x47   :  { %971 = vmatpush.bf16.msrb.mxu0 %v5943_v53  ;;  %997 = vmatpush.bf16.msrb.mxu2 %v5947_v57  ;;  %v5848_v25 = vld [vmem:[#allocation5 + $0xe8] sm:$0xf0]  ;;  %v6103_v29 = vor.u32 %v8650_v23, %v6102_v21  ;;  %v5814_v31 = vld [vmem:[#allocation5 + $0x88] sm:$0xf]  ;;  %v6206_v19 = vld [vmem:[#allocation5 + $0x390] sm:$0xf]  ;;  %v6243_v20 = vor.u32 %v8679_v11, %v6240_v12 }
  0x48   :  { %v8646_v26 = vld [vmem:[#allocation5 + $0x2cc] sm:$0xf]  ;;  %v5851_v30 = vor.u32 %v8582_v24, %v5848_v25  ;;  %v8578_v32 = vld [vmem:[#allocation5 + $0xa4] sm:$0xf0]  ;;  %v8675_v21 = vld [vmem:[#allocation5 + $0x3ac] sm:$0xf0] }
  0x49   :  { %984 = vmatpush.bf16.msrb.mxu1 %v6199_v56  ;;  %1010 = vmatpush.bf16.msrb.mxu3 %v6203_v61  ;;  %v6104_v27 = vld [vmem:[#allocation5 + $0x2e8] sm:$0xf0]  ;;  %v6070_v33 = vld [vmem:[#allocation5 + $0x288] sm:$0xf]  ;;  %v5815_v40 = vor.u32 %v8578_v32, %v5814_v31  ;;  %v5952_v23 = vld [vmem:[#allocation5 + $0x1b0] sm:$0xf0] }
  0x4a   :  { %v6107_v34 = vor.u32 %v8646_v26, %v6104_v27  ;;  %v8642_v35 = vld [vmem:[#allocation5 + $0x2a4] sm:$0xf0]  ;;  %v8574_v36 = vld [vmem:[#allocation5 + $0x8c] sm:$0xf]  ;;  %v8671_v24 = vld [vmem:[#allocation5 + $0x394] sm:$0xf]  ;;  %v6207_v27 = vor.u32 %v8675_v21, %v6206_v19 }
  0x4b   :  { %972 = vmatpush.bf16.msrb.mxu0 %v5911_v4  ;;  %998 = vmatpush.bf16.msrb.mxu2 %v5915_v6  ;;  %v5816_v37 = vld [vmem:[#allocation5 + $0xa8] sm:$0xf0]  ;;  %v6071_v41 = vor.u32 %v8642_v35, %v6070_v33  ;;  %v5782_v43 = vld [vmem:[#allocation5 + $0x48] sm:$0xf]  ;;  %v6238_v4 = vld [vmem:[#allocation5 + $0x3d0] sm:$0xf] }
  0x4c   :  { %v8638_v38 = vld [vmem:[#allocation5 + $0x28c] sm:$0xf]  ;;  %v5819_v42 = vor.u32 %v8574_v36, %v5816_v37  ;;  %v8570_v44 = vld [vmem:[#allocation5 + $0x64] sm:$0xf0]  ;;  %v8683_v6 = vld [vmem:[#allocation5 + $0x3ec] sm:$0xf0] }
  0x4d   :  { %985 = vmatpush.bf16.msrb.mxu1 %v6167_v5  ;;  %1011 = vmatpush.bf16.msrb.mxu3 %v6171_v10  ;;  %v6072_v39 = vld [vmem:[#allocation5 + $0x2a8] sm:$0xf0]  ;;  %v6038_v45 = vld [vmem:[#allocation5 + $0x248] sm:$0xf]  ;;  %v5783_v52 = vor.u32 %v8570_v44, %v5782_v43  ;;  %v6239_v15 = vor.u32 %v8683_v6, %v6238_v4  ;;  %v6208_v25 = vld [vmem:[#allocation5 + $0x3b0] sm:$0xf0] }
  0x4e   :  { %v6075_v46 = vor.u32 %v8638_v38, %v6072_v39  ;;  %v8634_v47 = vld [vmem:[#allocation5 + $0x264] sm:$0xf0]  ;;  %v8566_v48 = vld [vmem:[#allocation5 + $0x4c] sm:$0xf]  ;;  %v6174_v31 = vld [vmem:[#allocation5 + $0x350] sm:$0xf]  ;;  %v6211_v32 = vor.u32 %v8671_v24, %v6208_v25 }
  0x4f   :  { %973 = vmatpush.bf16.msrb.mxu0 %v5879_v16  ;;  %999 = vmatpush.bf16.msrb.mxu2 %v5883_v18  ;;  %v5784_v49 = vld [vmem:[#allocation5 + $0x68] sm:$0xf0]  ;;  %v5750_v53 = vld [vmem:[#allocation5 + $0x8] sm:$0xf]  ;;  %v6039_v56 = vor.u32 %v8634_v47, %v6038_v45  ;;  %v5987_v16 = vor.u32 %v8615_v7, %v5984_v8  ;;  %v8611_v18 = vld [vmem:[#allocation5 + $0x1ac] sm:$0xf0] }
  0x50   :  { %v8630_v50 = vld [vmem:[#allocation5 + $0x24c] sm:$0xf]  ;;  %v8562_v54 = vld [vmem:[#allocation5 + $0x24] sm:$0xf0]  ;;  %v5787_v57 = vor.u32 %v8566_v48, %v5784_v49  ;;  %v8667_v33 = vld [vmem:[#allocation5 + $0x36c] sm:$0xf0] }
  0x51   :  { %986 = vmatpush.bf16.msrb.mxu1 %v6135_v17  ;;  %1012 = vmatpush.bf16.msrb.mxu3 %v6139_v22  ;;  %v6040_v51 = vld [vmem:[#allocation5 + $0x268] sm:$0xf0]  ;;  %v6006_v58 = vld [vmem:[#allocation5 + $0x208] sm:$0xf]  ;;  %v5751_v5 = vor.u32 %v8562_v54, %v5750_v53  ;;  %v5950_v17 = vld [vmem:[#allocation5 + $0x190] sm:$0xf]  ;;  %v6175_v39 = vor.u32 %v8667_v33, %v6174_v31 }
  0x52   :  { %v8626_v59 = vld [vmem:[#allocation5 + $0x224] sm:$0xf0]  ;;  %v8558_v60 = vld [vmem:[#allocation5 + $0xc] sm:$0xf]  ;;  %v6043_v61 = vor.u32 %v8630_v50, %v6040_v51  ;;  %v8607_v22 = vld [vmem:[#allocation5 + $0x194] sm:$0xf]  ;;  %v5951_v26 = vor.u32 %v8611_v18, %v5950_v17 }
  0x53   :  { %974 = vmatpush.bf16.msrb.mxu0 %v5847_v28  ;;  %1000 = vmatpush.bf16.msrb.mxu2 %v5851_v30  ;;  %v5752_v62 = vld [vmem:[#allocation5 + $0x28] sm:$0xf0]  ;;  %v6007_v9 = vor.u32 %v8626_v59, %v6006_v58  ;;  %v5955_v28 = vor.u32 %v8607_v22, %v5952_v23  ;;  %v8603_v30 = vld [vmem:[#allocation5 + $0x16c] sm:$0xf0]  ;;  %v5920_v35 = vld [vmem:[#allocation5 + $0x170] sm:$0xf0] }
  0x54   :  { %v8622_v63 = vld [vmem:[#allocation5 + $0x20c] sm:$0xf]  ;;  %v5755_v10 = vor.u32 %v8558_v60, %v5752_v62  ;;  %v8663_v36 = vld [vmem:[#allocation5 + $0x354] sm:$0xf]  ;;  %v6142_v43 = vld [vmem:[#allocation5 + $0x310] sm:$0xf] }
  0x55   :  { %987 = vmatpush.bf16.msrb.mxu1 %v6103_v29  ;;  %1013 = vmatpush.bf16.msrb.mxu3 %v6107_v34  ;;  %v6008_v0 = vld [vmem:[#allocation5 + $0x228] sm:$0xf0]  ;;  %v5918_v29 = vld [vmem:[#allocation5 + $0x150] sm:$0xf]  ;;  %v8599_v34 = vld [vmem:[#allocation5 + $0x154] sm:$0xf] }
  0x56   :  { %v6011_v13 = vor.u32 %v8622_v63, %v6008_v0  ;;  %v6176_v37 = vld [vmem:[#allocation5 + $0x370] sm:$0xf0]  ;;  %v5919_v38 = vor.u32 %v8603_v30, %v5918_v29  ;;  %v8659_v45 = vld [vmem:[#allocation5 + $0x32c] sm:$0xf0] }
  0x57   :  { %975 = vmatpush.bf16.msrb.mxu0 %v5815_v40  ;;  %1001 = vmatpush.bf16.msrb.mxu2 %v5819_v42  ;;  %v5923_v40 = vor.u32 %v8599_v34, %v5920_v35  ;;  %v8595_v42 = vld [vmem:[#allocation5 + $0x12c] sm:$0xf0]  ;;  %v6179_v44 = vor.u32 %v8663_v36, %v6176_v37  ;;  %v5888_v47 = vld [vmem:[#allocation5 + $0x130] sm:$0xf0]  ;;  %v6143_v51 = vor.u32 %v8659_v45, %v6142_v43  ;;  %v5990_v36 = vld [vmem:[#allocation5 + $0x1d8] sm:$0xf] }
  0x58   :  { %v8655_v48 = vld [vmem:[#allocation5 + $0x314] sm:$0xf]  ;;  %v5854_v53 = vld [vmem:[#allocation5 + $0xd0] sm:$0xf]  ;;  %v8620_v37 = vld [vmem:[#allocation5 + $0x1f4] sm:$0xf0] }
  0x59   :  { %988 = vmatpush.bf16.msrb.mxu1 %v6071_v41  ;;  %1014 = vmatpush.bf16.msrb.mxu3 %v6075_v46  ;;  %v5886_v41 = vld [vmem:[#allocation5 + $0x110] sm:$0xf]  ;;  %v8591_v46 = vld [vmem:[#allocation5 + $0x114] sm:$0xf]  ;;  %v8680_v45 = vld [vmem:[#allocation5 + $0x3dc] sm:$0xf] }
  0x5a   :  { %v6144_v49 = vld [vmem:[#allocation5 + $0x330] sm:$0xf0]  ;;  %v5887_v50 = vor.u32 %v8595_v42, %v5886_v41  ;;  %v8587_v54 = vld [vmem:[#allocation5 + $0xec] sm:$0xf0]  ;;  %v8616_v41 = vld [vmem:[#allocation5 + $0x1dc] sm:$0xf] }
  0x5b   :  { %976 = vmatpush.bf16.msrb.mxu0 %v5783_v52  ;;  %1002 = vmatpush.bf16.msrb.mxu2 %v5787_v57  ;;  %v5891_v52 = vor.u32 %v8591_v46, %v5888_v47  ;;  %v6147_v57 = vor.u32 %v8655_v48, %v6144_v49  ;;  %v8651_v58 = vld [vmem:[#allocation5 + $0x2ec] sm:$0xf0]  ;;  %v8583_v59 = vld [vmem:[#allocation5 + $0xd4] sm:$0xf]  ;;  %v5855_v63 = vor.u32 %v8587_v54, %v5854_v53  ;;  %v5992_v42 = vld [vmem:[#allocation5 + $0x1f8] sm:$0xf0] }
  0x5c   :  { %v5856_v60 = vld [vmem:[#allocation5 + $0xf0] sm:$0xf0]  ;;  %v5822_v2 = vld [vmem:[#allocation5 + $0x90] sm:$0xf]  ;;  %v6248_v46 = vld [vmem:[#allocation5 + $0x3f8] sm:$0xf0]  ;;  %v5991_v48 = vor.u32 %v8620_v37, %v5990_v36 }
  0x5d   :  { %989 = vmatpush.bf16.msrb.mxu1 %v6039_v56  ;;  %1015 = vmatpush.bf16.msrb.mxu3 %v6043_v61  ;;  %v6110_v56 = vld [vmem:[#allocation5 + $0x2d0] sm:$0xf]  ;;  %v8647_v61 = vld [vmem:[#allocation5 + $0x2d4] sm:$0xf]  ;;  %v5859_v1 = vor.u32 %v8583_v59, %v5856_v60  ;;  %v6214_v53 = vld [vmem:[#allocation5 + $0x398] sm:$0xf]  ;;  %v6251_v54 = vor.u32 %v8680_v45, %v6248_v46 }
  0x5e   :  { %v6112_v62 = vld [vmem:[#allocation5 + $0x2f0] sm:$0xf0]  ;;  %v6111_v0 = vor.u32 %v8651_v58, %v6110_v56  ;;  %v8579_v4 = vld [vmem:[#allocation5 + $0xac] sm:$0xf0]  ;;  %v8676_v56 = vld [vmem:[#allocation5 + $0x3b4] sm:$0xf0] }
  0x5f   :  { %977 = vmatpush.bf16.msrb.mxu0 %v5751_v5  ;;  %1003 = vmatpush.bf16.msrb.mxu2 %v5755_v10  ;;  %v6078_v5 = vld [vmem:[#allocation5 + $0x290] sm:$0xf]  ;;  %v6115_v6 = vor.u32 %v8647_v61, %v6112_v62  ;;  %v8575_v8 = vld [vmem:[#allocation5 + $0x94] sm:$0xf]  ;;  %v5823_v12 = vor.u32 %v8579_v4, %v5822_v2  ;;  %v5960_v58 = vld [vmem:[#allocation5 + $0x1b8] sm:$0xf0]  ;;  %v6215_v62 = vor.u32 %v8676_v56, %v6214_v53 }
  0x60   :  { %v8643_v7 = vld [vmem:[#allocation5 + $0x2ac] sm:$0xf0]  ;;  %v8639_v10 = vld [vmem:[#allocation5 + $0x294] sm:$0xf]  ;;  %v8672_v59 = vld [vmem:[#allocation5 + $0x39c] sm:$0xf] }
  0x61   :  { %990 = vmatpush.bf16.msrb.mxu1 %v6007_v9  ;;  %1016 = vmatpush.bf16.msrb.mxu3 %v6011_v13  ;;  %v5824_v9 = vld [vmem:[#allocation5 + $0xb0] sm:$0xf0]  ;;  %v6079_v13 = vor.u32 %v8643_v7, %v6078_v5  ;;  %v6046_v17 = vld [vmem:[#allocation5 + $0x250] sm:$0xf]  ;;  %v6216_v60 = vld [vmem:[#allocation5 + $0x3b8] sm:$0xf0] }
  0x62   :  { %978 = vmatmul.bf16.vlgmr.msrb.gmra.mxu0 %v9556_v55  ;;  %1004 = vmatmul.bf16.vlgmr.msrb.gmra.mxu2 %v9556_v55  ;;  %v6080_v11 = vld [vmem:[#allocation5 + $0x2b0] sm:$0xf0]  ;;  %v8635_v19 = vld [vmem:[#allocation5 + $0x26c] sm:$0xf0]  ;;  %v6182_v2 = vld [vmem:[#allocation5 + $0x358] sm:$0xf]  ;;  %v6219_v4 = vor.u32 %v8672_v59, %v6216_v60 }
  0x63   :  { %1022 = vmatpush.bf16.msra.mxu0 %v5983_v14  ;;  %1048 = vmatpush.bf16.msra.mxu2 %v5987_v16  ;;  %v5827_v14 = vor.u32 %v8575_v8, %v5824_v9  ;;  %v8571_v16 = vld [vmem:[#allocation5 + $0x6c] sm:$0xf0]  ;;  %v6083_v18 = vor.u32 %v8639_v10, %v6080_v11  ;;  %v5792_v21 = vld [vmem:[#allocation5 + $0x70] sm:$0xf0]  ;;  %v8668_v5 = vld [vmem:[#allocation5 + $0x374] sm:$0xf0] }
  0x64   :  { %991 = vmatmul.bf16.vlgmr.msrb.gmra.mxu1 %v9560_v3  ;;  %1017 = vmatmul.bf16.vlgmr.msrb.gmra.mxu3 %v9560_v3  ;;  %v8631_v22 = vld [vmem:[#allocation5 + $0x254] sm:$0xf]  ;;  %v5758_v25 = vld [vmem:[#allocation5 + $0x10] sm:$0xf]  ;;  %v5928_v7 = vld [vmem:[#allocation5 + $0x178] sm:$0xf0]  ;;  %v6183_v11 = vor.u32 %v8668_v5, %v6182_v2 }
  0x65   :  { %1035 = vmatpush.bf16.msra.mxu1 %v6239_v15  ;;  %1061 = vmatpush.bf16.msra.mxu3 %v6243_v20  ;;  %v5790_v15 = vld [vmem:[#allocation5 + $0x50] sm:$0xf]  ;;  %v8567_v20 = vld [vmem:[#allocation5 + $0x54] sm:$0xf]  ;;  %v8664_v8 = vld [vmem:[#allocation5 + $0x35c] sm:$0xf] }
  0x66   :  { %v6048_v23 = vld [vmem:[#allocation5 + $0x270] sm:$0xf0]  ;;  %v5791_v24 = vor.u32 %v8571_v16, %v5790_v15  ;;  %v6014_v29 = vld [vmem:[#allocation5 + $0x210] sm:$0xf]  ;;  %v6184_v9 = vld [vmem:[#allocation5 + $0x378] sm:$0xf0] }
  0x67   :  { %1023 = vmatpush.bf16.msra.mxu0 %v5951_v26  ;;  %1049 = vmatpush.bf16.msra.mxu2 %v5955_v28  ;;  %v8563_v26 = vld [vmem:[#allocation5 + $0x2c] sm:$0xf0]  ;;  %v5795_v28 = vor.u32 %v8567_v20, %v5792_v21  ;;  %v8559_v31 = vld [vmem:[#allocation5 + $0x14] sm:$0xf]  ;;  %v6150_v15 = vld [vmem:[#allocation5 + $0x318] sm:$0xf]  ;;  %v6187_v16 = vor.u32 %v8664_v8, %v6184_v9 }
  0x68   :  { %v8627_v30 = vld [vmem:[#allocation5 + $0x22c] sm:$0xf0]  ;;  %v5760_v33 = vld [vmem:[#allocation5 + $0x30] sm:$0xf0]  ;;  %v8656_v20 = vld [vmem:[#allocation5 + $0x31c] sm:$0xf] }
  0x69   :  { %1036 = vmatpush.bf16.msra.mxu1 %v6207_v27  ;;  %1062 = vmatpush.bf16.msra.mxu3 %v6211_v32  ;;  %v6047_v27 = vor.u32 %v8635_v19, %v6046_v17  ;;  %v6051_v32 = vor.u32 %v8631_v22, %v6048_v23  ;;  %v8623_v34 = vld [vmem:[#allocation5 + $0x214] sm:$0xf]  ;;  %v6015_v43 = vor.u32 %v8627_v30, %v6014_v29  ;;  %v8660_v17 = vld [vmem:[#allocation5 + $0x334] sm:$0xf0]  ;;  %v5896_v19 = vld [vmem:[#allocation5 + $0x138] sm:$0xf0] }
  0x6a   :  { %v6016_v35 = vld [vmem:[#allocation5 + $0x230] sm:$0xf0]  ;;  %v6152_v21 = vld [vmem:[#allocation5 + $0x338] sm:$0xf0]  ;;  %v6151_v23 = vor.u32 %v8660_v17, %v6150_v15  ;;  %v8652_v29 = vld [vmem:[#allocation5 + $0x2f4] sm:$0xf0] }
  0x6b   :  { %1024 = vmatpush.bf16.msra.mxu0 %v5919_v38  ;;  %1050 = vmatpush.bf16.msra.mxu2 %v5923_v40  ;;  %v6246_v38 = vld [vmem:[#allocation5 + $0x3d8] sm:$0xf]  ;;  %v6019_v47 = vor.u32 %v8623_v34, %v6016_v35  ;;  %v8584_v30 = vld [vmem:[#allocation5 + $0xdc] sm:$0xf]  ;;  %v6478_v8 = vld [vmem:[#allocation8 + $0x1c0] sm:$0xf] }
  0x6c   :  { %v8684_v40 = vld [vmem:[#allocation5 + $0x3f4] sm:$0xf0]  ;;  %v6088_v45 = vld [vmem:[#allocation5 + $0x2b8] sm:$0xf0]  ;;  %v8745_v9 = vld [vmem:[#allocation8 + $0x1dc] sm:$0xf0] }
  0x6d   :  { %1037 = vmatpush.bf16.msra.mxu1 %v6175_v39  ;;  %1063 = vmatpush.bf16.msra.mxu3 %v6179_v44  ;;  %v5759_v39 = vor.u32 %v8563_v26, %v5758_v25  ;;  %v5763_v44 = vor.u32 %v8559_v31, %v5760_v33  ;;  %v6247_v49 = vor.u32 %v8684_v40, %v6246_v38  ;;  %v5862_v25 = vld [vmem:[#allocation5 + $0xd8] sm:$0xf]  ;;  %v5864_v31 = vld [vmem:[#allocation5 + $0xf8] sm:$0xf0]  ;;  %v6990_v17 = vld [vmem:[#allocation8 + $0x5c0] sm:$0xf] }
  0x6e   :  { %v8588_v26 = vld [vmem:[#allocation5 + $0xf4] sm:$0xf0]  ;;  %v6120_v33 = vld [vmem:[#allocation5 + $0x2f8] sm:$0xf0]  ;;  %v5867_v36 = vor.u32 %v8584_v30, %v5864_v31  ;;  %v6670_v31 = vld [vmem:[#allocation8 + $0x340] sm:$0xf] }
  0x6f   :  { %1025 = vmatpush.bf16.msra.mxu0 %v5887_v50  ;;  %1051 = vmatpush.bf16.msra.mxu2 %v5891_v52  ;;  %v5995_v50 = vor.u32 %v8616_v41, %v5992_v42  ;;  %v8612_v52 = vld [vmem:[#allocation5 + $0x1b4] sm:$0xf0]  ;;  %v5863_v34 = vor.u32 %v8588_v26, %v5862_v25  ;;  %v8576_v42 = vld [vmem:[#allocation5 + $0x9c] sm:$0xf]  ;;  %v6958_v26 = vld [vmem:[#allocation8 + $0x580] sm:$0xf] }
  0x70   :  { %v5830_v37 = vld [vmem:[#allocation5 + $0x98] sm:$0xf]  ;;  %v5800_v56 = vld [vmem:[#allocation5 + $0x78] sm:$0xf0] }
  0x71   :  { %1038 = vmatpush.bf16.msra.mxu1 %v6143_v51  ;;  %1064 = vmatpush.bf16.msra.mxu3 %v6147_v57  ;;  %v5958_v51 = vld [vmem:[#allocation5 + $0x198] sm:$0xf]  ;;  %v8608_v57 = vld [vmem:[#allocation5 + $0x19c] sm:$0xf] }
  0x72   :  { %v5959_v61 = vor.u32 %v8612_v52, %v5958_v51  ;;  %v8580_v38 = vld [vmem:[#allocation5 + $0xb4] sm:$0xf0]  ;;  %v5768_v5 = vld [vmem:[#allocation5 + $0x38] sm:$0xf0] }
  0x73   :  { %1026 = vmatpush.bf16.msra.mxu0 %v5855_v63  ;;  %1052 = vmatpush.bf16.msra.mxu2 %v5859_v1  ;;  %v5963_v63 = vor.u32 %v8608_v57, %v5960_v58  ;;  %v8604_v1 = vld [vmem:[#allocation5 + $0x174] sm:$0xf0]  ;;  %v5831_v46 = vor.u32 %v8580_v38, %v5830_v37  ;;  %v8632_v57 = vld [vmem:[#allocation5 + $0x25c] sm:$0xf]  ;;  %v6638_v38 = vld [vmem:[#allocation8 + $0x300] sm:$0xf] }
  0x74   :  { %v8644_v41 = vld [vmem:[#allocation5 + $0x2b4] sm:$0xf0]  ;;  %v6056_v58 = vld [vmem:[#allocation5 + $0x278] sm:$0xf0] }
  0x75   :  { %1039 = vmatpush.bf16.msra.mxu1 %v6111_v0  ;;  %1065 = vmatpush.bf16.msra.mxu3 %v6115_v6  ;;  %v5926_v0 = vld [vmem:[#allocation5 + $0x158] sm:$0xf]  ;;  %v8600_v6 = vld [vmem:[#allocation5 + $0x15c] sm:$0xf]  ;;  %v6059_v2 = vor.u32 %v8632_v57, %v6056_v58  ;;  %v7214_v57 = vld [vmem:[#allocation8 + $0x780] sm:$0xf] }
  0x76   :  { %v5927_v10 = vor.u32 %v8604_v1, %v5926_v0  ;;  %v6054_v51 = vld [vmem:[#allocation5 + $0x258] sm:$0xf]  ;;  %v8929_v58 = vld [vmem:[#allocation8 + $0x79c] sm:$0xf0] }
  0x77   :  { %1027 = vmatpush.bf16.msra.mxu0 %v5823_v12  ;;  %1053 = vmatpush.bf16.msra.mxu2 %v5827_v14  ;;  %v5931_v12 = vor.u32 %v8600_v6, %v5928_v7  ;;  %v8596_v14 = vld [vmem:[#allocation5 + $0x134] sm:$0xf0]  ;;  %v8624_v6 = vld [vmem:[#allocation5 + $0x21c] sm:$0xf] }
  0x78   :  { %v8636_v53 = vld [vmem:[#allocation5 + $0x274] sm:$0xf0]  ;;  %v6024_v7 = vld [vmem:[#allocation5 + $0x238] sm:$0xf0] }
  0x79   :  { %1040 = vmatpush.bf16.msra.mxu1 %v6079_v13  ;;  %1066 = vmatpush.bf16.msra.mxu3 %v6083_v18  ;;  %v5894_v13 = vld [vmem:[#allocation5 + $0x118] sm:$0xf]  ;;  %v8592_v18 = vld [vmem:[#allocation5 + $0x11c] sm:$0xf]  ;;  %v6027_v15 = vor.u32 %v8624_v6, %v6024_v7  ;;  %v6254_v6 = vld [vmem:[#allocation8] sm:$0xf] }
  0x7a   :  { %v5895_v22 = vor.u32 %v8596_v14, %v5894_v13  ;;  %v5766_v60 = vld [vmem:[#allocation5 + $0x18] sm:$0xf] }
  0x7b   :  { %1028 = vmatpush.bf16.msra.mxu0 %v5791_v24  ;;  %1054 = vmatpush.bf16.msra.mxu2 %v5795_v28  ;;  %v5899_v24 = vor.u32 %v8592_v18, %v5896_v19  ;;  %v6155_v28 = vor.u32 %v8656_v20, %v6152_v21  ;;  %v6022_v0 = vld [vmem:[#allocation5 + $0x218] sm:$0xf]  ;;  %v8873_v18 = vld [vmem:[#allocation8 + $0x5dc] sm:$0xf0] }
  0x7c   :  { %v8628_v1 = vld [vmem:[#allocation5 + $0x234] sm:$0xf0]  ;;  %v6446_v19 = vld [vmem:[#allocation8 + $0x180] sm:$0xf] }
  0x7d   :  { %1041 = vmatpush.bf16.msra.mxu1 %v6047_v27  ;;  %1067 = vmatpush.bf16.msra.mxu3 %v6051_v32  ;;  %v6118_v27 = vld [vmem:[#allocation5 + $0x2d8] sm:$0xf]  ;;  %v8648_v32 = vld [vmem:[#allocation5 + $0x2dc] sm:$0xf]  ;;  %v6023_v13 = vor.u32 %v8628_v1, %v6022_v0  ;;  %v8737_v20 = vld [vmem:[#allocation8 + $0x19c] sm:$0xf0] }
  0x7e   :  { %v6119_v35 = vor.u32 %v8652_v29, %v6118_v27  ;;  %v6123_v40 = vor.u32 %v8648_v32, %v6120_v33  ;;  %v6447_v25 = vor.u32 %v8737_v20, %v6446_v19  ;;  %v8865_v27 = vld [vmem:[#allocation8 + $0x59c] sm:$0xf0] }
  0x7f   :  { %1029 = vmatpush.bf16.msra.mxu0 %v5759_v39  ;;  %1055 = vmatpush.bf16.msra.mxu2 %v5763_v44  ;;  %v6086_v39 = vld [vmem:[#allocation5 + $0x298] sm:$0xf]  ;;  %v8640_v44 = vld [vmem:[#allocation5 + $0x29c] sm:$0xf]  ;;  %v8729_v29 = vld [vmem:[#allocation8 + $0x15c] sm:$0xf0]  ;;  %v6959_v33 = vor.u32 %v8865_v27, %v6958_v26 }
  0x80   :  { %v6091_v52 = vor.u32 %v8640_v44, %v6088_v45  ;;  %v8793_v32 = vld [vmem:[#allocation8 + $0x35c] sm:$0xf0] }
  0x81   :  { %1042 = vmatpush.bf16.msra.mxu1 %v6015_v43  ;;  %1068 = vmatpush.bf16.msra.mxu3 %v6019_v47  ;;  %v5832_v43 = vld [vmem:[#allocation5 + $0xb8] sm:$0xf0]  ;;  %v6087_v47 = vor.u32 %v8644_v41, %v6086_v39  ;;  %v6671_v37 = vor.u32 %v8793_v32, %v6670_v31  ;;  %v8785_v39 = vld [vmem:[#allocation8 + $0x31c] sm:$0xf0] }
  0x82   :  { %1030 = vmatmul.bf16.vlgmr.msra.gmra.mxu0 %v9556_v55  ;;  %1056 = vmatmul.bf16.vlgmr.msra.gmra.mxu2 %v9556_v55  ;;  %v8937_v41 = vld [vmem:[#allocation8 + $0x7dc] sm:$0xf0] }
  0x83   :  { %1074 = vmatpush.bf16.msrb.mxu0 %v5991_v48  ;;  %1100 = vmatpush.bf16.msrb.mxu2 %v5995_v50  ;;  %v5835_v48 = vor.u32 %v8576_v42, %v5832_v43  ;;  %v8572_v50 = vld [vmem:[#allocation5 + $0x74] sm:$0xf0]  ;;  %v6350_v43 = vld [vmem:[#allocation8 + $0xc0] sm:$0xf] }
  0x84   :  { %1043 = vmatmul.bf16.vlgmr.msra.gmra.mxu1 %v9560_v3  ;;  %1069 = vmatmul.bf16.vlgmr.msra.gmra.mxu3 %v9560_v3  ;;  %v8713_v44 = vld [vmem:[#allocation8 + $0xdc] sm:$0xf0] }
  0x85   :  { %1087 = vmatpush.bf16.msrb.mxu1 %v6247_v49  ;;  %1113 = vmatpush.bf16.msrb.mxu3 %v6251_v54  ;;  %v5798_v49 = vld [vmem:[#allocation5 + $0x58] sm:$0xf]  ;;  %v8568_v54 = vld [vmem:[#allocation5 + $0x5c] sm:$0xf]  ;;  %v6606_v45 = vld [vmem:[#allocation8 + $0x2c0] sm:$0xf] }
  0x86   :  { %v5799_v59 = vor.u32 %v8572_v50, %v5798_v49  ;;  %v8705_v49 = vld [vmem:[#allocation8 + $0x9c] sm:$0xf0] }
  0x87   :  { %1075 = vmatpush.bf16.msrb.mxu0 %v5959_v61  ;;  %1101 = vmatpush.bf16.msrb.mxu2 %v5963_v63  ;;  %v6055_v61 = vor.u32 %v8636_v53, %v6054_v51  ;;  %v8564_v63 = vld [vmem:[#allocation5 + $0x34] sm:$0xf0]  ;;  %v6574_v51 = vld [vmem:[#allocation8 + $0x280] sm:$0xf] }
  0x88   :  { %v6926_v53 = vld [vmem:[#allocation8 + $0x540] sm:$0xf] }
  0x89   :  { %1088 = vmatpush.bf16.msrb.mxu1 %v6215_v62  ;;  %1114 = vmatpush.bf16.msrb.mxu3 %v6219_v4  ;;  %v5803_v62 = vor.u32 %v8568_v54, %v5800_v56  ;;  %v8560_v4 = vld [vmem:[#allocation5 + $0x1c] sm:$0xf]  ;;  %v8857_v54 = vld [vmem:[#allocation8 + $0x55c] sm:$0xf0] }
  0x8a   :  { %v5771_v14 = vor.u32 %v8560_v4, %v5768_v5  ;;  %v6927_v56 = vor.u32 %v8857_v54, %v6926_v53  ;;  %v6894_v0 = vld [vmem:[#allocation8 + $0x500] sm:$0xf] }
  0x8b   :  { %1076 = vmatpush.bf16.msrb.mxu0 %v5927_v10  ;;  %1102 = vmatpush.bf16.msrb.mxu2 %v5931_v12  ;;  %v5767_v10 = vor.u32 %v8564_v63, %v5766_v60  ;;  %v8809_v12 = vld [vmem:[#allocation8 + $0x3dc] sm:$0xf0] }
  0x8c   :  { %v6286_v60 = vld [vmem:[#allocation8 + $0x40] sm:$0xf] }
  0x8d   :  { %1089 = vmatpush.bf16.msrb.mxu1 %v6183_v11  ;;  %1115 = vmatpush.bf16.msrb.mxu3 %v6187_v16  ;;  %v6734_v11 = vld [vmem:[#allocation8 + $0x3c0] sm:$0xf]  ;;  %v6479_v16 = vor.u32 %v8745_v9, %v6478_v8 }
  0x8e   :  { %v6735_v21 = vor.u32 %v8809_v12, %v6734_v11  ;;  %v8849_v1 = vld [vmem:[#allocation8 + $0x51c] sm:$0xf0] }
  0x8f   :  { %1077 = vmatpush.bf16.msrb.mxu0 %v5895_v22  ;;  %1103 = vmatpush.bf16.msrb.mxu2 %v5899_v24  ;;  %v6702_v22 = vld [vmem:[#allocation8 + $0x380] sm:$0xf]  ;;  %v6991_v24 = vor.u32 %v8873_v18, %v6990_v17  ;;  %v6895_v5 = vor.u32 %v8849_v1, %v6894_v0 }
  0x90   :  { %v8761_v4 = vld [vmem:[#allocation8 + $0x25c] sm:$0xf0] }
  0x91   :  { %1090 = vmatpush.bf16.msrb.mxu1 %v6151_v23  ;;  %1116 = vmatpush.bf16.msrb.mxu3 %v6155_v28  ;;  %v8801_v23 = vld [vmem:[#allocation8 + $0x39c] sm:$0xf0] }
  0x92   :  { %v6414_v28 = vld [vmem:[#allocation8 + $0x140] sm:$0xf]  ;;  %v6703_v30 = vor.u32 %v8801_v23, %v6702_v22 }
  0x93   :  { %1078 = vmatpush.bf16.msrb.mxu0 %v5863_v34  ;;  %1104 = vmatpush.bf16.msrb.mxu2 %v5867_v36  ;;  %v6415_v34 = vor.u32 %v8729_v29, %v6414_v28  ;;  %v8721_v36 = vld [vmem:[#allocation8 + $0x11c] sm:$0xf0] }
  0x94   :  { %v8689_v8 = vld [vmem:[#allocation8 + $0x1c] sm:$0xf0] }
  0x95   :  { %1091 = vmatpush.bf16.msrb.mxu1 %v6119_v35  ;;  %1117 = vmatpush.bf16.msrb.mxu3 %v6123_v40  ;;  %v6382_v35 = vld [vmem:[#allocation8 + $0x100] sm:$0xf]  ;;  %v6255_v23 = vor.u32 %v8689_v8, %v6254_v6 }
  0x96   :  { %v7246_v40 = vld [vmem:[#allocation8 + $0x7c0] sm:$0xf] }
  0x97   :  { %1079 = vmatpush.bf16.msrb.mxu0 %v5831_v46  ;;  %1105 = vmatpush.bf16.msrb.mxu2 %v5835_v48  ;;  %v7247_v42 = vor.u32 %v8937_v41, %v7246_v40  ;;  %v8777_v46 = vld [vmem:[#allocation8 + $0x2dc] sm:$0xf0] }
  0x98   :  { %v6318_v48 = vld [vmem:[#allocation8 + $0x80] sm:$0xf]  ;;  %v6607_v50 = vor.u32 %v8777_v46, %v6606_v45 }
  0x99   :  { %1092 = vmatpush.bf16.msrb.mxu1 %v6087_v47  ;;  %1118 = vmatpush.bf16.msrb.mxu3 %v6091_v52  ;;  %v6351_v47 = vor.u32 %v8713_v44, %v6350_v43  ;;  %v8769_v52 = vld [vmem:[#allocation8 + $0x29c] sm:$0xf0] }
  0x9a   :  { %v6575_v63 = vor.u32 %v8769_v52, %v6574_v51  ;;  %v7502_v9 = vld [vmem:[#allocation8 + $0x9c0] sm:$0xf] }
  0x9b   :  { %1080 = vmatpush.bf16.msrb.mxu0 %v5799_v59  ;;  %1106 = vmatpush.bf16.msrb.mxu2 %v5803_v62  ;;  %v6319_v59 = vor.u32 %v8705_v49, %v6318_v48  ;;  %v8697_v62 = vld [vmem:[#allocation8 + $0x5c] sm:$0xf0] }
  0x9c   :  { %v6287_v7 = vor.u32 %v8697_v62, %v6286_v60  ;;  %v6510_v12 = vld [vmem:[#allocation8 + $0x200] sm:$0xf] }
  0x9d   :  { %1093 = vmatpush.bf16.msrb.mxu1 %v6055_v61  ;;  %1119 = vmatpush.bf16.msrb.mxu3 %v6059_v2  ;;  %v7215_v61 = vor.u32 %v8929_v58, %v7214_v57  ;;  %v6542_v2 = vld [vmem:[#allocation8 + $0x240] sm:$0xf] }
  0x9e   :  { %v6543_v11 = vor.u32 %v8761_v4, %v6542_v2  ;;  %v6862_v17 = vld [vmem:[#allocation8 + $0x4c0] sm:$0xf] }
  0x9f   :  { %1081 = vmatpush.bf16.msrb.mxu0 %v5767_v10  ;;  %1107 = vmatpush.bf16.msrb.mxu2 %v5771_v14  ;;  %v9001_v10 = vld [vmem:[#allocation8 + $0x9dc] sm:$0xf0] }
  0xa0   :  { %v8921_v14 = vld [vmem:[#allocation8 + $0x75c] sm:$0xf0] }
  0xa1   :  { %1094 = vmatpush.bf16.msrb.mxu1 %v6023_v13  ;;  %1120 = vmatpush.bf16.msrb.mxu3 %v6027_v15  ;;  %v7182_v13 = vld [vmem:[#allocation8 + $0x740] sm:$0xf] }
  0xa2   :  { %1082 = vmatmul.bf16.vlgmr.msrb.gmra.mxu0 %v9556_v55  ;;  %1108 = vmatmul.bf16.vlgmr.msrb.gmra.mxu2 %v9556_v55  ;;  %v6383_v55 = vor.u32 %v8721_v36, %v6382_v35  ;;  %v8753_v15 = vld [vmem:[#allocation8 + $0x21c] sm:$0xf0] }
  0xa3   :  { %4232 = vmatpush.bf16.msra.mxu0 %v6479_v16  ;;  %4258 = vmatpush.bf16.msra.mxu2 %v6991_v24  ;;  %v7183_v16 = vor.u32 %v8921_v14, %v7182_v13  ;;  %v8841_v18 = vld [vmem:[#allocation8 + $0x4dc] sm:$0xf0]  ;;  %v6511_v26 = vor.u32 %v8753_v15, %v6510_v12 }
  0xa4   :  { %1095 = vmatmul.bf16.vlgmr.msrb.gmra.mxu1 %v9560_v3  ;;  %1121 = vmatmul.bf16.vlgmr.msrb.gmra.mxu3 %v9560_v3  ;;  %v6639_v3 = vor.u32 %v8785_v39, %v6638_v38  ;;  %v7758_v19 = vld [vmem:[#allocation8 + $0xbc0] sm:$0xf] }
  0xa5   :  { %4245 = vmatpush.bf16.msra.mxu1 %v6735_v21  ;;  %4271 = vmatpush.bf16.msra.mxu3 %v7247_v42  ;;  %v9065_v20 = vld [vmem:[#allocation8 + $0xbdc] sm:$0xf0]  ;;  %v6863_v21 = vor.u32 %v8841_v18, %v6862_v17 }
  0xa6   :  { %v7150_v22 = vld [vmem:[#allocation8 + $0x700] sm:$0xf]  ;;  %v7759_v32 = vor.u32 %v9065_v20, %v7758_v19 }
  0xa7   :  { %4233 = vmatpush.bf16.msra.mxu0 %v6447_v25  ;;  %4259 = vmatpush.bf16.msra.mxu2 %v6959_v33  ;;  %v8913_v24 = vld [vmem:[#allocation8 + $0x71c] sm:$0xf0]  ;;  %v7503_v25 = vor.u32 %v9001_v10, %v7502_v9 }
  0xa8   :  { %v7151_v27 = vor.u32 %v8913_v24, %v7150_v22  ;;  %v6830_v28 = vld [vmem:[#allocation8 + $0x480] sm:$0xf] }
  0xa9   :  { %4246 = vmatpush.bf16.msra.mxu1 %v6703_v30  ;;  %4272 = vmatpush.bf16.msra.mxu3 %v7215_v61  ;;  %v8833_v29 = vld [vmem:[#allocation8 + $0x49c] sm:$0xf0] }
  0xaa   :  { %v7470_v30 = vld [vmem:[#allocation8 + $0x980] sm:$0xf]  ;;  %v6831_v33 = vor.u32 %v8833_v29, %v6830_v28 }
  0xab   :  { %4234 = vmatpush.bf16.msra.mxu0 %v6415_v34  ;;  %4260 = vmatpush.bf16.msra.mxu2 %v6927_v56  ;;  %v8993_v31 = vld [vmem:[#allocation8 + $0x99c] sm:$0xf0] }
  0xac   :  { %v7726_v34 = vld [vmem:[#allocation8 + $0xb80] sm:$0xf]  ;;  %v7471_v36 = vor.u32 %v8993_v31, %v7470_v30 }
  0xad   :  { %4247 = vmatpush.bf16.msra.mxu1 %v6671_v37  ;;  %4273 = vmatpush.bf16.msra.mxu3 %v7183_v16  ;;  %v9057_v35 = vld [vmem:[#allocation8 + $0xb9c] sm:$0xf0]  ;;  %v9576_v37 = vld [vmem:[#allocation7] sm:$0xff] }
  0xae   :  { %v7438_v38 = vld [vmem:[#allocation8 + $0x940] sm:$0xf]  ;;  %v7727_v40 = vor.u32 %v9057_v35, %v7726_v34  ;;  %v263_v4 = vperm.slane %v9576_v37, 1 }
  0xaf   :  { %4235 = vmatpush.bf16.msra.mxu0 %v6383_v55  ;;  %4261 = vmatpush.bf16.msra.mxu2 %v6895_v5  ;;  %v8985_v39 = vld [vmem:[#allocation8 + $0x95c] sm:$0xf0]  ;;  %v262_v55 = vperm.slane %v9576_v37, 0 }
  0xb0   :  { %v7694_v41 = vld [vmem:[#allocation8 + $0xb40] sm:$0xf]  ;;  %v7439_v43 = vor.u32 %v8985_v39, %v7438_v38 }
  0xb1   :  { %4248 = vmatpush.bf16.msra.mxu1 %v6639_v3  ;;  %4274 = vmatpush.bf16.msra.mxu3 %v7151_v27  ;;  %v9049_v42 = vld [vmem:[#allocation8 + $0xb5c] sm:$0xf0] }
  0xb2   :  { %v7406_v44 = vld [vmem:[#allocation8 + $0x900] sm:$0xf]  ;;  %v7695_v45 = vor.u32 %v9049_v42, %v7694_v41 }
  0xb3   :  { %4236 = vmatpush.bf16.msra.mxu0 %v6351_v47  ;;  %4262 = vmatpush.bf16.msra.mxu2 %v6863_v21  ;;  %v8977_v3 = vld [vmem:[#allocation8 + $0x91c] sm:$0xf0] }
  0xb4   :  { %v7662_v46 = vld [vmem:[#allocation8 + $0xb00] sm:$0xf]  ;;  %v7407_v52 = vor.u32 %v8977_v3, %v7406_v44  ;;  %v6480_v44 = vld [vmem:[#allocation8 + $0x1e0] sm:$0xf0] }
  0xb5   :  { %4249 = vmatpush.bf16.msra.mxu1 %v6607_v50  ;;  %v9041_v47 = vld [vmem:[#allocation8 + $0xb1c] sm:$0xf0] }
  0xb6   :  { %v7118_v48 = vld [vmem:[#allocation8 + $0x6c0] sm:$0xf] }
  0xb7   :  { %4237 = vmatpush.bf16.msra.mxu0 %v6319_v59  ;;  %4263 = vmatpush.bf16.msra.mxu2 %v6831_v33  ;;  %v8905_v49 = vld [vmem:[#allocation8 + $0x6dc] sm:$0xf0]  ;;  %v7663_v59 = vor.u32 %v9041_v47, %v7662_v46 }
  0xb8   :  { %v7119_v50 = vor.u32 %v8905_v49, %v7118_v48  ;;  %v6798_v53 = vld [vmem:[#allocation8 + $0x440] sm:$0xf] }
  0xb9   :  { %4250 = vmatpush.bf16.msra.mxu1 %v6575_v63  ;;  %v8825_v54 = vld [vmem:[#allocation8 + $0x45c] sm:$0xf0] }
  0xba   :  { %v7374_v57 = vld [vmem:[#allocation8 + $0x8c0] sm:$0xf]  ;;  %4275 = vmatpush.bf16.msra.mxu3 %v7119_v50  ;;  %v6799_v60 = vor.u32 %v8825_v54, %v6798_v53  ;;  %v8805_v54 = vld [vmem:[#allocation8 + $0x3c4] sm:$0xf] }
  0xbb   :  { %4238 = vmatpush.bf16.msra.mxu0 %v6287_v7  ;;  %v8969_v58 = vld [vmem:[#allocation8 + $0x8dc] sm:$0xf0] }
  0xbc   :  { %v7630_v61 = vld [vmem:[#allocation8 + $0xac0] sm:$0xf]  ;;  %4264 = vmatpush.bf16.msra.mxu2 %v6799_v60  ;;  %v7375_v5 = vor.u32 %v8969_v58, %v7374_v57 }
  0xbd   :  { %4251 = vmatpush.bf16.msra.mxu1 %v6543_v11  ;;  %v9033_v62 = vld [vmem:[#allocation8 + $0xadc] sm:$0xf0] }
  0xbe   :  { %v7086_v63 = vld [vmem:[#allocation8 + $0x680] sm:$0xf]  ;;  %v7631_v11 = vor.u32 %v9033_v62, %v7630_v61 }
  0xbf   :  { %4239 = vmatpush.bf16.msra.mxu0 %v6255_v23  ;;  %v927_v51 = vpop.f32.mrf.mxu0  ;;  %v8897_v0 = vld [vmem:[#allocation8 + $0x69c] sm:$0xf0] }
  0xc0   :  { %v928_v56 = vadd.f32 %v927_v51, %v262_v55  ;;  %v7087_v1 = vor.u32 %v8897_v0, %v7086_v63  ;;  %v6766_v6 = vld [vmem:[#allocation8 + $0x400] sm:$0xf] }
  0xc1   :  { %4252 = vmatpush.bf16.msra.mxu1 %v6511_v26  ;;  %v940_v2 = vpop.f32.mrf.mxu1  ;;  %v8817_v7 = vld [vmem:[#allocation8 + $0x41c] sm:$0xf0] }
  0xc2   :  { %v941_v8 = vadd.f32 %v940_v2, %v928_v56  ;;  %v7342_v9 = vld [vmem:[#allocation8 + $0x880] sm:$0xf]  ;;  %4276 = vmatpush.bf16.msra.mxu3 %v7087_v1  ;;  %v6767_v12 = vor.u32 %v8817_v7, %v6766_v6  ;;  %v6736_v56 = vld [vmem:[#allocation8 + $0x3e0] sm:$0xf0] }
  0xc3   :  { %4284 = vmatpush.bf16.msrb.mxu0 %v7503_v25  ;;  %v8961_v10 = vld [vmem:[#allocation8 + $0x89c] sm:$0xf0]  ;;  %v6448_v6 = vld [vmem:[#allocation8 + $0x1a0] sm:$0xf0]  ;;  %v6739_v7 = vor.u32 %v8805_v54, %v6736_v56 }
  0xc4   :  { %v7598_v13 = vld [vmem:[#allocation8 + $0xa80] sm:$0xf]  ;;  %v1126_v17 = vmax.f32 %v941_v8, 0.0  ;;  %4265 = vmatpush.bf16.msra.mxu2 %v6767_v12  ;;  %v7343_v23 = vor.u32 %v8961_v10, %v7342_v9  ;;  %v8797_v10 = vld [vmem:[#allocation8 + $0x384] sm:$0xf] }
  0xc5   :  { %4297 = vmatpush.bf16.msrb.mxu1 %v7759_v32  ;;  %v9025_v14 = vld [vmem:[#allocation8 + $0xa9c] sm:$0xf0]  ;;  %v953_v18 = vpop.f32.mrf.mxu2  ;;  %v8701_v56 = vld [vmem:[#allocation8 + $0x84] sm:$0xf] }
  0xc6   :  { %v7054_v15 = vld [vmem:[#allocation8 + $0x640] sm:$0xf]  ;;  %v954_v21 = vadd.f32 %v953_v18, %v263_v4  ;;  %v9580_v25 = vpack.c.bf16 %v1126_v17, %v1126_v17  ;;  %v7599_v28 = vor.u32 %v9025_v14, %v7598_v13 }
  0xc7   :  { %4285 = vmatpush.bf16.msrb.mxu0 %v7471_v36  ;;  %v8889_v16 = vld [vmem:[#allocation8 + $0x65c] sm:$0xf0]  ;;  %v929_v22 = vpop.f32.mrf.mxu0  ;;  %v966_v34 = vpop.f32.mrf.mxu3 }
  0xc8   :  { %v7055_v19 = vor.u32 %v8889_v16, %v7054_v15  ;;  %v8014_v20 = vld [vmem:[#allocation8 + $0xdc0] sm:$0xf]  ;;  %4240 = vmatmul.bf16.vlgmr.msra.gmra.mxu0 %v9580_v25 }
  0xc9   :  { %4298 = vmatpush.bf16.msrb.mxu1 %v7727_v40  ;;  %v9129_v24 = vld [vmem:[#allocation8 + $0xddc] sm:$0xf0]  ;;  %v967_v40 = vadd.f32 %v966_v34, %v954_v21  ;;  %v942_v41 = vpop.f32.mrf.mxu1  ;;  %v6416_v21 = vld [vmem:[#allocation8 + $0x160] sm:$0xf0] }
  0xca   :  { %v7310_v26 = vld [vmem:[#allocation8 + $0x840] sm:$0xf]  ;;  %4277 = vmatpush.bf16.msra.mxu3 %v7055_v19  ;;  %v8015_v29 = vor.u32 %v9129_v24, %v8014_v20  ;;  %v8725_v20 = vld [vmem:[#allocation8 + $0x144] sm:$0xf] }
  0xcb   :  { %4286 = vmatpush.bf16.msrb.mxu0 %v7439_v43  ;;  %v8953_v27 = vld [vmem:[#allocation8 + $0x85c] sm:$0xf0]  ;;  %v8741_v43 = vld [vmem:[#allocation8 + $0x1c4] sm:$0xf]  ;;  %v1127_v49 = vmax.f32 %v967_v40, 0.0 }
  0xcc   :  { %v7566_v30 = vld [vmem:[#allocation8 + $0xa40] sm:$0xf]  ;;  %4310 = vmatpush.bf16.msrb.mxu2 %v8015_v29  ;;  %v7311_v42 = vor.u32 %v8953_v27, %v7310_v26  ;;  %v6483_v63 = vor.u32 %v8741_v43, %v6480_v44  ;;  %v6672_v24 = vld [vmem:[#allocation8 + $0x360] sm:$0xf0]  ;;  %v6419_v29 = vor.u32 %v8725_v20, %v6416_v21 }
  0xcd   :  { %4299 = vmatpush.bf16.msrb.mxu1 %v7695_v45  ;;  %v9017_v31 = vld [vmem:[#allocation8 + $0xa5c] sm:$0xf0]  ;;  %v955_v53 = vpop.f32.mrf.mxu2  ;;  %v9583_v58 = vpack.c.bf16 %v1127_v49, %v1127_v49  ;;  %v6640_v34 = vld [vmem:[#allocation8 + $0x320] sm:$0xf0] }
  0xce   :  { %v7022_v32 = vld [vmem:[#allocation8 + $0x600] sm:$0xf]  ;;  %v7567_v45 = vor.u32 %v9017_v31, %v7566_v30  ;;  %v8717_v30 = vld [vmem:[#allocation8 + $0x104] sm:$0xf] }
  0xcf   :  { %4287 = vmatpush.bf16.msrb.mxu0 %v7407_v52  ;;  %v8881_v33 = vld [vmem:[#allocation8 + $0x61c] sm:$0xf0]  ;;  %4253 = vmatmul.bf16.vlgmr.msra.gmra.mxu1 %v9583_v58  ;;  %v968_v9 = vpop.f32.mrf.mxu3  ;;  %v6384_v31 = vld [vmem:[#allocation8 + $0x120] sm:$0xf0] }
  0xd0   :  { %v7278_v35 = vld [vmem:[#allocation8 + $0x800] sm:$0xf]  ;;  %v7023_v36 = vor.u32 %v8881_v33, %v7022_v32  ;;  %v8781_v33 = vld [vmem:[#allocation8 + $0x304] sm:$0xf] }
  0xd1   :  { %4300 = vmatpush.bf16.msrb.mxu1 %v7663_v59  ;;  %v7982_v38 = vld [vmem:[#allocation8 + $0xd80] sm:$0xf]  ;;  %v6352_v43 = vld [vmem:[#allocation8 + $0xe0] sm:$0xf0]  ;;  %v6643_v44 = vor.u32 %v8781_v33, %v6640_v34 }
  0xd2   :  { %v9121_v39 = vld [vmem:[#allocation8 + $0xd9c] sm:$0xf0]  ;;  %4278 = vmatpush.bf16.msra.mxu3 %v7023_v36  ;;  %v6256_v34 = vld [vmem:[#allocation8 + $0x20] sm:$0xf0] }
  0xd3   :  { %4288 = vmatpush.bf16.msrb.mxu0 %v7375_v5  ;;  %v8945_v55 = vld [vmem:[#allocation8 + $0x81c] sm:$0xf0]  ;;  %v7983_v3 = vor.u32 %v9121_v39, %v7982_v38  ;;  %v8733_v5 = vld [vmem:[#allocation8 + $0x184] sm:$0xf]  ;;  %v6387_v39 = vor.u32 %v8717_v30, %v6384_v31 }
  0xd4   :  { %v7534_v46 = vld [vmem:[#allocation8 + $0xa00] sm:$0xf]  ;;  %v7279_v59 = vor.u32 %v8945_v55, %v7278_v35  ;;  %v6451_v17 = vor.u32 %v8733_v5, %v6448_v6  ;;  %v8709_v55 = vld [vmem:[#allocation8 + $0xc4] sm:$0xf] }
  0xd5   :  { %4301 = vmatpush.bf16.msrb.mxu1 %v7631_v11  ;;  %v8270_v47 = vld [vmem:[#allocation8 + $0xfc0] sm:$0xf]  ;;  %4311 = vmatpush.bf16.msrb.mxu2 %v7983_v3  ;;  %v6704_v11 = vld [vmem:[#allocation8 + $0x3a0] sm:$0xf0]  ;;  %v6355_v54 = vor.u32 %v8709_v55, %v6352_v43 }
  0xd6   :  { %v9193_v48 = vld [vmem:[#allocation8 + $0xfdc] sm:$0xf0]  ;;  %v6707_v22 = vor.u32 %v8797_v10, %v6704_v11  ;;  %v8869_v6 = vld [vmem:[#allocation8 + $0x5c4] sm:$0xf] }
  0xd7   :  { %4289 = vmatpush.bf16.msrb.mxu0 %v7343_v23  ;;  %v9009_v50 = vld [vmem:[#allocation8 + $0xa1c] sm:$0xf0]  ;;  %v8271_v51 = vor.u32 %v9193_v48, %v8270_v47  ;;  %v8789_v23 = vld [vmem:[#allocation8 + $0x344] sm:$0xf] }
  0xd8   :  { %v7950_v52 = vld [vmem:[#allocation8 + $0xd40] sm:$0xf]  ;;  %v7535_v0 = vor.u32 %v9009_v50, %v7534_v46  ;;  %v6675_v32 = vor.u32 %v8789_v23, %v6672_v24  ;;  %v6608_v48 = vld [vmem:[#allocation8 + $0x2e0] sm:$0xf0] }
  0xd9   :  { %4302 = vmatpush.bf16.msrb.mxu1 %v7599_v28  ;;  %v9113_v57 = vld [vmem:[#allocation8 + $0xd5c] sm:$0xf0]  ;;  %4323 = vmatpush.bf16.msrb.mxu3 %v8271_v51  ;;  %v264_v28 = vperm.slane %v9576_v37, 2  ;;  %v265_v51 = vperm.slane %v9576_v37, 3  ;;  %v8693_v10 = vld [vmem:[#allocation8 + $0x44] sm:$0xf] }
  0xda   :  { %v7951_v60 = vor.u32 %v9113_v57, %v7950_v52  ;;  %v8238_v61 = vld [vmem:[#allocation8 + $0xf80] sm:$0xf]  ;;  %v6992_v11 = vld [vmem:[#allocation8 + $0x5e0] sm:$0xf0] }
  0xdb   :  { %4290 = vmatpush.bf16.msrb.mxu0 %v7311_v42  ;;  %v9185_v62 = vld [vmem:[#allocation8 + $0xf9c] sm:$0xf0]  ;;  %v6544_v23 = vld [vmem:[#allocation8 + $0x260] sm:$0xf0] }
  0xdc   :  { %v8239_v1 = vor.u32 %v9185_v62, %v8238_v61  ;;  %v7918_v2 = vld [vmem:[#allocation8 + $0xd00] sm:$0xf]  ;;  %4312 = vmatpush.bf16.msrb.mxu2 %v7951_v60  ;;  %v6320_v60 = vld [vmem:[#allocation8 + $0xa0] sm:$0xf0] }
  0xdd   :  { %4303 = vmatpush.bf16.msrb.mxu1 %v7567_v45  ;;  %v9105_v4 = vld [vmem:[#allocation8 + $0xd1c] sm:$0xf0]  ;;  %v8773_v45 = vld [vmem:[#allocation8 + $0x2c4] sm:$0xf]  ;;  %v6323_v9 = vor.u32 %v8701_v56, %v6320_v60 }
  0xde   :  { %v8206_v8 = vld [vmem:[#allocation8 + $0xf40] sm:$0xf]  ;;  %v7919_v12 = vor.u32 %v9105_v4, %v7918_v2  ;;  %4324 = vmatpush.bf16.msrb.mxu3 %v8239_v1  ;;  %v6611_v61 = vor.u32 %v8773_v45, %v6608_v48  ;;  %v8853_v43 = vld [vmem:[#allocation8 + $0x544] sm:$0xf] }
  0xdf   :  { %v9177_v13 = vld [vmem:[#allocation8 + $0xf5c] sm:$0xf0]  ;;  %4291 = vmatpush.bf16.msrb.mxu0 %v7279_v59  ;;  %v979_v42 = vpop.f32.mrf.mxu0  ;;  %v8917_v56 = vld [vmem:[#allocation8 + $0x744] sm:$0xf] }
  0xe0   :  { %v8207_v14 = vor.u32 %v9177_v13, %v8206_v8  ;;  %v7886_v15 = vld [vmem:[#allocation8 + $0xcc0] sm:$0xf]  ;;  %4313 = vmatpush.bf16.msrb.mxu2 %v7919_v12  ;;  %v980_v46 = vadd.f32 %v979_v42, %v264_v28  ;;  %v8837_v60 = vld [vmem:[#allocation8 + $0x4c4] sm:$0xf] }
  0xe1   :  { %v9097_v16 = vld [vmem:[#allocation8 + $0xcdc] sm:$0xf0]  ;;  %4304 = vmatpush.bf16.msrb.mxu1 %v7535_v0  ;;  %v992_v47 = vpop.f32.mrf.mxu1  ;;  %v6576_v0 = vld [vmem:[#allocation8 + $0x2a0] sm:$0xf0] }
  0xe2   :  { %v8174_v18 = vld [vmem:[#allocation8 + $0xf00] sm:$0xf]  ;;  %v7887_v26 = vor.u32 %v9097_v16, %v7886_v15  ;;  %4325 = vmatpush.bf16.msrb.mxu3 %v8207_v14  ;;  %v993_v53 = vadd.f32 %v992_v47, %v980_v46  ;;  %v6288_v15 = vld [vmem:[#allocation8 + $0x60] sm:$0xf0] }
  0xe3   :  { %4336 = vmatpush.bf16.msra.mxu0 %v6483_v63  ;;  %v9169_v19 = vld [vmem:[#allocation8 + $0xf1c] sm:$0xf0]  ;;  %v8765_v63 = vld [vmem:[#allocation8 + $0x284] sm:$0xf]  ;;  %v6291_v28 = vor.u32 %v8693_v10, %v6288_v15 }
  0xe4   :  { %v8175_v27 = vor.u32 %v9169_v19, %v8174_v18  ;;  %4314 = vmatpush.bf16.msrb.mxu2 %v7887_v26  ;;  %v7854_v35 = vld [vmem:[#allocation8 + $0xc80] sm:$0xf]  ;;  %v1128_v1 = vmax.f32 %v993_v53, 0.0  ;;  %v6579_v16 = vor.u32 %v8765_v63, %v6576_v0  ;;  %v8861_v26 = vld [vmem:[#allocation8 + $0x584] sm:$0xf] }
  0xe5   :  { %4349 = vmatpush.bf16.msra.mxu1 %v6739_v7  ;;  %v9089_v36 = vld [vmem:[#allocation8 + $0xc9c] sm:$0xf0]  ;;  %v1005_v8 = vpop.f32.mrf.mxu2  ;;  %v6896_v53 = vld [vmem:[#allocation8 + $0x520] sm:$0xf0] }
  0xe6   :  { %4326 = vmatpush.bf16.msrb.mxu3 %v8175_v27  ;;  %v7855_v38 = vor.u32 %v9089_v36, %v7854_v35  ;;  %v8142_v40 = vld [vmem:[#allocation8 + $0xec0] sm:$0xf]  ;;  %v9588_v7 = vpack.c.bf16 %v1128_v1, %v1128_v1  ;;  %v1006_v12 = vadd.f32 %v1005_v8, %v265_v51  ;;  %v6960_v27 = vld [vmem:[#allocation8 + $0x5a0] sm:$0xf0] }
  0xe7   :  { %4337 = vmatpush.bf16.msra.mxu0 %v6451_v17  ;;  %v9161_v41 = vld [vmem:[#allocation8 + $0xedc] sm:$0xf0]  ;;  %v1018_v13 = vpop.f32.mrf.mxu3  ;;  %v981_v14 = vpop.f32.mrf.mxu0  ;;  %v6995_v17 = vor.u32 %v8869_v6, %v6992_v11  ;;  %v6963_v30 = vor.u32 %v8861_v26, %v6960_v27  ;;  %v8749_v36 = vld [vmem:[#allocation8 + $0x204] sm:$0xf] }
  0xe8   :  { %v8143_v3 = vor.u32 %v9161_v41, %v8142_v40  ;;  %4315 = vmatpush.bf16.msrb.mxu2 %v7855_v38  ;;  %v7822_v49 = vld [vmem:[#allocation8 + $0xc40] sm:$0xf]  ;;  %v1019_v24 = vadd.f32 %v1018_v13, %v1006_v12  ;;  %v8933_v40 = vld [vmem:[#allocation8 + $0x7c4] sm:$0xf] }
  0xe9   :  { %4350 = vmatpush.bf16.msra.mxu1 %v6707_v22  ;;  %v9081_v50 = vld [vmem:[#allocation8 + $0xc5c] sm:$0xf0]  ;;  %4266 = vmatmul.bf16.vlgmr.msra.gmra.mxu2 %v9588_v7  ;;  %v994_v20 = vpop.f32.mrf.mxu1  ;;  %v8757_v22 = vld [vmem:[#allocation8 + $0x244] sm:$0xf] }
  0xea   :  { %4327 = vmatpush.bf16.msrb.mxu3 %v8143_v3  ;;  %v7823_v52 = vor.u32 %v9081_v50, %v7822_v49  ;;  %v8110_v57 = vld [vmem:[#allocation8 + $0xe80] sm:$0xf]  ;;  %v1129_v33 = vmax.f32 %v1019_v24, 0.0  ;;  %v6547_v35 = vor.u32 %v8757_v22, %v6544_v23  ;;  %v7248_v41 = vld [vmem:[#allocation8 + $0x7e0] sm:$0xf0]  ;;  %v267_v22 = vperm.slane %v9576_v37, 5 }
  0xeb   :  { %4338 = vmatpush.bf16.msra.mxu0 %v6419_v29  ;;  %v9153_v59 = vld [vmem:[#allocation8 + $0xe9c] sm:$0xf0]  ;;  %v8685_v29 = vld [vmem:[#allocation8 + $0x4] sm:$0xf]  ;;  %v7251_v55 = vor.u32 %v8933_v40, %v7248_v41 }
  0xec   :  { %v8111_v62 = vor.u32 %v9153_v59, %v8110_v57  ;;  %4316 = vmatpush.bf16.msrb.mxu2 %v7823_v52  ;;  %v7790_v2 = vld [vmem:[#allocation8 + $0xc00] sm:$0xf]  ;;  %v9591_v42 = vpack.c.bf16 %v1129_v33, %v1129_v33  ;;  %v6259_v45 = vor.u32 %v8685_v29, %v6256_v34  ;;  %v8925_v49 = vld [vmem:[#allocation8 + $0x784] sm:$0xf] }
  0xed   :  { %4351 = vmatpush.bf16.msra.mxu1 %v6675_v32  ;;  %v9073_v4 = vld [vmem:[#allocation8 + $0xc1c] sm:$0xf0]  ;;  %v1007_v3 = vpop.f32.mrf.mxu2  ;;  %v7216_v50 = vld [vmem:[#allocation8 + $0x7a0] sm:$0xf0] }
  0xee   :  { %4328 = vmatpush.bf16.msrb.mxu3 %v8111_v62  ;;  %v7791_v5 = vor.u32 %v9073_v4, %v7790_v2  ;;  %v8078_v18 = vld [vmem:[#allocation8 + $0xe40] sm:$0xf]  ;;  %v7219_v51 = vor.u32 %v8925_v49, %v7216_v50  ;;  %v8845_v52 = vld [vmem:[#allocation8 + $0x504] sm:$0xf] }
  0xef   :  { %4339 = vmatpush.bf16.msra.mxu0 %v6387_v39  ;;  %v9145_v19 = vld [vmem:[#allocation8 + $0xe5c] sm:$0xf0]  ;;  %v6512_v39 = vld [vmem:[#allocation8 + $0x220] sm:$0xf0]  ;;  %4279 = vmatmul.bf16.vlgmr.msra.gmra.mxu3 %v9591_v42  ;;  %v1020_v47 = vpop.f32.mrf.mxu3 }
  0xf0   :  { %v8079_v21 = vor.u32 %v9145_v19, %v8078_v18  ;;  %4317 = vmatpush.bf16.msrb.mxu2 %v7791_v5  ;;  %v8046_v31 = vld [vmem:[#allocation8 + $0xe00] sm:$0xf]  ;;  %v6515_v48 = vor.u32 %v8749_v36, %v6512_v39  ;;  %v7184_v57 = vld [vmem:[#allocation8 + $0x760] sm:$0xf0]  ;;  %v266_v5 = vperm.slane %v9576_v37, 4 }
  0xf1   :  { %4352 = vmatpush.bf16.msra.mxu1 %v6643_v44  ;;  %v9137_v32 = vld [vmem:[#allocation8 + $0xe1c] sm:$0xf0]  ;;  %v6928_v44 = vld [vmem:[#allocation8 + $0x560] sm:$0xf0]  ;;  %v7187_v59 = vor.u32 %v8917_v56, %v7184_v57 }
  0xf2   :  { %4329 = vmatpush.bf16.msrb.mxu3 %v8079_v21  ;;  %v8047_v38 = vor.u32 %v9137_v32, %v8046_v31  ;;  %v6931_v46 = vor.u32 %v8853_v43, %v6928_v44  ;;  %v8909_v63 = vld [vmem:[#allocation8 + $0x704] sm:$0xf] }
  0xf3   :  { %4340 = vmatpush.bf16.msra.mxu0 %v6355_v54  ;;  %v6899_v54 = vor.u32 %v8845_v52, %v6896_v53  ;;  %v7152_v0 = vld [vmem:[#allocation8 + $0x720] sm:$0xf0] }
  0xf4   :  { %4362 = vmatpush.bf16.msra.mxu2 %v6995_v17  ;;  %v7155_v1 = vor.u32 %v8909_v63, %v7152_v0  ;;  %v8829_v2 = vld [vmem:[#allocation8 + $0x484] sm:$0xf] }
  0xf5   :  { %4353 = vmatpush.bf16.msra.mxu1 %v6611_v61  ;;  %v6864_v61 = vld [vmem:[#allocation8 + $0x4e0] sm:$0xf0] }
  0xf6   :  { %4330 = vmatpush.bf16.msrb.mxu3 %v8047_v38  ;;  %v6867_v62 = vor.u32 %v8837_v60, %v6864_v61  ;;  %v6832_v4 = vld [vmem:[#allocation8 + $0x4a0] sm:$0xf0] }
  0xf7   :  { %4341 = vmatpush.bf16.msra.mxu0 %v6323_v9  ;;  %v6835_v6 = vor.u32 %v8829_v2, %v6832_v4  ;;  %v8901_v8 = vld [vmem:[#allocation8 + $0x6c4] sm:$0xf] }
  0xf8   :  { %4363 = vmatpush.bf16.msra.mxu2 %v6963_v30  ;;  %v7120_v9 = vld [vmem:[#allocation8 + $0x6e0] sm:$0xf0] }
  0xf9   :  { %4354 = vmatpush.bf16.msra.mxu1 %v6579_v16  ;;  %v7123_v11 = vor.u32 %v8901_v8, %v7120_v9  ;;  %v8821_v12 = vld [vmem:[#allocation8 + $0x444] sm:$0xf] }
  0xfa   :  { %4375 = vmatpush.bf16.msra.mxu3 %v7251_v55  ;;  %v6800_v13 = vld [vmem:[#allocation8 + $0x460] sm:$0xf0] }
  0xfb   :  { %4342 = vmatpush.bf16.msra.mxu0 %v6291_v28  ;;  %v6803_v16 = vor.u32 %v8821_v12, %v6800_v13  ;;  %v8893_v17 = vld [vmem:[#allocation8 + $0x684] sm:$0xf]  ;;  %v268_v13 = vperm.slane %v9576_v37, 6 }
  0xfc   :  { %4364 = vmatpush.bf16.msra.mxu2 %v6931_v46  ;;  %v7088_v18 = vld [vmem:[#allocation8 + $0x6a0] sm:$0xf0] }
  0xfd   :  { %4355 = vmatpush.bf16.msra.mxu1 %v6547_v35  ;;  %v8997_v20 = vld [vmem:[#allocation8 + $0x9c4] sm:$0xf]  ;;  %v7091_v23 = vor.u32 %v8893_v17, %v7088_v18 }
  0xfe   :  { %4376 = vmatpush.bf16.msra.mxu3 %v7219_v51  ;;  %v7504_v21 = vld [vmem:[#allocation8 + $0x9e0] sm:$0xf0] }
  0xff   :  { %4343 = vmatpush.bf16.msra.mxu0 %v6259_v45  ;;  %v1031_v10 = vpop.f32.mrf.mxu0  ;;  %v8813_v24 = vld [vmem:[#allocation8 + $0x404] sm:$0xf]  ;;  %v7507_v29 = vor.u32 %v8997_v20, %v7504_v21 }
 0x100   :  { %4365 = vmatpush.bf16.msra.mxu2 %v6899_v54  ;;  %v1032_v14 = vadd.f32 %v1031_v10, %v266_v5  ;;  %v6768_v26 = vld [vmem:[#allocation8 + $0x420] sm:$0xf0] }
 0x101   :  { %4356 = vmatpush.bf16.msra.mxu1 %v6515_v48  ;;  %v1044_v15 = vpop.f32.mrf.mxu1  ;;  %v6771_v28 = vor.u32 %v8813_v24, %v6768_v26  ;;  %v8989_v30 = vld [vmem:[#allocation8 + $0x984] sm:$0xf] }
 0x102   :  { %4377 = vmatpush.bf16.msra.mxu3 %v7187_v59  ;;  %v1045_v19 = vadd.f32 %v1044_v15, %v1032_v14  ;;  %v7472_v33 = vld [vmem:[#allocation8 + $0x9a0] sm:$0xf0] }
 0x103   :  { %v8885_v34 = vld [vmem:[#allocation8 + $0x644] sm:$0xf]  ;;  %v7475_v44 = vor.u32 %v8989_v30, %v7472_v33  ;;  %v6486_v33 = vld [vmem:[#allocation8 + $0x1c8] sm:$0xf] }
 0x104   :  { %4366 = vmatpush.bf16.msra.mxu2 %v6867_v62  ;;  %v1130_v27 = vmax.f32 %v1045_v19, 0.0  ;;  %v7056_v35 = vld [vmem:[#allocation8 + $0x660] sm:$0xf0] }
 0x105   :  { %v1057_v32 = vpop.f32.mrf.mxu2  ;;  %v7059_v40 = vor.u32 %v8885_v34, %v7056_v35  ;;  %v9061_v41 = vld [vmem:[#allocation8 + $0xbc4] sm:$0xf]  ;;  %v8746_v34 = vld [vmem:[#allocation8 + $0x1e4] sm:$0xf0]  ;;  %v269_v35 = vperm.slane %v9576_v37, 7 }
 0x106   :  { %4378 = vmatpush.bf16.msra.mxu3 %v7155_v1  ;;  %v9596_v31 = vpack.c.bf16 %v1130_v27, %v1130_v27  ;;  %v1058_v36 = vadd.f32 %v1057_v32, %v267_v22  ;;  %v7760_v3 = vld [vmem:[#allocation8 + $0xbe0] sm:$0xf0] }
 0x107   :  { %v1070_v38 = vpop.f32.mrf.mxu3  ;;  %v1033_v39 = vpop.f32.mrf.mxu0  ;;  %v8877_v45 = vld [vmem:[#allocation8 + $0x604] sm:$0xf]  ;;  %v7763_v51 = vor.u32 %v9061_v41, %v7760_v3 }
 0x108   :  { %4367 = vmatpush.bf16.msra.mxu2 %v6835_v6  ;;  %4292 = vmatmul.bf16.vlgmr.msrb.gmra.mxu0 %v9596_v31  ;;  %v1071_v43 = vadd.f32 %v1070_v38, %v1058_v36  ;;  %v7024_v46 = vld [vmem:[#allocation8 + $0x620] sm:$0xf0] }
 0x109   :  { %v1046_v55 = vpop.f32.mrf.mxu1  ;;  %4388 = vmatpush.bf16.msrb.mxu0 %v7507_v29  ;;  %v8981_v47 = vld [vmem:[#allocation8 + $0x944] sm:$0xf]  ;;  %v7027_v50 = vor.u32 %v8877_v45, %v7024_v46 }
 0x10a   :  { %4379 = vmatpush.bf16.msra.mxu3 %v7123_v11  ;;  %v7440_v48 = vld [vmem:[#allocation8 + $0x960] sm:$0xf0]  ;;  %v1131_v49 = vmax.f32 %v1071_v43, 0.0  ;;  %v6487_v43 = vor.u32 %v8746_v34, %v6486_v33  ;;  %v8794_v33 = vld [vmem:[#allocation8 + $0x364] sm:$0xf0] }
 0x10b   :  { %v7443_v53 = vor.u32 %v8981_v47, %v7440_v48  ;;  %v9053_v54 = vld [vmem:[#allocation8 + $0xb84] sm:$0xf]  ;;  %v6454_v47 = vld [vmem:[#allocation8 + $0x188] sm:$0xf] }
 0x10c   :  { %4368 = vmatpush.bf16.msra.mxu2 %v6803_v16  ;;  %v9599_v52 = vpack.c.bf16 %v1131_v49, %v1131_v49  ;;  %v7728_v56 = vld [vmem:[#allocation8 + $0xba0] sm:$0xf0]  ;;  %v8738_v48 = vld [vmem:[#allocation8 + $0x1a4] sm:$0xf0] }
 0x10d   :  { %4389 = vmatpush.bf16.msrb.mxu0 %v7475_v44  ;;  %v1059_v57 = vpop.f32.mrf.mxu2  ;;  %v8973_v59 = vld [vmem:[#allocation8 + $0x904] sm:$0xf]  ;;  %v7731_v62 = vor.u32 %v9053_v54, %v7728_v56  ;;  %v6358_v34 = vld [vmem:[#allocation8 + $0xc8] sm:$0xf] }
 0x10e   :  { %4380 = vmatpush.bf16.msra.mxu3 %v7091_v23  ;;  %v7408_v60 = vld [vmem:[#allocation8 + $0x920] sm:$0xf0]  ;;  %4305 = vmatmul.bf16.vlgmr.msrb.gmra.mxu1 %v9599_v52 }
 0x10f   :  { %v1072_v61 = vpop.f32.mrf.mxu3  ;;  %4401 = vmatpush.bf16.msrb.mxu1 %v7763_v51  ;;  %v7411_v63 = vor.u32 %v8973_v59, %v7408_v60  ;;  %v9045_v0 = vld [vmem:[#allocation8 + $0xb44] sm:$0xf] }
 0x110   :  { %4369 = vmatpush.bf16.msra.mxu2 %v6771_v28  ;;  %v7696_v1 = vld [vmem:[#allocation8 + $0xb60] sm:$0xf0] }
 0x111   :  { %4390 = vmatpush.bf16.msrb.mxu0 %v7443_v53  ;;  %v8965_v2 = vld [vmem:[#allocation8 + $0x8c4] sm:$0xf]  ;;  %v7699_v5 = vor.u32 %v9045_v0, %v7696_v1  ;;  %v8810_v0 = vld [vmem:[#allocation8 + $0x3e4] sm:$0xf0] }
 0x112   :  { %4381 = vmatpush.bf16.msra.mxu3 %v7059_v40  ;;  %v7376_v4 = vld [vmem:[#allocation8 + $0x8e0] sm:$0xf0] }
 0x113   :  { %4402 = vmatpush.bf16.msrb.mxu1 %v7731_v62  ;;  %v7379_v6 = vor.u32 %v8965_v2, %v7376_v4  ;;  %v9037_v8 = vld [vmem:[#allocation8 + $0xb04] sm:$0xf]  ;;  %v6455_v62 = vor.u32 %v8738_v48, %v6454_v47  ;;  %v6422_v4 = vld [vmem:[#allocation8 + $0x148] sm:$0xf] }
 0x114   :  { %v7664_v9 = vld [vmem:[#allocation8 + $0xb20] sm:$0xf0]  ;;  %v6326_v47 = vld [vmem:[#allocation8 + $0x88] sm:$0xf] }
 0x115   :  { %4391 = vmatpush.bf16.msrb.mxu0 %v7411_v63  ;;  %v8957_v10 = vld [vmem:[#allocation8 + $0x884] sm:$0xf]  ;;  %v7667_v12 = vor.u32 %v9037_v8, %v7664_v9  ;;  %v6742_v63 = vld [vmem:[#allocation8 + $0x3c8] sm:$0xf] }
 0x116   :  { %4382 = vmatpush.bf16.msra.mxu3 %v7027_v50  ;;  %v7344_v11 = vld [vmem:[#allocation8 + $0x8a0] sm:$0xf0]  ;;  %v8706_v48 = vld [vmem:[#allocation8 + $0xa4] sm:$0xf0] }
 0x117   :  { %4403 = vmatpush.bf16.msrb.mxu1 %v7699_v5  ;;  %v7347_v14 = vor.u32 %v8957_v10, %v7344_v11  ;;  %v9029_v15 = vld [vmem:[#allocation8 + $0xac4] sm:$0xf]  ;;  %v8730_v5 = vld [vmem:[#allocation8 + $0x164] sm:$0xf0]  ;;  %v6743_v10 = vor.u32 %v8810_v0, %v6742_v63 }
 0x118   :  { %4344 = vmatmul.bf16.vlgmr.msra.gmra.mxu0 %v9580_v25  ;;  %v7632_v16 = vld [vmem:[#allocation8 + $0xae0] sm:$0xf0] }
 0x119   :  { %4392 = vmatpush.bf16.msrb.mxu0 %v7379_v6  ;;  %v8949_v17 = vld [vmem:[#allocation8 + $0x844] sm:$0xf]  ;;  %v7635_v20 = vor.u32 %v9029_v15, %v7632_v16  ;;  %v6423_v15 = vor.u32 %v8730_v5, %v6422_v4  ;;  %v6710_v16 = vld [vmem:[#allocation8 + $0x388] sm:$0xf] }
 0x11a   :  { %v7312_v18 = vld [vmem:[#allocation8 + $0x860] sm:$0xf0] }
 0x11b   :  { %4404 = vmatpush.bf16.msrb.mxu1 %v7667_v12  ;;  %v7315_v23 = vor.u32 %v8949_v17, %v7312_v18  ;;  %v9021_v24 = vld [vmem:[#allocation8 + $0xa84] sm:$0xf]  ;;  %v8802_v17 = vld [vmem:[#allocation8 + $0x3a4] sm:$0xf0] }
 0x11c   :  { %v7600_v26 = vld [vmem:[#allocation8 + $0xaa0] sm:$0xf0] }
 0x11d   :  { %4393 = vmatpush.bf16.msrb.mxu0 %v7347_v14  ;;  %v8941_v27 = vld [vmem:[#allocation8 + $0x804] sm:$0xf]  ;;  %v7603_v36 = vor.u32 %v9021_v24, %v7600_v26  ;;  %v6711_v26 = vor.u32 %v8802_v17, %v6710_v16  ;;  %v7510_v16 = vld [vmem:[#allocation8 + $0x9c8] sm:$0xf] }
 0x11e   :  { %v7280_v28 = vld [vmem:[#allocation8 + $0x820] sm:$0xf0]  ;;  %4357 = vmatmul.bf16.vlgmr.msra.gmra.mxu1 %v9583_v58  ;;  %v9002_v17 = vld [vmem:[#allocation8 + $0x9e4] sm:$0xf0] }
 0x11f   :  { %v1083_v19 = vpop.f32.mrf.mxu0  ;;  %v9125_v29 = vld [vmem:[#allocation8 + $0xdc4] sm:$0xf]  ;;  %4405 = vmatpush.bf16.msrb.mxu1 %v7635_v20  ;;  %v7283_v39 = vor.u32 %v8941_v27, %v7280_v28 }
 0x120   :  { %v1084_v21 = vadd.f32 %v1083_v19, %v268_v13  ;;  %v8016_v32 = vld [vmem:[#allocation8 + $0xde0] sm:$0xf0] }
 0x121   :  { %v1096_v22 = vpop.f32.mrf.mxu1  ;;  %4394 = vmatpush.bf16.msrb.mxu0 %v7315_v23  ;;  %v9013_v40 = vld [vmem:[#allocation8 + $0xa44] sm:$0xf]  ;;  %v8019_v55 = vor.u32 %v9125_v29, %v8016_v32  ;;  %v6678_v32 = vld [vmem:[#allocation8 + $0x348] sm:$0xf] }
 0x122   :  { %v1097_v30 = vadd.f32 %v1096_v22, %v1084_v21  ;;  %v7568_v41 = vld [vmem:[#allocation8 + $0xa60] sm:$0xf0]  ;;  %v6390_v21 = vld [vmem:[#allocation8 + $0x108] sm:$0xf] }
 0x123   :  { %v9117_v44 = vld [vmem:[#allocation8 + $0xd84] sm:$0xf]  ;;  %4406 = vmatpush.bf16.msrb.mxu1 %v7603_v36  ;;  %v7571_v37 = vor.u32 %v9013_v40, %v7568_v41  ;;  %v8722_v22 = vld [vmem:[#allocation8 + $0x124] sm:$0xf0]  ;;  %v6679_v40 = vor.u32 %v8794_v33, %v6678_v32 }
 0x124   :  { %v1132_v38 = vmax.f32 %v1097_v30, 0.0  ;;  %v7984_v46 = vld [vmem:[#allocation8 + $0xda0] sm:$0xf0]  ;;  %v6391_v29 = vor.u32 %v8722_v22, %v6390_v21  ;;  %v8874_v21 = vld [vmem:[#allocation8 + $0x5e4] sm:$0xf0] }
 0x125   :  { %v1109_v45 = vpop.f32.mrf.mxu2  ;;  %v9005_v53 = vld [vmem:[#allocation8 + $0xa04] sm:$0xf]  ;;  %4395 = vmatpush.bf16.msrb.mxu0 %v7283_v39  ;;  %v7987_v61 = vor.u32 %v9117_v44, %v7984_v46  ;;  %v6646_v44 = vld [vmem:[#allocation8 + $0x308] sm:$0xf] }
 0x126   :  { %v9606_v3 = vpack.c.bf16 %v1132_v38, %v1132_v38  ;;  %v1110_v49 = vadd.f32 %v1109_v45, %v269_v35  ;;  %v7536_v56 = vld [vmem:[#allocation8 + $0xa20] sm:$0xf0]  ;;  %v8714_v35 = vld [vmem:[#allocation8 + $0xe4] sm:$0xf0] }
 0x127   :  { %v1122_v50 = vpop.f32.mrf.mxu3  ;;  %v1085_v51 = vpop.f32.mrf.mxu0  ;;  %v9189_v57 = vld [vmem:[#allocation8 + $0xfc4] sm:$0xf]  ;;  %4407 = vmatpush.bf16.msrb.mxu1 %v7571_v37  ;;  %v7539_v8 = vor.u32 %v9005_v53, %v7536_v56  ;;  %v8786_v45 = vld [vmem:[#allocation8 + $0x324] sm:$0xf0] }
 0x128   :  { %4318 = vmatmul.bf16.vlgmr.msrb.gmra.mxu2 %v9606_v3  ;;  %v8272_v59 = vld [vmem:[#allocation8 + $0xfe0] sm:$0xf0]  ;;  %v1123_v60 = vadd.f32 %v1122_v50, %v1110_v49  ;;  %4396 = vmatmul.bf16.vlgmr.msrb.gmra.mxu0 %v9596_v31  ;;  %v6647_v37 = vor.u32 %v8786_v45, %v6646_v44  ;;  %v6966_v32 = vld [vmem:[#allocation8 + $0x588] sm:$0xf] }
 0x129   :  { %v1098_v54 = vpop.f32.mrf.mxu1  ;;  %4414 = vmatpush.bf16.msrb.mxu2 %v8019_v55  ;;  %4440 = vmatpush.bf16.msra.mxu0 %v6487_v43  ;;  %v9109_v1 = vld [vmem:[#allocation8 + $0xd44] sm:$0xf]  ;;  %v8275_v9 = vor.u32 %v9189_v57, %v8272_v59  ;;  %v6359_v55 = vor.u32 %v8714_v35, %v6358_v34  ;;  %v6614_v57 = vld [vmem:[#allocation8 + $0x2c8] sm:$0xf] }
 0x12a   :  { %v7952_v2 = vld [vmem:[#allocation8 + $0xd60] sm:$0xf0]  ;;  %v1133_v6 = vmax.f32 %v1123_v60, 0.0  ;;  %v6327_v54 = vor.u32 %v8706_v48, %v6326_v47  ;;  %v8778_v59 = vld [vmem:[#allocation8 + $0x2e4] sm:$0xf0] }
 0x12b   :  { %v9181_v11 = vld [vmem:[#allocation8 + $0xf84] sm:$0xf]  ;;  %v7955_v14 = vor.u32 %v9109_v1, %v7952_v2  ;;  %4408 = vmatpush.bf16.msrb.mxu1 %v7539_v8  ;;  %v6615_v2 = vor.u32 %v8778_v59, %v6614_v57  ;;  %v6582_v8 = vld [vmem:[#allocation8 + $0x288] sm:$0xf] }
 0x12c   :  { %v8240_v12 = vld [vmem:[#allocation8 + $0xfa0] sm:$0xf0]  ;;  %v9610_v13 = vpack.c.bf16 %v1133_v6, %v1133_v6  ;;  %v7478_v33 = vld [vmem:[#allocation8 + $0x988] sm:$0xf] }
 0x12d   :  { %4415 = vmatpush.bf16.msrb.mxu2 %v7987_v61  ;;  %4441 = vmatpush.bf16.msra.mxu0 %v6455_v62  ;;  %v9101_v18 = vld [vmem:[#allocation8 + $0xd04] sm:$0xf]  ;;  %v1111_v19 = vpop.f32.mrf.mxu2  ;;  %v8243_v24 = vor.u32 %v9181_v11, %v8240_v12  ;;  %v6294_v61 = vld [vmem:[#allocation8 + $0x48] sm:$0xf] }
 0x12e   :  { %v7920_v20 = vld [vmem:[#allocation8 + $0xd20] sm:$0xf0]  ;;  %4331 = vmatmul.bf16.vlgmr.msrb.gmra.mxu3 %v9610_v13  ;;  %4409 = vmatmul.bf16.vlgmr.msrb.gmra.mxu1 %v9599_v52  ;;  %v8698_v62 = vld [vmem:[#allocation8 + $0x64] sm:$0xf0] }
 0x12f   :  { %v1124_v23 = vpop.f32.mrf.mxu3  ;;  %4427 = vmatpush.bf16.msrb.mxu3 %v8275_v9  ;;  %4453 = vmatpush.bf16.msra.mxu1 %v6743_v10  ;;  %v9173_v27 = vld [vmem:[#allocation8 + $0xf44] sm:$0xf]  ;;  %v7923_v28 = vor.u32 %v9101_v18, %v7920_v20  ;;  %v6295_v5 = vor.u32 %v8698_v62, %v6294_v61  ;;  %v8770_v9 = vld [vmem:[#allocation8 + $0x2a4] sm:$0xf0] }
 0x130   :  { %v8208_v30 = vld [vmem:[#allocation8 + $0xf60] sm:$0xf0]  ;;  %v6262_v12 = vld [vmem:[#allocation8 + $0x8] sm:$0xf]  ;;  %v6583_v19 = vor.u32 %v8770_v9, %v6582_v8 }
 0x131   :  { %4416 = vmatpush.bf16.msrb.mxu2 %v7955_v14  ;;  %4442 = vmatpush.bf16.msra.mxu0 %v6423_v15  ;;  %v9093_v36 = vld [vmem:[#allocation8 + $0xcc4] sm:$0xf]  ;;  %v8211_v39 = vor.u32 %v9173_v27, %v8208_v30  ;;  %v8690_v14 = vld [vmem:[#allocation8 + $0x24] sm:$0xf0] }
 0x132   :  { %v7888_v38 = vld [vmem:[#allocation8 + $0xce0] sm:$0xf0]  ;;  %v6998_v20 = vld [vmem:[#allocation8 + $0x5c8] sm:$0xf]  ;;  %v6263_v23 = vor.u32 %v8690_v14, %v6262_v12 }
 0x133   :  { %4428 = vmatpush.bf16.msrb.mxu3 %v8243_v24  ;;  %4454 = vmatpush.bf16.msra.mxu1 %v6711_v26  ;;  %v9165_v41 = vld [vmem:[#allocation8 + $0xf04] sm:$0xf]  ;;  %v7891_v46 = vor.u32 %v9093_v36, %v7888_v38  ;;  %v6550_v26 = vld [vmem:[#allocation8 + $0x248] sm:$0xf]  ;;  %v6999_v30 = vor.u32 %v8874_v21, %v6998_v20 }
 0x134   :  { %v8176_v43 = vld [vmem:[#allocation8 + $0xf20] sm:$0xf0]  ;;  %v8762_v27 = vld [vmem:[#allocation8 + $0x264] sm:$0xf0] }
 0x135   :  { %4417 = vmatpush.bf16.msrb.mxu2 %v7923_v28  ;;  %4443 = vmatpush.bf16.msra.mxu0 %v6391_v29  ;;  %v9085_v49 = vld [vmem:[#allocation8 + $0xc84] sm:$0xf]  ;;  %v8179_v51 = vor.u32 %v9165_v41, %v8176_v43  ;;  %v7511_v29 = vor.u32 %v9002_v17, %v7510_v16  ;;  %v8994_v34 = vld [vmem:[#allocation8 + $0x9a4] sm:$0xf0]  ;;  %v6551_v36 = vor.u32 %v8762_v27, %v6550_v26 }
 0x136   :  { %v7856_v50 = vld [vmem:[#allocation8 + $0xca0] sm:$0xf0]  ;;  %v8866_v38 = vld [vmem:[#allocation8 + $0x5a4] sm:$0xf0]  ;;  %v7479_v44 = vor.u32 %v8994_v34, %v7478_v33 }
 0x137   :  { %4429 = vmatpush.bf16.msrb.mxu3 %v8211_v39  ;;  %4455 = vmatpush.bf16.msra.mxu1 %v6679_v40  ;;  %v9157_v53 = vld [vmem:[#allocation8 + $0xec4] sm:$0xf]  ;;  %v7859_v60 = vor.u32 %v9085_v49, %v7856_v50  ;;  %v6518_v41 = vld [vmem:[#allocation8 + $0x208] sm:$0xf]  ;;  %v6967_v48 = vor.u32 %v8866_v38, %v6966_v32 }
 0x138   :  { %4370 = vmatmul.bf16.vlgmr.msra.gmra.mxu2 %v9588_v7  ;;  %v8144_v56 = vld [vmem:[#allocation8 + $0xee0] sm:$0xf0]  ;;  %v7254_v43 = vld [vmem:[#allocation8 + $0x7c8] sm:$0xf] }
 0x139   :  { %4444 = vmatpush.bf16.msra.mxu0 %v6359_v55  ;;  %4418 = vmatpush.bf16.msrb.mxu2 %v7891_v46  ;;  %v9077_v63 = vld [vmem:[#allocation8 + $0xc44] sm:$0xf]  ;;  %v8147_v1 = vor.u32 %v9157_v53, %v8144_v56  ;;  %v8754_v55 = vld [vmem:[#allocation8 + $0x224] sm:$0xf0] }
 0x13a   :  { %v7824_v0 = vld [vmem:[#allocation8 + $0xc60] sm:$0xf0]  ;;  %v8938_v45 = vld [vmem:[#allocation8 + $0x7e4] sm:$0xf0] }
 0x13b   :  { %4430 = vmatpush.bf16.msrb.mxu3 %v8179_v51  ;;  %4456 = vmatpush.bf16.msra.mxu1 %v6647_v37  ;;  %v9149_v4 = vld [vmem:[#allocation8 + $0xe84] sm:$0xf]  ;;  %v7827_v10 = vor.u32 %v9077_v63, %v7824_v0  ;;  %v7766_v46 = vld [vmem:[#allocation8 + $0xbc8] sm:$0xf]  ;;  %v6519_v37 = vor.u32 %v8754_v55, %v6518_v41  ;;  %v7255_v56 = vor.u32 %v8938_v45, %v7254_v43 }
 0x13c   :  { %v8112_v6 = vld [vmem:[#allocation8 + $0xea0] sm:$0xf0]  ;;  %v9066_v47 = vld [vmem:[#allocation8 + $0xbe4] sm:$0xf0] }
 0x13d   :  { %4445 = vmatpush.bf16.msra.mxu0 %v6327_v54  ;;  %4419 = vmatpush.bf16.msrb.mxu2 %v7859_v60  ;;  %v9069_v11 = vld [vmem:[#allocation8 + $0xc04] sm:$0xf]  ;;  %v8115_v18 = vor.u32 %v9149_v4, %v8112_v6  ;;  %v7446_v49 = vld [vmem:[#allocation8 + $0x948] sm:$0xf]  ;;  %v7767_v57 = vor.u32 %v9066_v47, %v7766_v46 }
 0x13e   :  { %4383 = vmatmul.bf16.vlgmr.msra.gmra.mxu3 %v9591_v42  ;;  %v7792_v15 = vld [vmem:[#allocation8 + $0xc20] sm:$0xf0]  ;;  %v8986_v50 = vld [vmem:[#allocation8 + $0x964] sm:$0xf0] }
 0x13f   :  { %4431 = vmatpush.bf16.msrb.mxu3 %v8147_v1  ;;  %4457 = vmatpush.bf16.msra.mxu1 %v6615_v2  ;;  %v9141_v22 = vld [vmem:[#allocation8 + $0xe44] sm:$0xf]  ;;  %v7795_v28 = vor.u32 %v9069_v11, %v7792_v15  ;;  %v6934_v53 = vld [vmem:[#allocation8 + $0x548] sm:$0xf]  ;;  %v7447_v60 = vor.u32 %v8986_v50, %v7446_v49 }
 0x140   :  { %v8080_v24 = vld [vmem:[#allocation8 + $0xe60] sm:$0xf0]  ;;  %v8858_v54 = vld [vmem:[#allocation8 + $0x564] sm:$0xf0] }
 0x141   :  { %4446 = vmatpush.bf16.msra.mxu0 %v6295_v5  ;;  %4420 = vmatpush.bf16.msrb.mxu2 %v7827_v10  ;;  %v8083_v35 = vor.u32 %v9141_v22, %v8080_v24  ;;  %v9133_v39 = vld [vmem:[#allocation8 + $0xe04] sm:$0xf]  ;;  %v7222_v59 = vld [vmem:[#allocation8 + $0x788] sm:$0xf]  ;;  %v6935_v0 = vor.u32 %v8858_v54, %v6934_v53 }
 0x142   :  { %v8048_v40 = vld [vmem:[#allocation8 + $0xe20] sm:$0xf0]  ;;  %v8930_v61 = vld [vmem:[#allocation8 + $0x7a4] sm:$0xf0] }
 0x143   :  { %4432 = vmatpush.bf16.msrb.mxu3 %v8115_v18  ;;  %4458 = vmatpush.bf16.msra.mxu1 %v6583_v19  ;;  %v8051_v51 = vor.u32 %v9133_v39, %v8048_v40  ;;  %v7734_v62 = vld [vmem:[#allocation8 + $0xb88] sm:$0xf]  ;;  %v9618_v4 = vld [vmem:[#allocation10] sm:$0xff]  ;;  %v7223_v8 = vor.u32 %v8930_v61, %v7222_v59 }
 0x144   :  { %v9058_v63 = vld [vmem:[#allocation8 + $0xba4] sm:$0xf0]  ;;  %v1656_v16 = vperm.slane %v9618_v4, 0 }
 0x145   :  { %4447 = vmatpush.bf16.msra.mxu0 %v6263_v23  ;;  %4421 = vmatpush.bf16.msrb.mxu2 %v7795_v28  ;;  %v7414_v1 = vld [vmem:[#allocation8 + $0x908] sm:$0xf]  ;;  %v7735_v9 = vor.u32 %v9058_v63, %v7734_v62  ;;  %v4241_v17 = vpop.f32.mrf.mxu0 }
 0x146   :  { %v8978_v2 = vld [vmem:[#allocation8 + $0x924] sm:$0xf0]  ;;  %v4242_v32 = vadd.f32 %v4241_v17, %v1656_v16 }
 0x147   :  { %4433 = vmatpush.bf16.msrb.mxu3 %v8083_v35  ;;  %4459 = vmatpush.bf16.msra.mxu1 %v6551_v36  ;;  %v6902_v5 = vld [vmem:[#allocation8 + $0x508] sm:$0xf]  ;;  %v7415_v12 = vor.u32 %v8978_v2, %v7414_v1 }
 0x148   :  { %4448 = vmatmul.bf16.vlgmr.msra.gmra.mxu0 %v9580_v25  ;;  %4422 = vmatmul.bf16.vlgmr.msrb.gmra.mxu2 %v9606_v3  ;;  %v8850_v6 = vld [vmem:[#allocation8 + $0x524] sm:$0xf0] }
 0x149   :  { %4492 = vmatpush.bf16.msrb.mxu0 %v7511_v29  ;;  %4466 = vmatpush.bf16.msra.mxu2 %v6999_v30  ;;  %v7190_v10 = vld [vmem:[#allocation8 + $0x748] sm:$0xf]  ;;  %v6903_v18 = vor.u32 %v8850_v6, %v6902_v5  ;;  %v8742_v6 = vld [vmem:[#allocation8 + $0x1cc] sm:$0xf] }
 0x14a   :  { %v8922_v11 = vld [vmem:[#allocation8 + $0x764] sm:$0xf0] }
 0x14b   :  { %4434 = vmatpush.bf16.msrb.mxu3 %v8051_v51  ;;  %4460 = vmatpush.bf16.msra.mxu1 %v6519_v37  ;;  %v7702_v14 = vld [vmem:[#allocation8 + $0xb48] sm:$0xf]  ;;  %v7191_v23 = vor.u32 %v8922_v11, %v7190_v10 }
 0x14c   :  { %v9050_v15 = vld [vmem:[#allocation8 + $0xb64] sm:$0xf0]  ;;  %v4254_v55 = vpop.f32.mrf.mxu1 }
 0x14d   :  { %4493 = vmatpush.bf16.msrb.mxu0 %v7479_v44  ;;  %4467 = vmatpush.bf16.msra.mxu2 %v6967_v48  ;;  %v7382_v19 = vld [vmem:[#allocation8 + $0x8c8] sm:$0xf]  ;;  %v7703_v24 = vor.u32 %v9050_v15, %v7702_v14  ;;  %v9623_v47 = vadd.f32 %v4254_v55, %v4242_v32  ;;  %v4243_v48 = vpop.f32.mrf.mxu0  ;;  %v8726_v55 = vld [vmem:[#allocation8 + $0x14c] sm:$0xf] }
 0x14e   :  { %4461 = vmatmul.bf16.vlgmr.msra.gmra.mxu1 %v9583_v58  ;;  %v8970_v20 = vld [vmem:[#allocation8 + $0x8e4] sm:$0xf0]  ;;  %4435 = vmatmul.bf16.vlgmr.msrb.gmra.mxu3 %v9610_v13 }
 0x14f   :  { %4479 = vmatpush.bf16.msra.mxu3 %v7255_v56  ;;  %4505 = vmatpush.bf16.msrb.mxu1 %v7767_v57  ;;  %v6870_v21 = vld [vmem:[#allocation8 + $0x4c8] sm:$0xf]  ;;  %v7383_v27 = vor.u32 %v8970_v20, %v7382_v19 }
 0x150   :  { %v8842_v22 = vld [vmem:[#allocation8 + $0x4e4] sm:$0xf0] }
 0x151   :  { %4494 = vmatpush.bf16.msrb.mxu0 %v7447_v60  ;;  %4468 = vmatpush.bf16.msra.mxu2 %v6935_v0  ;;  %v7158_v26 = vld [vmem:[#allocation8 + $0x708] sm:$0xf]  ;;  %v6871_v33 = vor.u32 %v8842_v22, %v6870_v21 }
 0x152   :  { %v8914_v28 = vld [vmem:[#allocation8 + $0x724] sm:$0xf0] }
 0x153   :  { %4480 = vmatpush.bf16.msra.mxu3 %v7223_v8  ;;  %4506 = vmatpush.bf16.msrb.mxu1 %v7735_v9  ;;  %v7670_v29 = vld [vmem:[#allocation8 + $0xb08] sm:$0xf]  ;;  %v7159_v39 = vor.u32 %v8914_v28, %v7158_v26  ;;  %v6488_v8 = vld [vmem:[#allocation8 + $0x1e8] sm:$0xf0] }
 0x154   :  { %v9042_v30 = vld [vmem:[#allocation8 + $0xb24] sm:$0xf0]  ;;  %v4256_v15 = vpop.f32.mrf.mxu1  ;;  %v6491_v21 = vor.u32 %v8742_v6, %v6488_v8  ;;  %v6456_v26 = vld [vmem:[#allocation8 + $0x1a8] sm:$0xf0] }
 0x155   :  { %4495 = vmatpush.bf16.msrb.mxu0 %v7415_v12  ;;  %4469 = vmatpush.bf16.msra.mxu2 %v6903_v18  ;;  %v7350_v34 = vld [vmem:[#allocation8 + $0x888] sm:$0xf]  ;;  %v7671_v40 = vor.u32 %v9042_v30, %v7670_v29  ;;  %v8790_v6 = vld [vmem:[#allocation8 + $0x34c] sm:$0xf] }
 0x156   :  { %v8962_v35 = vld [vmem:[#allocation8 + $0x8a4] sm:$0xf0]  ;;  %v6680_v8 = vld [vmem:[#allocation8 + $0x368] sm:$0xf0] }
 0x157   :  { %v6838_v36 = vld [vmem:[#allocation8 + $0x488] sm:$0xf]  ;;  %4481 = vmatpush.bf16.msra.mxu3 %v7191_v23  ;;  %4507 = vmatpush.bf16.msrb.mxu1 %v7703_v24  ;;  %v7351_v43 = vor.u32 %v8962_v35, %v7350_v34  ;;  %v8734_v24 = vld [vmem:[#allocation8 + $0x18c] sm:$0xf] }
 0x158   :  { %v8834_v38 = vld [vmem:[#allocation8 + $0x4a4] sm:$0xf0] }
 0x159   :  { %v7126_v41 = vld [vmem:[#allocation8 + $0x6c8] sm:$0xf]  ;;  %4496 = vmatpush.bf16.msrb.mxu0 %v7383_v27  ;;  %4470 = vmatpush.bf16.msra.mxu2 %v6871_v33  ;;  %v6839_v49 = vor.u32 %v8834_v38, %v6838_v36  ;;  %v6459_v36 = vor.u32 %v8734_v24, %v6456_v26  ;;  %v6328_v24 = vld [vmem:[#allocation8 + $0xa8] sm:$0xf0] }
 0x15a   :  { %v8906_v44 = vld [vmem:[#allocation8 + $0x6e4] sm:$0xf0] }
 0x15b   :  { %v7638_v45 = vld [vmem:[#allocation8 + $0xac8] sm:$0xf]  ;;  %4482 = vmatpush.bf16.msra.mxu3 %v7159_v39  ;;  %4508 = vmatpush.bf16.msrb.mxu1 %v7671_v40  ;;  %v7127_v54 = vor.u32 %v8906_v44, %v7126_v41  ;;  %v8806_v39 = vld [vmem:[#allocation8 + $0x3cc] sm:$0xf] }
 0x15c   :  { %v9034_v46 = vld [vmem:[#allocation8 + $0xae4] sm:$0xf0]  ;;  %v6744_v40 = vld [vmem:[#allocation8 + $0x3e8] sm:$0xf0] }
 0x15d   :  { %v7318_v50 = vld [vmem:[#allocation8 + $0x848] sm:$0xf]  ;;  %v7639_v56 = vor.u32 %v9034_v46, %v7638_v45  ;;  %4497 = vmatpush.bf16.msrb.mxu0 %v7351_v43  ;;  %4471 = vmatpush.bf16.msra.mxu2 %v6839_v49  ;;  %v6424_v43 = vld [vmem:[#allocation8 + $0x168] sm:$0xf0]  ;;  %v6747_v48 = vor.u32 %v8806_v39, %v6744_v40 }
 0x15e   :  { %v8954_v51 = vld [vmem:[#allocation8 + $0x864] sm:$0xf0]  ;;  %v8694_v39 = vld [vmem:[#allocation8 + $0x4c] sm:$0xf] }
 0x15f   :  { %v6806_v37 = vld [vmem:[#allocation8 + $0x448] sm:$0xf]  ;;  %v7319_v59 = vor.u32 %v8954_v51, %v7318_v50  ;;  %4483 = vmatpush.bf16.msra.mxu3 %v7127_v54  ;;  %4509 = vmatpush.bf16.msrb.mxu1 %v7639_v56  ;;  %v8798_v54 = vld [vmem:[#allocation8 + $0x38c] sm:$0xf] }
 0x160   :  { %v8826_v53 = vld [vmem:[#allocation8 + $0x464] sm:$0xf0]  ;;  %v6712_v56 = vld [vmem:[#allocation8 + $0x3a8] sm:$0xf0] }
 0x161   :  { %v7094_v57 = vld [vmem:[#allocation8 + $0x688] sm:$0xf]  ;;  %v6807_v63 = vor.u32 %v8826_v53, %v6806_v37  ;;  %4498 = vmatpush.bf16.msrb.mxu0 %v7319_v59  ;;  %v6427_v37 = vor.u32 %v8726_v55, %v6424_v43  ;;  %v6392_v59 = vld [vmem:[#allocation8 + $0x128] sm:$0xf0] }
 0x162   :  { %v8898_v60 = vld [vmem:[#allocation8 + $0x6a4] sm:$0xf0]  ;;  %v6296_v40 = vld [vmem:[#allocation8 + $0x68] sm:$0xf0] }
 0x163   :  { %v7606_v61 = vld [vmem:[#allocation8 + $0xa88] sm:$0xf]  ;;  %v7095_v9 = vor.u32 %v8898_v60, %v7094_v57  ;;  %4472 = vmatpush.bf16.msra.mxu2 %v6807_v63  ;;  %v8718_v57 = vld [vmem:[#allocation8 + $0x10c] sm:$0xf] }
 0x164   :  { %v9026_v62 = vld [vmem:[#allocation8 + $0xaa4] sm:$0xf0] }
 0x165   :  { %v6774_v0 = vld [vmem:[#allocation8 + $0x408] sm:$0xf]  ;;  %v7607_v10 = vor.u32 %v9026_v62, %v7606_v61  ;;  %4484 = vmatpush.bf16.msra.mxu3 %v7095_v9  ;;  %v6715_v62 = vor.u32 %v8798_v54, %v6712_v56  ;;  %v8710_v9 = vld [vmem:[#allocation8 + $0xcc] sm:$0xf] }
 0x166   :  { %v7286_v1 = vld [vmem:[#allocation8 + $0x808] sm:$0xf]  ;;  %v6264_v54 = vld [vmem:[#allocation8 + $0x28] sm:$0xf0] }
 0x167   :  { %v8946_v2 = vld [vmem:[#allocation8 + $0x824] sm:$0xf0]  ;;  %4510 = vmatpush.bf16.msrb.mxu1 %v7607_v10  ;;  %v6360_v10 = vld [vmem:[#allocation8 + $0xe8] sm:$0xf0] }
 0x168   :  { %v8818_v5 = vld [vmem:[#allocation8 + $0x424] sm:$0xf0]  ;;  %v7287_v16 = vor.u32 %v8946_v2, %v7286_v1  ;;  %v6395_v2 = vor.u32 %v8718_v57, %v6392_v59  ;;  %v8998_v59 = vld [vmem:[#allocation8 + $0x9cc] sm:$0xf] }
 0x169   :  { %v8022_v11 = vld [vmem:[#allocation8 + $0xdc8] sm:$0xf]  ;;  %v6775_v20 = vor.u32 %v8818_v5, %v6774_v0 }
 0x16a   :  { %v9130_v12 = vld [vmem:[#allocation8 + $0xde4] sm:$0xf0]  ;;  %4499 = vmatpush.bf16.msrb.mxu0 %v7287_v16 }
 0x16b   :  { %v7062_v14 = vld [vmem:[#allocation8 + $0x648] sm:$0xf]  ;;  %v8023_v22 = vor.u32 %v9130_v12, %v8022_v11  ;;  %4473 = vmatpush.bf16.msra.mxu2 %v6775_v20  ;;  %v8782_v20 = vld [vmem:[#allocation8 + $0x30c] sm:$0xf] }
 0x16c   :  { %v8890_v17 = vld [vmem:[#allocation8 + $0x664] sm:$0xf0] }
 0x16d   :  { %v7574_v18 = vld [vmem:[#allocation8 + $0xa48] sm:$0xf]  ;;  %v7063_v27 = vor.u32 %v8890_v17, %v7062_v14  ;;  %4500 = vmatmul.bf16.vlgmr.msrb.gmra.mxu0 %v9596_v31  ;;  %v6683_v14 = vor.u32 %v8790_v6, %v6680_v8 }
 0x16e   :  { %v9018_v19 = vld [vmem:[#allocation8 + $0xa64] sm:$0xf0]  ;;  %4544 = vmatpush.bf16.msra.mxu0 %v6491_v21  ;;  %4474 = vmatmul.bf16.vlgmr.msra.gmra.mxu2 %v9588_v7  ;;  %v6648_v21 = vld [vmem:[#allocation8 + $0x328] sm:$0xf0] }
 0x16f   :  { %v7990_v23 = vld [vmem:[#allocation8 + $0xd88] sm:$0xf]  ;;  %v7575_v28 = vor.u32 %v9018_v19, %v7574_v18  ;;  %4518 = vmatpush.bf16.msrb.mxu2 %v8023_v22  ;;  %4485 = vmatpush.bf16.msra.mxu3 %v7063_v27  ;;  %v6363_v18 = vor.u32 %v8710_v9, %v6360_v10  ;;  %v4267_v22 = vpop.f32.mrf.mxu2  ;;  %v8758_v10 = vld [vmem:[#allocation8 + $0x24c] sm:$0xf] }
 0x170   :  { %v9122_v29 = vld [vmem:[#allocation8 + $0xda4] sm:$0xf0]  ;;  %v4268_v26 = vadd.f32 %v4267_v22, %v9623_v47 }
 0x171   :  { %v7030_v30 = vld [vmem:[#allocation8 + $0x608] sm:$0xf]  ;;  %v7991_v41 = vor.u32 %v9122_v29, %v7990_v23  ;;  %4511 = vmatpush.bf16.msrb.mxu1 %v7575_v28  ;;  %v8702_v23 = vld [vmem:[#allocation8 + $0x8c] sm:$0xf]  ;;  %v6651_v29 = vor.u32 %v8782_v20, %v6648_v21 }
 0x172   :  { %v8882_v32 = vld [vmem:[#allocation8 + $0x624] sm:$0xf0]  ;;  %4545 = vmatpush.bf16.msra.mxu0 %v6459_v36  ;;  %v8774_v36 = vld [vmem:[#allocation8 + $0x2cc] sm:$0xf] }
 0x173   :  { %v7542_v33 = vld [vmem:[#allocation8 + $0xa08] sm:$0xf]  ;;  %v7031_v44 = vor.u32 %v8882_v32, %v7030_v30  ;;  %4519 = vmatpush.bf16.msrb.mxu2 %v7991_v41 }
 0x174   :  { %v9010_v34 = vld [vmem:[#allocation8 + $0xa24] sm:$0xf0] }
 0x175   :  { %v8278_v35 = vld [vmem:[#allocation8 + $0xfc8] sm:$0xf]  ;;  %v7543_v45 = vor.u32 %v9010_v34, %v7542_v33  ;;  %4486 = vmatpush.bf16.msra.mxu3 %v7031_v44  ;;  %v6331_v34 = vor.u32 %v8702_v23, %v6328_v24  ;;  %v8750_v23 = vld [vmem:[#allocation8 + $0x20c] sm:$0xf] }
 0x176   :  { %v9194_v38 = vld [vmem:[#allocation8 + $0xfe4] sm:$0xf0]  ;;  %4546 = vmatpush.bf16.msra.mxu0 %v6427_v37  ;;  %v6520_v24 = vld [vmem:[#allocation8 + $0x228] sm:$0xf0] }
 0x177   :  { %v8279_v46 = vor.u32 %v9194_v38, %v8278_v35  ;;  %v7958_v49 = vld [vmem:[#allocation8 + $0xd48] sm:$0xf]  ;;  %4512 = vmatpush.bf16.msrb.mxu1 %v7543_v45  ;;  %v6616_v38 = vld [vmem:[#allocation8 + $0x2e8] sm:$0xf0]  ;;  %v4269_v56 = vpop.f32.mrf.mxu2 }
 0x178   :  { %v9114_v50 = vld [vmem:[#allocation8 + $0xd64] sm:$0xf0]  ;;  %4487 = vmatmul.bf16.vlgmr.msra.gmra.mxu3 %v9591_v42  ;;  %v6619_v55 = vor.u32 %v8774_v36, %v6616_v38  ;;  %v6523_v38 = vor.u32 %v8750_v23, %v6520_v24 }
 0x179   :  { %v8246_v51 = vld [vmem:[#allocation8 + $0xf88] sm:$0xf]  ;;  %v7959_v60 = vor.u32 %v9114_v50, %v7958_v49  ;;  %4531 = vmatpush.bf16.msrb.mxu3 %v8279_v46  ;;  %v4280_v46 = vpop.f32.mrf.mxu3  ;;  %v8766_v50 = vld [vmem:[#allocation8 + $0x28c] sm:$0xf] }
 0x17a   :  { %v9186_v53 = vld [vmem:[#allocation8 + $0xfa4] sm:$0xf0]  ;;  %4513 = vmatmul.bf16.vlgmr.msrb.gmra.mxu1 %v9599_v52  ;;  %4547 = vmatpush.bf16.msra.mxu0 %v6395_v2  ;;  %v9630_v37 = vadd.f32 %v4280_v46, %v4268_v26  ;;  %v7736_v46 = vld [vmem:[#allocation8 + $0xba8] sm:$0xf0] }
 0x17b   :  { %4557 = vmatpush.bf16.msra.mxu1 %v6747_v48  ;;  %v8247_v61 = vor.u32 %v9186_v53, %v8246_v51  ;;  %v7926_v63 = vld [vmem:[#allocation8 + $0xd08] sm:$0xf]  ;;  %4520 = vmatpush.bf16.msrb.mxu2 %v7959_v60  ;;  %v6299_v48 = vor.u32 %v8694_v39, %v6296_v40  ;;  %v6584_v51 = vld [vmem:[#allocation8 + $0x2a8] sm:$0xf0] }
 0x17c   :  { %v9106_v0 = vld [vmem:[#allocation8 + $0xd24] sm:$0xf0]  ;;  %v8686_v53 = vld [vmem:[#allocation8 + $0xc] sm:$0xf] }
 0x17d   :  { %v8214_v1 = vld [vmem:[#allocation8 + $0xf48] sm:$0xf]  ;;  %v7927_v11 = vor.u32 %v9106_v0, %v7926_v63  ;;  %4532 = vmatpush.bf16.msrb.mxu3 %v8247_v61  ;;  %v7512_v60 = vld [vmem:[#allocation8 + $0x9e8] sm:$0xf0]  ;;  %v6267_v2 = vor.u32 %v8686_v53, %v6264_v54 }
 0x17e   :  { %v9178_v5 = vld [vmem:[#allocation8 + $0xf64] sm:$0xf0]  ;;  %4548 = vmatpush.bf16.msra.mxu0 %v6363_v18  ;;  %v7515_v9 = vor.u32 %v8998_v59, %v7512_v60  ;;  %v8862_v18 = vld [vmem:[#allocation8 + $0x58c] sm:$0xf] }
 0x17f   :  { %4558 = vmatpush.bf16.msra.mxu1 %v6715_v62  ;;  %v8215_v12 = vor.u32 %v9178_v5, %v8214_v1  ;;  %v7894_v15 = vld [vmem:[#allocation8 + $0xcc8] sm:$0xf]  ;;  %4521 = vmatpush.bf16.msrb.mxu2 %v7927_v11  ;;  %v6587_v62 = vor.u32 %v8766_v50, %v6584_v51  ;;  %v8870_v1 = vld [vmem:[#allocation8 + $0x5cc] sm:$0xf] }
 0x180   :  { %v9098_v16 = vld [vmem:[#allocation8 + $0xce4] sm:$0xf0]  ;;  %v7000_v5 = vld [vmem:[#allocation8 + $0x5e8] sm:$0xf0] }
 0x181   :  { %v8182_v17 = vld [vmem:[#allocation8 + $0xf08] sm:$0xf]  ;;  %v7895_v27 = vor.u32 %v9098_v16, %v7894_v15  ;;  %4533 = vmatpush.bf16.msrb.mxu3 %v8215_v12  ;;  %v6552_v11 = vld [vmem:[#allocation8 + $0x268] sm:$0xf0]  ;;  %v7003_v16 = vor.u32 %v8870_v1, %v7000_v5  ;;  %v4282_v26 = vpop.f32.mrf.mxu3 }
 0x182   :  { %v9170_v19 = vld [vmem:[#allocation8 + $0xf24] sm:$0xf0]  ;;  %4549 = vmatpush.bf16.msra.mxu0 %v6331_v34  ;;  %v7480_v15 = vld [vmem:[#allocation8 + $0x9a8] sm:$0xf0]  ;;  %v6555_v21 = vor.u32 %v8758_v10, %v6552_v11 }
 0x183   :  { %4559 = vmatpush.bf16.msra.mxu1 %v6683_v14  ;;  %v8183_v28 = vor.u32 %v9170_v19, %v8182_v17  ;;  %v7862_v30 = vld [vmem:[#allocation8 + $0xc88] sm:$0xf]  ;;  %4522 = vmatpush.bf16.msrb.mxu2 %v7895_v27  ;;  %v8990_v14 = vld [vmem:[#allocation8 + $0x98c] sm:$0xf] }
 0x184   :  { %v9090_v32 = vld [vmem:[#allocation8 + $0xca4] sm:$0xf0]  ;;  %v6968_v19 = vld [vmem:[#allocation8 + $0x5a8] sm:$0xf0]  ;;  %v7483_v27 = vor.u32 %v8990_v14, %v7480_v15 }
 0x185   :  { %v8150_v33 = vld [vmem:[#allocation8 + $0xec8] sm:$0xf]  ;;  %v7863_v41 = vor.u32 %v9090_v32, %v7862_v30  ;;  %4534 = vmatpush.bf16.msrb.mxu3 %v8183_v28  ;;  %v8934_v28 = vld [vmem:[#allocation8 + $0x7cc] sm:$0xf]  ;;  %v4293_v56 = vpop.f32.mrf.mxu0 }
 0x186   :  { %v9162_v35 = vld [vmem:[#allocation8 + $0xee4] sm:$0xf0]  ;;  %4550 = vmatpush.bf16.msra.mxu0 %v6299_v48  ;;  %v9062_v30 = vld [vmem:[#allocation8 + $0xbcc] sm:$0xf] }
 0x187   :  { %4560 = vmatpush.bf16.msra.mxu1 %v6651_v29  ;;  %v8151_v47 = vor.u32 %v9162_v35, %v8150_v33  ;;  %v7830_v43 = vld [vmem:[#allocation8 + $0xc48] sm:$0xf]  ;;  %4523 = vmatpush.bf16.msrb.mxu2 %v7863_v41  ;;  %v7256_v29 = vld [vmem:[#allocation8 + $0x7e8] sm:$0xf0]  ;;  %v6971_v35 = vor.u32 %v8862_v18, %v6968_v19 }
 0x188   :  { %v9082_v44 = vld [vmem:[#allocation8 + $0xc64] sm:$0xf0]  ;;  %v7768_v32 = vld [vmem:[#allocation8 + $0xbe8] sm:$0xf0]  ;;  %v7259_v39 = vor.u32 %v8934_v28, %v7256_v29 }
 0x189   :  { %v8118_v45 = vld [vmem:[#allocation8 + $0xe88] sm:$0xf]  ;;  %v7831_v57 = vor.u32 %v9082_v44, %v7830_v43  ;;  %4535 = vmatpush.bf16.msrb.mxu3 %v8151_v47  ;;  %v8982_v33 = vld [vmem:[#allocation8 + $0x94c] sm:$0xf]  ;;  %v7771_v47 = vor.u32 %v9062_v30, %v7768_v32 }
 0x18a   :  { %v9154_v49 = vld [vmem:[#allocation8 + $0xea4] sm:$0xf0]  ;;  %4551 = vmatpush.bf16.msra.mxu0 %v6267_v2  ;;  %v7448_v34 = vld [vmem:[#allocation8 + $0x968] sm:$0xf0] }
 0x18b   :  { %4561 = vmatpush.bf16.msra.mxu1 %v6619_v55  ;;  %v8119_v61 = vor.u32 %v9154_v49, %v8118_v45  ;;  %v7798_v63 = vld [vmem:[#allocation8 + $0xc08] sm:$0xf]  ;;  %4524 = vmatpush.bf16.msrb.mxu2 %v7831_v57  ;;  %v8854_v40 = vld [vmem:[#allocation8 + $0x54c] sm:$0xf]  ;;  %v7451_v55 = vor.u32 %v8982_v33, %v7448_v34  ;;  %v4306_v19 = vpop.f32.mrf.mxu1 }
 0x18c   :  { %v9074_v0 = vld [vmem:[#allocation8 + $0xc24] sm:$0xf0]  ;;  %v6936_v41 = vld [vmem:[#allocation8 + $0x568] sm:$0xf0] }
 0x18d   :  { %v8086_v6 = vld [vmem:[#allocation8 + $0xe48] sm:$0xf]  ;;  %v7799_v12 = vor.u32 %v9074_v0, %v7798_v63  ;;  %4536 = vmatpush.bf16.msrb.mxu3 %v8119_v61  ;;  %4552 = vmatmul.bf16.vlgmr.msra.gmra.mxu0 %v9580_v25  ;;  %v8926_v43 = vld [vmem:[#allocation8 + $0x78c] sm:$0xf]  ;;  %v6939_v50 = vor.u32 %v8854_v40, %v6936_v41  ;;  %v4294_v63 = vadd.f32 %v4293_v56, %v9630_v37  ;;  %v4295_v24 = vpop.f32.mrf.mxu0 }
 0x18e   :  { %v9146_v8 = vld [vmem:[#allocation8 + $0xe64] sm:$0xf0]  ;;  %4596 = vmatpush.bf16.msrb.mxu0 %v7515_v9  ;;  %v7224_v44 = vld [vmem:[#allocation8 + $0x7a8] sm:$0xf0] }
 0x18f   :  { %4562 = vmatpush.bf16.msra.mxu1 %v6587_v62  ;;  %v8087_v17 = vor.u32 %v9146_v8, %v8086_v6  ;;  %v8054_v20 = vld [vmem:[#allocation8 + $0xe08] sm:$0xf]  ;;  %4525 = vmatpush.bf16.msrb.mxu2 %v7799_v12  ;;  %v9054_v45 = vld [vmem:[#allocation8 + $0xb8c] sm:$0xf]  ;;  %v7227_v51 = vor.u32 %v8926_v43, %v7224_v44  ;;  %v9637_v23 = vadd.f32 %v4306_v19, %v4294_v63 }
 0x190   :  { %v9138_v22 = vld [vmem:[#allocation8 + $0xe24] sm:$0xf0]  ;;  %v8974_v48 = vld [vmem:[#allocation8 + $0x90c] sm:$0xf]  ;;  %v7739_v57 = vor.u32 %v9054_v45, %v7736_v46 }
 0x191   :  { %4537 = vmatpush.bf16.msrb.mxu3 %v8087_v17  ;;  %v8055_v36 = vor.u32 %v9138_v22, %v8054_v20  ;;  %v7416_v49 = vld [vmem:[#allocation8 + $0x928] sm:$0xf0] }
 0x192   :  { %4526 = vmatmul.bf16.vlgmr.msrb.gmra.mxu2 %v9606_v3  ;;  %4597 = vmatpush.bf16.msrb.mxu0 %v7483_v27  ;;  %v8846_v53 = vld [vmem:[#allocation8 + $0x50c] sm:$0xf]  ;;  %v7419_v59 = vor.u32 %v8974_v48, %v7416_v49  ;;  %v6494_v49 = vld [vmem:[#allocation8 + $0x1d0] sm:$0xf] }
 0x193   :  { %4570 = vmatpush.bf16.msra.mxu2 %v7003_v16  ;;  %4563 = vmatpush.bf16.msra.mxu1 %v6555_v21  ;;  %v6904_v54 = vld [vmem:[#allocation8 + $0x528] sm:$0xf0] }
 0x194   :  { %v8918_v60 = vld [vmem:[#allocation8 + $0x74c] sm:$0xf]  ;;  %v6907_v5 = vor.u32 %v8846_v53, %v6904_v54 }
 0x195   :  { %4538 = vmatpush.bf16.msrb.mxu3 %v8055_v36  ;;  %v7192_v61 = vld [vmem:[#allocation8 + $0x768] sm:$0xf0] }
 0x196   :  { %4598 = vmatpush.bf16.msrb.mxu0 %v7451_v55  ;;  %v9046_v62 = vld [vmem:[#allocation8 + $0xb4c] sm:$0xf]  ;;  %v7195_v6 = vor.u32 %v8918_v60, %v7192_v61 }
 0x197   :  { %4571 = vmatpush.bf16.msra.mxu2 %v6971_v35  ;;  %4564 = vmatpush.bf16.msra.mxu1 %v6523_v38  ;;  %v7704_v0 = vld [vmem:[#allocation8 + $0xb68] sm:$0xf0] }
 0x198   :  { %4539 = vmatmul.bf16.vlgmr.msrb.gmra.mxu3 %v9610_v13  ;;  %v8966_v1 = vld [vmem:[#allocation8 + $0x8cc] sm:$0xf]  ;;  %v7707_v10 = vor.u32 %v9046_v62, %v7704_v0 }
 0x199   :  { %4583 = vmatpush.bf16.msra.mxu3 %v7259_v39  ;;  %v7384_v2 = vld [vmem:[#allocation8 + $0x8e8] sm:$0xf0] }
 0x19a   :  { %4565 = vmatmul.bf16.vlgmr.msra.gmra.mxu1 %v9583_v58  ;;  %v8838_v8 = vld [vmem:[#allocation8 + $0x4cc] sm:$0xf]  ;;  %4599 = vmatpush.bf16.msrb.mxu0 %v7419_v59  ;;  %v7387_v11 = vor.u32 %v8966_v1, %v7384_v2  ;;  %v4345_v59 = vpop.f32.mrf.mxu0 }
 0x19b   :  { %4609 = vmatpush.bf16.msrb.mxu1 %v7771_v47  ;;  %4572 = vmatpush.bf16.msra.mxu2 %v6939_v50  ;;  %v6872_v9 = vld [vmem:[#allocation8 + $0x4e8] sm:$0xf0]  ;;  %v8747_v50 = vld [vmem:[#allocation8 + $0x1ec] sm:$0xf0] }
 0x19c   :  { %v8910_v12 = vld [vmem:[#allocation8 + $0x70c] sm:$0xf]  ;;  %v6875_v18 = vor.u32 %v8838_v8, %v6872_v9  ;;  %v6495_v1 = vor.u32 %v8747_v50, %v6494_v49  ;;  %v6462_v9 = vld [vmem:[#allocation8 + $0x190] sm:$0xf] }
 0x19d   :  { %4584 = vmatpush.bf16.msra.mxu3 %v7227_v51  ;;  %v7160_v14 = vld [vmem:[#allocation8 + $0x728] sm:$0xf0]  ;;  %v4308_v51 = vpop.f32.mrf.mxu1 }
 0x19e   :  { %v9038_v15 = vld [vmem:[#allocation8 + $0xb0c] sm:$0xf]  ;;  %v7163_v20 = vor.u32 %v8910_v12, %v7160_v14  ;;  %4600 = vmatpush.bf16.msrb.mxu0 %v7387_v11 }
 0x19f   :  { %4610 = vmatpush.bf16.msrb.mxu1 %v7739_v57  ;;  %v7672_v16 = vld [vmem:[#allocation8 + $0xb28] sm:$0xf0]  ;;  %4573 = vmatpush.bf16.msra.mxu2 %v6907_v5 }
 0x1a0   :  { %v8958_v37 = vld [vmem:[#allocation8 + $0x88c] sm:$0xf]  ;;  %v7675_v26 = vor.u32 %v9038_v15, %v7672_v16 }
 0x1a1   :  { %v7352_v17 = vld [vmem:[#allocation8 + $0x8a8] sm:$0xf0]  ;;  %4585 = vmatpush.bf16.msra.mxu3 %v7195_v6  ;;  %v1657_v6 = vperm.slane %v9618_v4, 1  ;;  %v6750_v4 = vld [vmem:[#allocation8 + $0x3d0] sm:$0xf] }
 0x1a2   :  { %v8830_v21 = vld [vmem:[#allocation8 + $0x48c] sm:$0xf]  ;;  %v7355_v27 = vor.u32 %v8958_v37, %v7352_v17 }
 0x1a3   :  { %v6840_v22 = vld [vmem:[#allocation8 + $0x4a8] sm:$0xf0]  ;;  %4611 = vmatpush.bf16.msrb.mxu1 %v7707_v10  ;;  %4574 = vmatpush.bf16.msra.mxu2 %v6875_v18  ;;  %v8739_v10 = vld [vmem:[#allocation8 + $0x1ac] sm:$0xf0]  ;;  %v4346_v24 = vadd.f32 %v4345_v59, %v1657_v6 }
 0x1a4   :  { %v8902_v28 = vld [vmem:[#allocation8 + $0x6cc] sm:$0xf]  ;;  %v6843_v35 = vor.u32 %v8830_v21, %v6840_v22  ;;  %4601 = vmatpush.bf16.msrb.mxu0 %v7355_v27  ;;  %v6430_v27 = vld [vmem:[#allocation8 + $0x150] sm:$0xf] }
 0x1a5   :  { %v7128_v29 = vld [vmem:[#allocation8 + $0x6e8] sm:$0xf0]  ;;  %4586 = vmatpush.bf16.msra.mxu3 %v7163_v20  ;;  %v6463_v20 = vor.u32 %v8739_v10, %v6462_v9  ;;  %v6686_v59 = vld [vmem:[#allocation8 + $0x350] sm:$0xf] }
 0x1a6   :  { %v9030_v30 = vld [vmem:[#allocation8 + $0xacc] sm:$0xf]  ;;  %v7131_v36 = vor.u32 %v8902_v28, %v7128_v29  ;;  %v8731_v28 = vld [vmem:[#allocation8 + $0x16c] sm:$0xf0]  ;;  %v4358_v29 = vpop.f32.mrf.mxu1 }
 0x1a7   :  { %v7640_v32 = vld [vmem:[#allocation8 + $0xae8] sm:$0xf0]  ;;  %4612 = vmatpush.bf16.msrb.mxu1 %v7675_v26  ;;  %4575 = vmatpush.bf16.msra.mxu2 %v6843_v35  ;;  %v8811_v26 = vld [vmem:[#allocation8 + $0x3ec] sm:$0xf0] }
 0x1a8   :  { %v8950_v33 = vld [vmem:[#allocation8 + $0x84c] sm:$0xf]  ;;  %v7643_v40 = vor.u32 %v9030_v30, %v7640_v32 }
 0x1a9   :  { %v7320_v34 = vld [vmem:[#allocation8 + $0x868] sm:$0xf0]  ;;  %4587 = vmatpush.bf16.msra.mxu3 %v7131_v36 }
 0x1aa   :  { %v8822_v38 = vld [vmem:[#allocation8 + $0x44c] sm:$0xf]  ;;  %v7323_v41 = vor.u32 %v8950_v33, %v7320_v34  ;;  %v9640_v33 = vadd.f32 %v4358_v29, %v4346_v24  ;;  %v4347_v34 = vpop.f32.mrf.mxu0  ;;  %v6302_v29 = vld [vmem:[#allocation8 + $0x50] sm:$0xf] }
 0x1ab   :  { %v6808_v39 = vld [vmem:[#allocation8 + $0x468] sm:$0xf0]  ;;  %4613 = vmatpush.bf16.msrb.mxu1 %v7643_v40  ;;  %v6751_v40 = vor.u32 %v8811_v26, %v6750_v4 }
 0x1ac   :  { %v8894_v47 = vld [vmem:[#allocation8 + $0x68c] sm:$0xf]  ;;  %v6811_v48 = vor.u32 %v8822_v38, %v6808_v39  ;;  %4602 = vmatpush.bf16.msrb.mxu0 %v7323_v41  ;;  %v6431_v41 = vor.u32 %v8731_v28, %v6430_v27  ;;  %v6622_v27 = vld [vmem:[#allocation8 + $0x2d0] sm:$0xf] }
 0x1ad   :  { %v7096_v55 = vld [vmem:[#allocation8 + $0x6a8] sm:$0xf0]  ;;  %v8779_v28 = vld [vmem:[#allocation8 + $0x2ec] sm:$0xf0] }
 0x1ae   :  { %v9022_v43 = vld [vmem:[#allocation8 + $0xa8c] sm:$0xf]  ;;  %v7099_v53 = vor.u32 %v8894_v47, %v7096_v55  ;;  %4576 = vmatpush.bf16.msra.mxu2 %v6811_v48 }
 0x1af   :  { %v7608_v44 = vld [vmem:[#allocation8 + $0xaa8] sm:$0xf0] }
 0x1b0   :  { %v8942_v45 = vld [vmem:[#allocation8 + $0x80c] sm:$0xf]  ;;  %v7611_v60 = vor.u32 %v9022_v43, %v7608_v44  ;;  %4588 = vmatpush.bf16.msra.mxu3 %v7099_v53  ;;  %v6718_v43 = vld [vmem:[#allocation8 + $0x390] sm:$0xf] }
 0x1b1   :  { %v7288_v46 = vld [vmem:[#allocation8 + $0x828] sm:$0xf0]  ;;  %v8803_v44 = vld [vmem:[#allocation8 + $0x3ac] sm:$0xf0] }
 0x1b2   :  { %v8814_v54 = vld [vmem:[#allocation8 + $0x40c] sm:$0xf]  ;;  %v7291_v61 = vor.u32 %v8942_v45, %v7288_v46  ;;  %4614 = vmatpush.bf16.msrb.mxu1 %v7611_v60  ;;  %v6398_v45 = vld [vmem:[#allocation8 + $0x110] sm:$0xf]  ;;  %v6719_v53 = vor.u32 %v8803_v44, %v6718_v43  ;;  %v4332_v43 = vpop.f32.mrf.mxu3 }
 0x1b3   :  { %v6776_v56 = vld [vmem:[#allocation8 + $0x428] sm:$0xf0]  ;;  %v8723_v46 = vld [vmem:[#allocation8 + $0x12c] sm:$0xf0] }
 0x1b4   :  { %v9126_v57 = vld [vmem:[#allocation8 + $0xdcc] sm:$0xf]  ;;  %v6779_v8 = vor.u32 %v8814_v54, %v6776_v56  ;;  %4603 = vmatpush.bf16.msrb.mxu0 %v7291_v61  ;;  %v6399_v54 = vor.u32 %v8723_v46, %v6398_v45  ;;  %v8795_v60 = vld [vmem:[#allocation8 + $0x36c] sm:$0xf0] }
 0x1b5   :  { %v8024_v62 = vld [vmem:[#allocation8 + $0xde8] sm:$0xf0]  ;;  %v6366_v61 = vld [vmem:[#allocation8 + $0xd0] sm:$0xf] }
 0x1b6   :  { %v8886_v63 = vld [vmem:[#allocation8 + $0x64c] sm:$0xf]  ;;  %v8027_v11 = vor.u32 %v9126_v57, %v8024_v62  ;;  %4577 = vmatpush.bf16.msra.mxu2 %v6779_v8  ;;  %v8715_v62 = vld [vmem:[#allocation8 + $0xec] sm:$0xf0]  ;;  %v6687_v8 = vor.u32 %v8795_v60, %v6686_v59 }
 0x1b7   :  { %v7064_v0 = vld [vmem:[#allocation8 + $0x668] sm:$0xf0]  ;;  %4604 = vmatmul.bf16.vlgmr.msrb.gmra.mxu0 %v9596_v31  ;;  %v6367_v9 = vor.u32 %v8715_v62, %v6366_v61  ;;  %v8771_v44 = vld [vmem:[#allocation8 + $0x2ac] sm:$0xf0] }
 0x1b8   :  { %v9014_v2 = vld [vmem:[#allocation8 + $0xa4c] sm:$0xf]  ;;  %v7067_v12 = vor.u32 %v8886_v63, %v7064_v0  ;;  %4648 = vmatpush.bf16.msra.mxu0 %v6495_v1  ;;  %v4360_v63 = vpop.f32.mrf.mxu1  ;;  %v9646_v1 = vpop.f32.mrf.mxu0  ;;  %v6270_v45 = vld [vmem:[#allocation8 + $0x10] sm:$0xf] }
 0x1b9   :  { %v7576_v5 = vld [vmem:[#allocation8 + $0xa68] sm:$0xf0]  ;;  %4578 = vmatmul.bf16.vlgmr.msra.gmra.mxu2 %v9588_v7  ;;  %v8691_v46 = vld [vmem:[#allocation8 + $0x2c] sm:$0xf0] }
 0x1ba   :  { %v9118_v14 = vld [vmem:[#allocation8 + $0xd8c] sm:$0xf]  ;;  %v7579_v37 = vor.u32 %v9014_v2, %v7576_v5  ;;  %4622 = vmatpush.bf16.msrb.mxu2 %v8027_v11  ;;  %4589 = vmatpush.bf16.msra.mxu3 %v7067_v12  ;;  %v6654_v12 = vld [vmem:[#allocation8 + $0x310] sm:$0xf]  ;;  %v6271_v61 = vor.u32 %v8691_v46, %v6270_v45 }
 0x1bb   :  { %v7992_v15 = vld [vmem:[#allocation8 + $0xda8] sm:$0xf0]  ;;  %v7006_v59 = vld [vmem:[#allocation8 + $0x5d0] sm:$0xf] }
 0x1bc   :  { %v8878_v16 = vld [vmem:[#allocation8 + $0x60c] sm:$0xf]  ;;  %v7995_v30 = vor.u32 %v9118_v14, %v7992_v15  ;;  %4615 = vmatpush.bf16.msrb.mxu1 %v7579_v37  ;;  %4649 = vmatpush.bf16.msra.mxu0 %v6463_v20  ;;  %v8787_v14 = vld [vmem:[#allocation8 + $0x32c] sm:$0xf0]  ;;  %v4319_v37 = vpop.f32.mrf.mxu2 }
 0x1bd   :  { %v7032_v17 = vld [vmem:[#allocation8 + $0x628] sm:$0xf0]  ;;  %v6334_v15 = vld [vmem:[#allocation8 + $0x90] sm:$0xf] }
 0x1be   :  { %v9006_v18 = vld [vmem:[#allocation8 + $0xa0c] sm:$0xf]  ;;  %v7035_v32 = vor.u32 %v8878_v16, %v7032_v17  ;;  %4623 = vmatpush.bf16.msrb.mxu2 %v7995_v30  ;;  %v8707_v16 = vld [vmem:[#allocation8 + $0xac] sm:$0xf0] }
 0x1bf   :  { %v7544_v19 = vld [vmem:[#allocation8 + $0xa28] sm:$0xf0]  ;;  %v6335_v4 = vor.u32 %v8707_v16, %v6334_v15  ;;  %v8699_v30 = vld [vmem:[#allocation8 + $0x6c] sm:$0xf0] }
 0x1c0   :  { %v9190_v21 = vld [vmem:[#allocation8 + $0xfcc] sm:$0xf]  ;;  %v7547_v35 = vor.u32 %v9006_v18, %v7544_v19  ;;  %4590 = vmatpush.bf16.msra.mxu3 %v7035_v32  ;;  %4650 = vmatpush.bf16.msra.mxu0 %v6431_v41  ;;  %v4320_v18 = vadd.f32 %v4319_v37, %v9637_v23  ;;  %v9649_v32 = vpop.f32.mrf.mxu1  ;;  %v8875_v62 = vld [vmem:[#allocation8 + $0x5ec] sm:$0xf0] }
 0x1c1   :  { %v8280_v22 = vld [vmem:[#allocation8 + $0xfe8] sm:$0xf0]  ;;  %v6974_v15 = vld [vmem:[#allocation8 + $0x590] sm:$0xf] }
 0x1c2   :  { %v8283_v36 = vor.u32 %v9190_v21, %v8280_v22  ;;  %v9110_v38 = vld [vmem:[#allocation8 + $0xd4c] sm:$0xf]  ;;  %4616 = vmatpush.bf16.msrb.mxu1 %v7547_v35  ;;  %v6655_v22 = vor.u32 %v8787_v14, %v6654_v12  ;;  %v4399_v35 = vpop.f32.mrf.mxu0  ;;  %v7007_v12 = vor.u32 %v8875_v62, %v7006_v59  ;;  %v8867_v16 = vld [vmem:[#allocation8 + $0x5ac] sm:$0xf0] }
 0x1c3   :  { %v7960_v39 = vld [vmem:[#allocation8 + $0xd68] sm:$0xf0]  ;;  %4591 = vmatmul.bf16.vlgmr.msra.gmra.mxu3 %v9591_v42  ;;  %v9059_v45 = vld [vmem:[#allocation8 + $0xbac] sm:$0xf0] }
 0x1c4   :  { %v9182_v47 = vld [vmem:[#allocation8 + $0xf8c] sm:$0xf]  ;;  %v7963_v48 = vor.u32 %v9110_v38, %v7960_v39  ;;  %4635 = vmatpush.bf16.msrb.mxu3 %v8283_v36  ;;  %4651 = vmatpush.bf16.msra.mxu0 %v6399_v54  ;;  %v6623_v39 = vor.u32 %v8779_v28, %v6622_v27  ;;  %v9067_v27 = vld [vmem:[#allocation8 + $0xbec] sm:$0xf0] }
 0x1c5   :  { %v8248_v55 = vld [vmem:[#allocation8 + $0xfa8] sm:$0xf0]  ;;  %4617 = vmatmul.bf16.vlgmr.msrb.gmra.mxu1 %v9599_v52  ;;  %v7454_v28 = vld [vmem:[#allocation8 + $0x950] sm:$0xf] }
 0x1c6   :  { %v8251_v49 = vor.u32 %v9182_v47, %v8248_v55  ;;  %v9102_v50 = vld [vmem:[#allocation8 + $0xd0c] sm:$0xf]  ;;  %4661 = vmatpush.bf16.msra.mxu1 %v6751_v40  ;;  %4624 = vmatpush.bf16.msrb.mxu2 %v7963_v48  ;;  %v6303_v40 = vor.u32 %v8699_v30, %v6302_v29  ;;  %v6590_v55 = vld [vmem:[#allocation8 + $0x290] sm:$0xf]  ;;  %v9651_v48 = vadd.f32 %v4332_v43, %v4320_v18 }
 0x1c7   :  { %v7928_v51 = vld [vmem:[#allocation8 + $0xd28] sm:$0xf0]  ;;  %v6591_v60 = vor.u32 %v8771_v44, %v6590_v55  ;;  %v8987_v29 = vld [vmem:[#allocation8 + $0x96c] sm:$0xf0] }
 0x1c8   :  { %v9174_v56 = vld [vmem:[#allocation8 + $0xf4c] sm:$0xf]  ;;  %v7931_v0 = vor.u32 %v9102_v50, %v7928_v51  ;;  %4636 = vmatpush.bf16.msrb.mxu3 %v8251_v49  ;;  %4652 = vmatpush.bf16.msra.mxu0 %v6367_v9  ;;  %v4321_v49 = vpop.f32.mrf.mxu2  ;;  %v7518_v51 = vld [vmem:[#allocation8 + $0x9d0] sm:$0xf] }
 0x1c9   :  { %v8216_v57 = vld [vmem:[#allocation8 + $0xf68] sm:$0xf0]  ;;  %v7230_v55 = vld [vmem:[#allocation8 + $0x790] sm:$0xf] }
 0x1ca   :  { %v8219_v2 = vor.u32 %v9174_v56, %v8216_v57  ;;  %v9094_v5 = vld [vmem:[#allocation8 + $0xccc] sm:$0xf]  ;;  %4662 = vmatpush.bf16.msra.mxu1 %v6719_v53  ;;  %4625 = vmatpush.bf16.msrb.mxu2 %v7931_v0  ;;  %v9003_v53 = vld [vmem:[#allocation8 + $0x9ec] sm:$0xf0] }
 0x1cb   :  { %v7896_v6 = vld [vmem:[#allocation8 + $0xce8] sm:$0xf0]  ;;  %v8931_v43 = vld [vmem:[#allocation8 + $0x7ac] sm:$0xf0] }
 0x1cc   :  { %v9166_v10 = vld [vmem:[#allocation8 + $0xf0c] sm:$0xf]  ;;  %v7899_v17 = vor.u32 %v9094_v5, %v7896_v6  ;;  %4637 = vmatpush.bf16.msrb.mxu3 %v8219_v2  ;;  %4653 = vmatpush.bf16.msra.mxu0 %v6335_v4  ;;  %v7519_v2 = vor.u32 %v9003_v53, %v7518_v51  ;;  %v6558_v5 = vld [vmem:[#allocation8 + $0x250] sm:$0xf] }
 0x1cd   :  { %v8184_v11 = vld [vmem:[#allocation8 + $0xf28] sm:$0xf0]  ;;  %v8763_v6 = vld [vmem:[#allocation8 + $0x26c] sm:$0xf0] }
 0x1ce   :  { %v8187_v19 = vor.u32 %v9166_v10, %v8184_v11  ;;  %v9086_v20 = vld [vmem:[#allocation8 + $0xc8c] sm:$0xf]  ;;  %4663 = vmatpush.bf16.msra.mxu1 %v6687_v8  ;;  %4626 = vmatpush.bf16.msrb.mxu2 %v7899_v17  ;;  %v4412_v8 = vpop.f32.mrf.mxu1  ;;  %v7486_v10 = vld [vmem:[#allocation8 + $0x990] sm:$0xf]  ;;  %v6559_v17 = vor.u32 %v8763_v6, %v6558_v5 }
 0x1cf   :  { %v7864_v21 = vld [vmem:[#allocation8 + $0xca8] sm:$0xf0]  ;;  %v8995_v11 = vld [vmem:[#allocation8 + $0x9ac] sm:$0xf0] }
 0x1d0   :  { %v9158_v24 = vld [vmem:[#allocation8 + $0xecc] sm:$0xf]  ;;  %v7867_v34 = vor.u32 %v9086_v20, %v7864_v21  ;;  %4638 = vmatpush.bf16.msrb.mxu3 %v8187_v19  ;;  %4654 = vmatpush.bf16.msra.mxu0 %v6303_v40  ;;  %v6526_v19 = vld [vmem:[#allocation8 + $0x210] sm:$0xf]  ;;  %v4334_v21 = vpop.f32.mrf.mxu3  ;;  %v4371_v30 = vpop.f32.mrf.mxu2 }
 0x1d1   :  { %v8152_v26 = vld [vmem:[#allocation8 + $0xee8] sm:$0xf0]  ;;  %v8755_v20 = vld [vmem:[#allocation8 + $0x22c] sm:$0xf0] }
 0x1d2   :  { %v8155_v23 = vor.u32 %v9158_v24, %v8152_v26  ;;  %v9078_v36 = vld [vmem:[#allocation8 + $0xc4c] sm:$0xf]  ;;  %4664 = vmatpush.bf16.msra.mxu1 %v6655_v22  ;;  %4627 = vmatpush.bf16.msrb.mxu2 %v7867_v34  ;;  %v7487_v22 = vor.u32 %v8995_v11, %v7486_v10  ;;  %v7262_v4 = vld [vmem:[#allocation8 + $0x7d0] sm:$0xf]  ;;  %v6975_v34 = vor.u32 %v8867_v16, %v6974_v15  ;;  %v4449_v15 = vpop.f32.mrf.mxu0 }
 0x1d3   :  { %v7832_v38 = vld [vmem:[#allocation8 + $0xc68] sm:$0xf0]  ;;  %v8939_v24 = vld [vmem:[#allocation8 + $0x7ec] sm:$0xf0] }
 0x1d4   :  { %v9150_v41 = vld [vmem:[#allocation8 + $0xe8c] sm:$0xf]  ;;  %v7835_v50 = vor.u32 %v9078_v36, %v7832_v38  ;;  %4639 = vmatpush.bf16.msrb.mxu3 %v8155_v23  ;;  %4655 = vmatpush.bf16.msra.mxu0 %v6271_v61  ;;  %v7774_v26 = vld [vmem:[#allocation8 + $0xbd0] sm:$0xf]  ;;  %v4372_v23 = vadd.f32 %v4371_v30, %v9640_v33  ;;  %v6527_v36 = vor.u32 %v8755_v20, %v6526_v19 }
 0x1d5   :  { %v8120_v47 = vld [vmem:[#allocation8 + $0xea8] sm:$0xf0]  ;;  %v7263_v38 = vor.u32 %v8939_v24, %v7262_v4  ;;  %v8859_v40 = vld [vmem:[#allocation8 + $0x56c] sm:$0xf0] }
 0x1d6   :  { %v8123_v54 = vor.u32 %v9150_v41, %v8120_v47  ;;  %v9070_v56 = vld [vmem:[#allocation8 + $0xc0c] sm:$0xf]  ;;  %4665 = vmatpush.bf16.msra.mxu1 %v6623_v39  ;;  %4628 = vmatpush.bf16.msrb.mxu2 %v7835_v50  ;;  %v6942_v39 = vld [vmem:[#allocation8 + $0x550] sm:$0xf]  ;;  %v7775_v41 = vor.u32 %v9067_v27, %v7774_v26  ;;  %v7455_v47 = vor.u32 %v8987_v29, %v7454_v28 }
 0x1d7   :  { %v7800_v57 = vld [vmem:[#allocation8 + $0xc28] sm:$0xf0]  ;;  %4656 = vmatmul.bf16.vlgmr.msra.gmra.mxu0 %v9580_v25  ;;  %v7742_v44 = vld [vmem:[#allocation8 + $0xb90] sm:$0xf]  ;;  %v6943_v33 = vor.u32 %v8859_v40, %v6942_v39  ;;  %v7231_v50 = vor.u32 %v8931_v43, %v7230_v55  ;;  %v4462_v40 = vpop.f32.mrf.mxu1 }
 0x1d8   :  { %v9142_v63 = vld [vmem:[#allocation8 + $0xe4c] sm:$0xf]  ;;  %v7803_v9 = vor.u32 %v9070_v56, %v7800_v57  ;;  %4640 = vmatpush.bf16.msrb.mxu3 %v8123_v54  ;;  %4700 = vmatpush.bf16.msrb.mxu0 %v7519_v2  ;;  %v7422_v46 = vld [vmem:[#allocation8 + $0x910] sm:$0xf]  ;;  %v4384_v54 = vpop.f32.mrf.mxu3  ;;  %v7743_v56 = vor.u32 %v9059_v45, %v7742_v44  ;;  %v4373_v5 = vpop.f32.mrf.mxu2 }
 0x1d9   :  { %v8088_v0 = vld [vmem:[#allocation8 + $0xe68] sm:$0xf0]  ;;  %v8979_v49 = vld [vmem:[#allocation8 + $0x92c] sm:$0xf0]  ;;  %v4385_v62 = vadd.f32 %v4384_v54, %v4372_v23 }
 0x1da   :  { %v8091_v14 = vor.u32 %v9142_v63, %v8088_v0  ;;  %v9134_v37 = vld [vmem:[#allocation8 + $0xe0c] sm:$0xf]  ;;  %4666 = vmatpush.bf16.msra.mxu1 %v6591_v60  ;;  %4629 = vmatpush.bf16.msrb.mxu2 %v7803_v9  ;;  %v6910_v51 = vld [vmem:[#allocation8 + $0x510] sm:$0xf]  ;;  %v7423_v57 = vor.u32 %v8979_v49, %v7422_v46  ;;  %v9659_v9 = vld [vmem:[#allocation10] sm:$0xff]  ;;  %v4451_v49 = vpop.f32.mrf.mxu0 }
 0x1db   :  { %v8056_v18 = vld [vmem:[#allocation8 + $0xe28] sm:$0xf0]  ;;  %v8851_v53 = vld [vmem:[#allocation8 + $0x52c] sm:$0xf0]  ;;  %v4398_v8 = vadd.f32 %v9646_v1, %v4385_v62  ;;  %v1658_v10 = vperm.slane %v9659_v9, 2 }
 0x1dc   :  { %4641 = vmatpush.bf16.msrb.mxu3 %v8091_v14  ;;  %v8059_v35 = vor.u32 %v9134_v37, %v8056_v18  ;;  %4701 = vmatpush.bf16.msrb.mxu0 %v7487_v22  ;;  %v7198_v59 = vld [vmem:[#allocation8 + $0x750] sm:$0xf]  ;;  %v6911_v6 = vor.u32 %v8851_v53, %v6910_v51  ;;  %v6496_v62 = vld [vmem:[#allocation8 + $0x1f0] sm:$0xf0] }
 0x1dd   :  { %4630 = vmatmul.bf16.vlgmr.msrb.gmra.mxu2 %v9606_v3  ;;  %v8923_v60 = vld [vmem:[#allocation8 + $0x76c] sm:$0xf0]  ;;  %v4411_v20 = vadd.f32 %v9649_v32, %v4398_v8 }
 0x1de   :  { %4674 = vmatpush.bf16.msra.mxu2 %v7007_v12  ;;  %4667 = vmatpush.bf16.msra.mxu1 %v6559_v17  ;;  %v7710_v61 = vld [vmem:[#allocation8 + $0xb50] sm:$0xf]  ;;  %v7199_v11 = vor.u32 %v8923_v60, %v7198_v59 }
 0x1df   :  { %v9051_v63 = vld [vmem:[#allocation8 + $0xb6c] sm:$0xf0] }
 0x1e0   :  { %4642 = vmatpush.bf16.msrb.mxu3 %v8059_v35  ;;  %4702 = vmatpush.bf16.msrb.mxu0 %v7455_v47  ;;  %v7390_v0 = vld [vmem:[#allocation8 + $0x8d0] sm:$0xf]  ;;  %v7711_v16 = vor.u32 %v9051_v63, %v7710_v61  ;;  %v4386_v28 = vpop.f32.mrf.mxu3  ;;  %v8743_v61 = vld [vmem:[#allocation8 + $0x1d4] sm:$0xf] }
 0x1e1   :  { %v8971_v2 = vld [vmem:[#allocation8 + $0x8ec] sm:$0xf0] }
 0x1e2   :  { %4675 = vmatpush.bf16.msra.mxu2 %v6975_v34  ;;  %4668 = vmatpush.bf16.msra.mxu1 %v6527_v36  ;;  %v6878_v12 = vld [vmem:[#allocation8 + $0x4d0] sm:$0xf]  ;;  %v7391_v37 = vor.u32 %v8971_v2, %v7390_v0  ;;  %v4450_v36 = vadd.f32 %v4449_v15, %v1658_v10  ;;  %v6499_v15 = vor.u32 %v8743_v61, %v6496_v62 }
 0x1e3   :  { %4643 = vmatmul.bf16.vlgmr.msrb.gmra.mxu3 %v9610_v13  ;;  %v8843_v14 = vld [vmem:[#allocation8 + $0x4ec] sm:$0xf0] }
 0x1e4   :  { %4687 = vmatpush.bf16.msra.mxu3 %v7263_v38  ;;  %4703 = vmatpush.bf16.msrb.mxu0 %v7423_v57  ;;  %v7166_v17 = vld [vmem:[#allocation8 + $0x710] sm:$0xf]  ;;  %v6879_v4 = vor.u32 %v8843_v14, %v6878_v12  ;;  %v9663_v55 = vadd.f32 %v4462_v40, %v4450_v36  ;;  %v6432_v40 = vld [vmem:[#allocation8 + $0x170] sm:$0xf0] }
 0x1e5   :  { %4669 = vmatmul.bf16.vlgmr.msra.gmra.mxu1 %v9583_v58  ;;  %v8915_v18 = vld [vmem:[#allocation8 + $0x72c] sm:$0xf0] }
 0x1e6   :  { %4713 = vmatpush.bf16.msrb.mxu1 %v7775_v41  ;;  %4676 = vmatpush.bf16.msra.mxu2 %v6943_v33  ;;  %v7678_v19 = vld [vmem:[#allocation8 + $0xb10] sm:$0xf]  ;;  %v7167_v24 = vor.u32 %v8915_v18, %v7166_v17  ;;  %v4423_v41 = vpop.f32.mrf.mxu2  ;;  %v4464_v18 = vpop.f32.mrf.mxu1 }
 0x1e7   :  { %v9043_v21 = vld [vmem:[#allocation8 + $0xb2c] sm:$0xf0]  ;;  %v4424_v43 = vadd.f32 %v4423_v41, %v4411_v20 }
 0x1e8   :  { %4688 = vmatpush.bf16.msra.mxu3 %v7231_v50  ;;  %v7358_v1 = vld [vmem:[#allocation8 + $0x890] sm:$0xf]  ;;  %4704 = vmatpush.bf16.msrb.mxu0 %v7391_v37  ;;  %v7679_v29 = vor.u32 %v9043_v21, %v7678_v19  ;;  %v4436_v14 = vpop.f32.mrf.mxu3  ;;  %v8735_v21 = vld [vmem:[#allocation8 + $0x194] sm:$0xf] }
 0x1e9   :  { %v8963_v22 = vld [vmem:[#allocation8 + $0x8ac] sm:$0xf0]  ;;  %v9665_v17 = vadd.f32 %v4436_v14, %v4424_v43 }
 0x1ea   :  { %4714 = vmatpush.bf16.msrb.mxu1 %v7743_v56  ;;  %4677 = vmatpush.bf16.msra.mxu2 %v6911_v6  ;;  %v6846_v26 = vld [vmem:[#allocation8 + $0x490] sm:$0xf]  ;;  %v7359_v30 = vor.u32 %v8963_v22, %v7358_v1  ;;  %v6464_v1 = vld [vmem:[#allocation8 + $0x1b0] sm:$0xf0]  ;;  %v9671_v18 = vpop.f32.mrf.mxu0 }
 0x1eb   :  { %v8835_v27 = vld [vmem:[#allocation8 + $0x4ac] sm:$0xf0] }
 0x1ec   :  { %4689 = vmatpush.bf16.msra.mxu3 %v7199_v11  ;;  %v7134_v34 = vld [vmem:[#allocation8 + $0x6d0] sm:$0xf]  ;;  %v6847_v47 = vor.u32 %v8835_v27, %v6846_v26  ;;  %4705 = vmatpush.bf16.msrb.mxu0 %v7359_v30 }
 0x1ed   :  { %v8907_v35 = vld [vmem:[#allocation8 + $0x6ec] sm:$0xf0] }
 0x1ee   :  { %4715 = vmatpush.bf16.msrb.mxu1 %v7711_v16  ;;  %v7646_v23 = vld [vmem:[#allocation8 + $0xad0] sm:$0xf]  ;;  %4678 = vmatpush.bf16.msra.mxu2 %v6879_v4  ;;  %v7135_v44 = vor.u32 %v8907_v35, %v7134_v34  ;;  %v4425_v19 = vpop.f32.mrf.mxu2  ;;  %v6467_v35 = vor.u32 %v8735_v21, %v6464_v1 }
 0x1ef   :  { %v9035_v38 = vld [vmem:[#allocation8 + $0xaec] sm:$0xf0] }
 0x1f0   :  { %v7326_v32 = vld [vmem:[#allocation8 + $0x850] sm:$0xf]  ;;  %4690 = vmatpush.bf16.msra.mxu3 %v7167_v24  ;;  %v7647_v33 = vor.u32 %v9035_v38, %v7646_v23  ;;  %v8807_v38 = vld [vmem:[#allocation8 + $0x3d4] sm:$0xf]  ;;  %v4438_v49 = vpop.f32.mrf.mxu3 }
 0x1f1   :  { %v8955_v39 = vld [vmem:[#allocation8 + $0x86c] sm:$0xf0] }
 0x1f2   :  { %v6814_v45 = vld [vmem:[#allocation8 + $0x450] sm:$0xf]  ;;  %4716 = vmatpush.bf16.msrb.mxu1 %v7679_v29  ;;  %v7327_v50 = vor.u32 %v8955_v39, %v7326_v32  ;;  %4679 = vmatpush.bf16.msra.mxu2 %v6847_v47  ;;  %v6752_v32 = vld [vmem:[#allocation8 + $0x3f0] sm:$0xf0] }
 0x1f3   :  { %v8827_v46 = vld [vmem:[#allocation8 + $0x46c] sm:$0xf0]  ;;  %v8727_v39 = vld [vmem:[#allocation8 + $0x154] sm:$0xf] }
 0x1f4   :  { %v7102_v51 = vld [vmem:[#allocation8 + $0x690] sm:$0xf]  ;;  %v6815_v60 = vor.u32 %v8827_v46, %v6814_v45  ;;  %4691 = vmatpush.bf16.msra.mxu3 %v7135_v44  ;;  %4706 = vmatpush.bf16.msrb.mxu0 %v7327_v50  ;;  %v6435_v50 = vor.u32 %v8727_v39, %v6432_v40  ;;  %v8695_v39 = vld [vmem:[#allocation8 + $0x54] sm:$0xf] }
 0x1f5   :  { %v8899_v53 = vld [vmem:[#allocation8 + $0x6ac] sm:$0xf0]  ;;  %v6304_v40 = vld [vmem:[#allocation8 + $0x70] sm:$0xf0] }
 0x1f6   :  { %v7614_v54 = vld [vmem:[#allocation8 + $0xa90] sm:$0xf]  ;;  %v7103_v63 = vor.u32 %v8899_v53, %v7102_v51  ;;  %4717 = vmatpush.bf16.msrb.mxu1 %v7647_v33  ;;  %4680 = vmatpush.bf16.msra.mxu2 %v6815_v60  ;;  %v6755_v33 = vor.u32 %v8807_v38, %v6752_v32  ;;  %v8775_v38 = vld [vmem:[#allocation8 + $0x2d4] sm:$0xf] }
 0x1f7   :  { %v9027_v56 = vld [vmem:[#allocation8 + $0xaac] sm:$0xf0]  ;;  %v6624_v32 = vld [vmem:[#allocation8 + $0x2f0] sm:$0xf0] }
 0x1f8   :  { %v7294_v57 = vld [vmem:[#allocation8 + $0x810] sm:$0xf]  ;;  %v7615_v6 = vor.u32 %v9027_v56, %v7614_v54  ;;  %4692 = vmatpush.bf16.msra.mxu3 %v7103_v63  ;;  %v8799_v54 = vld [vmem:[#allocation8 + $0x394] sm:$0xf] }
 0x1f9   :  { %v8947_v59 = vld [vmem:[#allocation8 + $0x82c] sm:$0xf0]  ;;  %v6720_v56 = vld [vmem:[#allocation8 + $0x3b0] sm:$0xf0] }
 0x1fa   :  { %v6782_v0 = vld [vmem:[#allocation8 + $0x410] sm:$0xf]  ;;  %v7295_v8 = vor.u32 %v8947_v59, %v7294_v57  ;;  %4718 = vmatpush.bf16.msrb.mxu1 %v7615_v6  ;;  %v8719_v57 = vld [vmem:[#allocation8 + $0x114] sm:$0xf] }
 0x1fb   :  { %v8819_v2 = vld [vmem:[#allocation8 + $0x42c] sm:$0xf0]  ;;  %v6400_v59 = vld [vmem:[#allocation8 + $0x130] sm:$0xf0] }
 0x1fc   :  { %v8030_v5 = vld [vmem:[#allocation8 + $0xdd0] sm:$0xf]  ;;  %v6783_v20 = vor.u32 %v8819_v2, %v6782_v0  ;;  %4707 = vmatpush.bf16.msrb.mxu0 %v7295_v8  ;;  %v6723_v0 = vor.u32 %v8799_v54, %v6720_v56  ;;  %v6403_v2 = vor.u32 %v8719_v57, %v6400_v59  ;;  %v8791_v8 = vld [vmem:[#allocation8 + $0x354] sm:$0xf] }
 0x1fd   :  { %v9131_v10 = vld [vmem:[#allocation8 + $0xdec] sm:$0xf0]  ;;  %v8767_v56 = vld [vmem:[#allocation8 + $0x294] sm:$0xf] }
 0x1fe   :  { %v7070_v11 = vld [vmem:[#allocation8 + $0x650] sm:$0xf]  ;;  %v8031_v22 = vor.u32 %v9131_v10, %v8030_v5  ;;  %4681 = vmatpush.bf16.msra.mxu2 %v6783_v20  ;;  %v6688_v10 = vld [vmem:[#allocation8 + $0x370] sm:$0xf0] }
 0x1ff   :  { %v8891_v12 = vld [vmem:[#allocation8 + $0x66c] sm:$0xf0]  ;;  %4708 = vmatmul.bf16.vlgmr.msrb.gmra.mxu0 %v9596_v31  ;;  %v6691_v19 = vor.u32 %v8791_v8, %v6688_v10  ;;  %v6592_v57 = vld [vmem:[#allocation8 + $0x2b0] sm:$0xf0] }
 0x200   :  { %v7582_v16 = vld [vmem:[#allocation8 + $0xa50] sm:$0xf]  ;;  %v7071_v4 = vor.u32 %v8891_v12, %v7070_v11  ;;  %4752 = vmatpush.bf16.msra.mxu0 %v6499_v15  ;;  %v8711_v11 = vld [vmem:[#allocation8 + $0xd4] sm:$0xf]  ;;  %v6595_v8 = vor.u32 %v8767_v56, %v6592_v57 }
 0x201   :  { %v9019_v37 = vld [vmem:[#allocation8 + $0xa6c] sm:$0xf0]  ;;  %4682 = vmatmul.bf16.vlgmr.msra.gmra.mxu2 %v9588_v7  ;;  %v6368_v12 = vld [vmem:[#allocation8 + $0xf0] sm:$0xf0] }
 0x202   :  { %v7998_v24 = vld [vmem:[#allocation8 + $0xd90] sm:$0xf]  ;;  %v7583_v28 = vor.u32 %v9019_v37, %v7582_v16  ;;  %4726 = vmatpush.bf16.msrb.mxu2 %v8031_v22  ;;  %4693 = vmatpush.bf16.msra.mxu3 %v7071_v4  ;;  %v6371_v20 = vor.u32 %v8711_v11, %v6368_v12  ;;  %v8783_v22 = vld [vmem:[#allocation8 + $0x314] sm:$0xf] }
 0x203   :  { %v9123_v26 = vld [vmem:[#allocation8 + $0xdac] sm:$0xf0]  ;;  %v6656_v4 = vld [vmem:[#allocation8 + $0x330] sm:$0xf0] }
 0x204   :  { %v7038_v27 = vld [vmem:[#allocation8 + $0x610] sm:$0xf]  ;;  %v7999_v41 = vor.u32 %v9123_v26, %v7998_v24  ;;  %4719 = vmatpush.bf16.msrb.mxu1 %v7583_v28  ;;  %4753 = vmatpush.bf16.msra.mxu0 %v6467_v35  ;;  %v8703_v24 = vld [vmem:[#allocation8 + $0x94] sm:$0xf] }
 0x205   :  { %v8883_v29 = vld [vmem:[#allocation8 + $0x62c] sm:$0xf0]  ;;  %v6336_v26 = vld [vmem:[#allocation8 + $0xb0] sm:$0xf0] }
 0x206   :  { %v7550_v30 = vld [vmem:[#allocation8 + $0xa10] sm:$0xf]  ;;  %v7039_v47 = vor.u32 %v8883_v29, %v7038_v27  ;;  %4727 = vmatpush.bf16.msrb.mxu2 %v7999_v41  ;;  %v6339_v35 = vor.u32 %v8703_v24, %v6336_v26  ;;  %v4475_v41 = vpop.f32.mrf.mxu2  ;;  %v8687_v59 = vld [vmem:[#allocation8 + $0x14] sm:$0xf] }
 0x207   :  { %v9011_v34 = vld [vmem:[#allocation8 + $0xa2c] sm:$0xf0]  ;;  %v7008_v11 = vld [vmem:[#allocation8 + $0x5f0] sm:$0xf0] }
 0x208   :  { %v8286_v23 = vld [vmem:[#allocation8 + $0xfd0] sm:$0xf]  ;;  %v7551_v43 = vor.u32 %v9011_v34, %v7550_v30  ;;  %4694 = vmatpush.bf16.msra.mxu3 %v7039_v47  ;;  %4754 = vmatpush.bf16.msra.mxu0 %v6435_v50  ;;  %v6659_v34 = vor.u32 %v8783_v22, %v6656_v4  ;;  %v9673_v47 = vpop.f32.mrf.mxu1  ;;  %v6627_v50 = vor.u32 %v8775_v38, %v6624_v32  ;;  %v8991_v22 = vld [vmem:[#allocation8 + $0x994] sm:$0xf] }
 0x209   :  { %v9195_v36 = vld [vmem:[#allocation8 + $0xfec] sm:$0xf0]  ;;  %v7488_v4 = vld [vmem:[#allocation8 + $0x9b0] sm:$0xf0] }
 0x20a   :  { %v8287_v44 = vor.u32 %v9195_v36, %v8286_v23  ;;  %v7966_v45 = vld [vmem:[#allocation8 + $0xd50] sm:$0xf]  ;;  %4720 = vmatpush.bf16.msrb.mxu1 %v7551_v43  ;;  %v7491_v38 = vor.u32 %v8991_v22, %v7488_v4  ;;  %v8935_v32 = vld [vmem:[#allocation8 + $0x7d4] sm:$0xf] }
 0x20b   :  { %v9115_v46 = vld [vmem:[#allocation8 + $0xd6c] sm:$0xf0]  ;;  %4695 = vmatmul.bf16.vlgmr.msra.gmra.mxu3 %v9591_v42  ;;  %v8927_v56 = vld [vmem:[#allocation8 + $0x794] sm:$0xf] }
 0x20c   :  { %v8254_v51 = vld [vmem:[#allocation8 + $0xf90] sm:$0xf]  ;;  %v7967_v60 = vor.u32 %v9115_v46, %v7966_v45  ;;  %4739 = vmatpush.bf16.msrb.mxu3 %v8287_v44  ;;  %4755 = vmatpush.bf16.msra.mxu0 %v6403_v2  ;;  %v4476_v44 = vadd.f32 %v4475_v41, %v9663_v55  ;;  %v7232_v57 = vld [vmem:[#allocation8 + $0x7b0] sm:$0xf0] }
 0x20d   :  { %v9187_v53 = vld [vmem:[#allocation8 + $0xfac] sm:$0xf0]  ;;  %4721 = vmatmul.bf16.vlgmr.msrb.gmra.mxu1 %v9599_v52  ;;  %v8911_v4 = vld [vmem:[#allocation8 + $0x714] sm:$0xf] }
 0x20e   :  { %v8255_v61 = vor.u32 %v9187_v53, %v8254_v51  ;;  %v7934_v62 = vld [vmem:[#allocation8 + $0xd10] sm:$0xf]  ;;  %4765 = vmatpush.bf16.msra.mxu1 %v6755_v33  ;;  %4728 = vmatpush.bf16.msrb.mxu2 %v7967_v60  ;;  %v4503_v33 = vpop.f32.mrf.mxu0  ;;  %v6307_v51 = vor.u32 %v8695_v39, %v6304_v40  ;;  %v6272_v60 = vld [vmem:[#allocation8 + $0x30] sm:$0xf0] }
 0x20f   :  { %v9107_v63 = vld [vmem:[#allocation8 + $0xd2c] sm:$0xf0]  ;;  %v6275_v10 = vor.u32 %v8687_v59, %v6272_v60  ;;  %v7264_v39 = vld [vmem:[#allocation8 + $0x7f0] sm:$0xf0] }
 0x210   :  { %v8222_v5 = vld [vmem:[#allocation8 + $0xf50] sm:$0xf]  ;;  %v7935_v14 = vor.u32 %v9107_v63, %v7934_v62  ;;  %4740 = vmatpush.bf16.msrb.mxu3 %v8255_v61  ;;  %4756 = vmatpush.bf16.msra.mxu0 %v6371_v20  ;;  %v8999_v62 = vld [vmem:[#allocation8 + $0x9d4] sm:$0xf]  ;;  %v4477_v20 = vpop.f32.mrf.mxu2 }
 0x211   :  { %v9179_v6 = vld [vmem:[#allocation8 + $0xf6c] sm:$0xf0]  ;;  %v7520_v63 = vld [vmem:[#allocation8 + $0x9f0] sm:$0xf0] }
 0x212   :  { %v8223_v15 = vor.u32 %v9179_v6, %v8222_v5  ;;  %v7902_v16 = vld [vmem:[#allocation8 + $0xcd0] sm:$0xf]  ;;  %4766 = vmatpush.bf16.msra.mxu1 %v6723_v0  ;;  %4729 = vmatpush.bf16.msrb.mxu2 %v7935_v14  ;;  %v8871_v5 = vld [vmem:[#allocation8 + $0x5d4] sm:$0xf]  ;;  %v4488_v6 = vpop.f32.mrf.mxu3 }
 0x213   :  { %v9099_v37 = vld [vmem:[#allocation8 + $0xcec] sm:$0xf0]  ;;  %v7011_v26 = vor.u32 %v8871_v5, %v7008_v11  ;;  %v9063_v40 = vld [vmem:[#allocation8 + $0xbd4] sm:$0xf] }
 0x214   :  { %v8190_v21 = vld [vmem:[#allocation8 + $0xf10] sm:$0xf]  ;;  %v7903_v27 = vor.u32 %v9099_v37, %v7902_v16  ;;  %4741 = vmatpush.bf16.msrb.mxu3 %v8223_v15  ;;  %4757 = vmatpush.bf16.msra.mxu0 %v6339_v35  ;;  %v4489_v15 = vadd.f32 %v4488_v6, %v4476_v44  ;;  %v7523_v16 = vor.u32 %v8999_v62, %v7520_v63  ;;  %v8759_v37 = vld [vmem:[#allocation8 + $0x254] sm:$0xf] }
 0x215   :  { %v9171_v1 = vld [vmem:[#allocation8 + $0xf2c] sm:$0xf0]  ;;  %v7456_v44 = vld [vmem:[#allocation8 + $0x970] sm:$0xf0] }
 0x216   :  { %v8191_v28 = vor.u32 %v9171_v1, %v8190_v21  ;;  %v7870_v29 = vld [vmem:[#allocation8 + $0xc90] sm:$0xf]  ;;  %4767 = vmatpush.bf16.msra.mxu1 %v6691_v19  ;;  %4730 = vmatpush.bf16.msrb.mxu2 %v7903_v27  ;;  %v6560_v19 = vld [vmem:[#allocation8 + $0x270] sm:$0xf0]  ;;  %v4516_v21 = vpop.f32.mrf.mxu1  ;;  %v4502_v24 = vadd.f32 %v9671_v18, %v4489_v15 }
 0x217   :  { %v9091_v30 = vld [vmem:[#allocation8 + $0xcac] sm:$0xf0]  ;;  %v7776_v18 = vld [vmem:[#allocation8 + $0xbf0] sm:$0xf0]  ;;  %v4553_v21 = vpop.f32.mrf.mxu0 }
 0x218   :  { %v8158_v23 = vld [vmem:[#allocation8 + $0xed0] sm:$0xf]  ;;  %v7871_v43 = vor.u32 %v9091_v30, %v7870_v29  ;;  %4742 = vmatpush.bf16.msrb.mxu3 %v8191_v28  ;;  %4758 = vmatpush.bf16.msra.mxu0 %v6307_v51  ;;  %v8863_v28 = vld [vmem:[#allocation8 + $0x594] sm:$0xf]  ;;  %v9678_v41 = vadd.f32 %v9673_v47, %v4502_v24  ;;  %v7779_v47 = vor.u32 %v9063_v40, %v7776_v18 }
 0x219   :  { %v9163_v36 = vld [vmem:[#allocation8 + $0xeec] sm:$0xf0]  ;;  %v6976_v29 = vld [vmem:[#allocation8 + $0x5b0] sm:$0xf0] }
 0x21a   :  { %v8159_v45 = vor.u32 %v9163_v36, %v8158_v23  ;;  %v7838_v46 = vld [vmem:[#allocation8 + $0xc50] sm:$0xf]  ;;  %4768 = vmatpush.bf16.msra.mxu1 %v6659_v34  ;;  %4731 = vmatpush.bf16.msrb.mxu2 %v7871_v43  ;;  %v6563_v34 = vor.u32 %v8759_v37, %v6560_v19  ;;  %v8751_v23 = vld [vmem:[#allocation8 + $0x214] sm:$0xf] }
 0x21b   :  { %v9083_v49 = vld [vmem:[#allocation8 + $0xc6c] sm:$0xf0]  ;;  %v6528_v36 = vld [vmem:[#allocation8 + $0x230] sm:$0xf0] }
 0x21c   :  { %v8126_v53 = vld [vmem:[#allocation8 + $0xe90] sm:$0xf]  ;;  %v7839_v61 = vor.u32 %v9083_v49, %v7838_v46  ;;  %4743 = vmatpush.bf16.msrb.mxu3 %v8159_v45  ;;  %4759 = vmatpush.bf16.msra.mxu0 %v6275_v10  ;;  %v8983_v43 = vld [vmem:[#allocation8 + $0x954] sm:$0xf]  ;;  %v6979_v45 = vor.u32 %v8863_v28, %v6976_v29  ;;  %v4490_v49 = vpop.f32.mrf.mxu3  ;;  %v6531_v33 = vor.u32 %v8751_v23, %v6528_v36 }
 0x21d   :  { %v9155_v54 = vld [vmem:[#allocation8 + $0xeac] sm:$0xf0]  ;;  %v8855_v51 = vld [vmem:[#allocation8 + $0x554] sm:$0xf] }
 0x21e   :  { %v8127_v55 = vor.u32 %v9155_v54, %v8126_v53  ;;  %v7806_v0 = vld [vmem:[#allocation8 + $0xc10] sm:$0xf]  ;;  %4769 = vmatpush.bf16.msra.mxu1 %v6627_v50  ;;  %4732 = vmatpush.bf16.msrb.mxu2 %v7839_v61  ;;  %v7267_v50 = vor.u32 %v8935_v32, %v7264_v39  ;;  %v6944_v53 = vld [vmem:[#allocation8 + $0x570] sm:$0xf0]  ;;  %v7459_v54 = vor.u32 %v8983_v43, %v7456_v44 }
 0x21f   :  { %v9075_v2 = vld [vmem:[#allocation8 + $0xc2c] sm:$0xf0]  ;;  %4760 = vmatmul.bf16.vlgmr.msra.gmra.mxu0 %v9580_v25  ;;  %v9055_v59 = vld [vmem:[#allocation8 + $0xb94] sm:$0xf]  ;;  %v6947_v63 = vor.u32 %v8855_v51, %v6944_v53 }
 0x220   :  { %v8094_v12 = vld [vmem:[#allocation8 + $0xe50] sm:$0xf]  ;;  %v7807_v1 = vor.u32 %v9075_v2, %v7806_v0  ;;  %4744 = vmatpush.bf16.msrb.mxu3 %v8127_v55  ;;  %4804 = vmatpush.bf16.msrb.mxu0 %v7523_v16  ;;  %v7744_v60 = vld [vmem:[#allocation8 + $0xbb0] sm:$0xf0]  ;;  %v7235_v55 = vor.u32 %v8927_v56, %v7232_v57  ;;  %v4555_v57 = vpop.f32.mrf.mxu0 }
 0x221   :  { %v9147_v14 = vld [vmem:[#allocation8 + $0xe6c] sm:$0xf0]  ;;  %v8975_v61 = vld [vmem:[#allocation8 + $0x914] sm:$0xf]  ;;  %v7747_v5 = vor.u32 %v9055_v59, %v7744_v60 }
 0x222   :  { %v8095_v27 = vor.u32 %v9147_v14, %v8094_v12  ;;  %v8062_v30 = vld [vmem:[#allocation8 + $0xe10] sm:$0xf]  ;;  %4770 = vmatpush.bf16.msra.mxu1 %v6595_v8  ;;  %4733 = vmatpush.bf16.msrb.mxu2 %v7807_v1  ;;  %v7424_v62 = vld [vmem:[#allocation8 + $0x930] sm:$0xf0] }
 0x223   :  { %v9139_v35 = vld [vmem:[#allocation8 + $0xe2c] sm:$0xf0]  ;;  %v8847_v0 = vld [vmem:[#allocation8 + $0x514] sm:$0xf]  ;;  %v7427_v6 = vor.u32 %v8975_v61, %v7424_v62 }
 0x224   :  { %4745 = vmatpush.bf16.msrb.mxu3 %v8095_v27  ;;  %v8063_v46 = vor.u32 %v9139_v35, %v8062_v30  ;;  %4805 = vmatpush.bf16.msrb.mxu0 %v7491_v38  ;;  %v6912_v2 = vld [vmem:[#allocation8 + $0x530] sm:$0xf0]  ;;  %v1659_v30 = vperm.slane %v9659_v9, 3  ;;  %v4527_v9 = vpop.f32.mrf.mxu2 }
 0x225   :  { %4734 = vmatmul.bf16.vlgmr.msrb.gmra.mxu2 %v9606_v3  ;;  %v8919_v8 = vld [vmem:[#allocation8 + $0x754] sm:$0xf]  ;;  %v6915_v16 = vor.u32 %v8847_v0, %v6912_v2 }
 0x226   :  { %4778 = vmatpush.bf16.msra.mxu2 %v7011_v26  ;;  %4771 = vmatpush.bf16.msra.mxu1 %v6563_v34  ;;  %v7200_v10 = vld [vmem:[#allocation8 + $0x770] sm:$0xf0] }
 0x227   :  { %v9047_v11 = vld [vmem:[#allocation8 + $0xb54] sm:$0xf]  ;;  %v7203_v37 = vor.u32 %v8919_v8, %v7200_v10 }
 0x228   :  { %4746 = vmatpush.bf16.msrb.mxu3 %v8063_v46  ;;  %4806 = vmatpush.bf16.msrb.mxu0 %v7459_v54  ;;  %v7712_v12 = vld [vmem:[#allocation8 + $0xb70] sm:$0xf0]  ;;  %v4554_v46 = vadd.f32 %v4553_v21, %v1659_v30  ;;  %v4528_v54 = vadd.f32 %v4527_v9, %v9678_v41 }
 0x229   :  { %v8967_v14 = vld [vmem:[#allocation8 + $0x8d4] sm:$0xf]  ;;  %v7715_v1 = vor.u32 %v9047_v11, %v7712_v12  ;;  %v4540_v12 = vpop.f32.mrf.mxu3 }
 0x22a   :  { %4779 = vmatpush.bf16.msra.mxu2 %v6979_v45  ;;  %4772 = vmatpush.bf16.msra.mxu1 %v6531_v33  ;;  %v7392_v15 = vld [vmem:[#allocation8 + $0x8f0] sm:$0xf0]  ;;  %v4566_v33 = vpop.f32.mrf.mxu1 }
 0x22b   :  { %4747 = vmatmul.bf16.vlgmr.msrb.gmra.mxu3 %v9610_v13  ;;  %v8839_v19 = vld [vmem:[#allocation8 + $0x4d4] sm:$0xf]  ;;  %v7395_v22 = vor.u32 %v8967_v14, %v7392_v15  ;;  %v9686_v56 = vadd.f32 %v4566_v33, %v4554_v46  ;;  %v6438_v46 = vld [vmem:[#allocation8 + $0x158] sm:$0xf] }
 0x22c   :  { %4791 = vmatpush.bf16.msra.mxu3 %v7267_v50  ;;  %v6880_v20 = vld [vmem:[#allocation8 + $0x4f0] sm:$0xf0]  ;;  %4807 = vmatpush.bf16.msrb.mxu0 %v7427_v6  ;;  %v8748_v6 = vld [vmem:[#allocation8 + $0x1f4] sm:$0xf0] }
 0x22d   :  { %4773 = vmatmul.bf16.vlgmr.msra.gmra.mxu1 %v9583_v58  ;;  %v7168_v24 = vld [vmem:[#allocation8 + $0x730] sm:$0xf0]  ;;  %v6883_v34 = vor.u32 %v8839_v19, %v6880_v20  ;;  %v9688_v20 = vadd.f32 %v4540_v12, %v4528_v54 }
 0x22e   :  { %4817 = vmatpush.bf16.msrb.mxu1 %v7779_v47  ;;  %4780 = vmatpush.bf16.msra.mxu2 %v6947_v63  ;;  %v9039_v26 = vld [vmem:[#allocation8 + $0xb14] sm:$0xf]  ;;  %v7171_v35 = vor.u32 %v8911_v4, %v7168_v24  ;;  %v6470_v24 = vld [vmem:[#allocation8 + $0x198] sm:$0xf] }
 0x22f   :  { %v7680_v27 = vld [vmem:[#allocation8 + $0xb30] sm:$0xf0] }
 0x230   :  { %4792 = vmatpush.bf16.msra.mxu3 %v7235_v55  ;;  %v8959_v28 = vld [vmem:[#allocation8 + $0x894] sm:$0xf]  ;;  %4808 = vmatpush.bf16.msrb.mxu0 %v7395_v22  ;;  %v7683_v32 = vor.u32 %v9039_v26, %v7680_v27  ;;  %v8740_v26 = vld [vmem:[#allocation8 + $0x1b4] sm:$0xf0]  ;;  %v4529_v27 = vpop.f32.mrf.mxu2 }
 0x231   :  { %v7360_v29 = vld [vmem:[#allocation8 + $0x8b0] sm:$0xf0] }
 0x232   :  { %4818 = vmatpush.bf16.msrb.mxu1 %v7747_v5  ;;  %4781 = vmatpush.bf16.msra.mxu2 %v6915_v16  ;;  %v8831_v23 = vld [vmem:[#allocation8 + $0x494] sm:$0xf]  ;;  %v7363_v39 = vor.u32 %v8959_v28, %v7360_v29  ;;  %v6502_v5 = vld [vmem:[#allocation8 + $0x1d8] sm:$0xf]  ;;  %v4568_v28 = vpop.f32.mrf.mxu1 }
 0x233   :  { %v6848_v36 = vld [vmem:[#allocation8 + $0x4b0] sm:$0xf0]  ;;  %v6503_v21 = vor.u32 %v8748_v6, %v6502_v5 }
 0x234   :  { %4793 = vmatpush.bf16.msra.mxu3 %v7203_v37  ;;  %v8903_v38 = vld [vmem:[#allocation8 + $0x6d4] sm:$0xf]  ;;  %v6851_v49 = vor.u32 %v8831_v23, %v6848_v36  ;;  %4809 = vmatpush.bf16.msrb.mxu0 %v7363_v39 }
 0x235   :  { %v7136_v40 = vld [vmem:[#allocation8 + $0x6f0] sm:$0xf0] }
 0x236   :  { %4819 = vmatpush.bf16.msrb.mxu1 %v7715_v1  ;;  %v9031_v18 = vld [vmem:[#allocation8 + $0xad4] sm:$0xf]  ;;  %4782 = vmatpush.bf16.msra.mxu2 %v6883_v34  ;;  %v7139_v50 = vor.u32 %v8903_v38, %v7136_v40  ;;  %v6471_v40 = vor.u32 %v8740_v26, %v6470_v24 }
 0x237   :  { %v7648_v43 = vld [vmem:[#allocation8 + $0xaf0] sm:$0xf0] }
 0x238   :  { %v8951_v44 = vld [vmem:[#allocation8 + $0x854] sm:$0xf]  ;;  %4794 = vmatpush.bf16.msra.mxu3 %v7171_v35  ;;  %v7651_v51 = vor.u32 %v9031_v18, %v7648_v43 }
 0x239   :  { %v7328_v45 = vld [vmem:[#allocation8 + $0x870] sm:$0xf0] }
 0x23a   :  { %v8823_v53 = vld [vmem:[#allocation8 + $0x454] sm:$0xf]  ;;  %4820 = vmatpush.bf16.msrb.mxu1 %v7683_v32  ;;  %v7331_v59 = vor.u32 %v8951_v44, %v7328_v45  ;;  %4783 = vmatpush.bf16.msra.mxu2 %v6851_v49  ;;  %v6758_v44 = vld [vmem:[#allocation8 + $0x3d8] sm:$0xf] }
 0x23b   :  { %v6816_v47 = vld [vmem:[#allocation8 + $0x470] sm:$0xf0]  ;;  %v8812_v45 = vld [vmem:[#allocation8 + $0x3f4] sm:$0xf0] }
 0x23c   :  { %v8895_v60 = vld [vmem:[#allocation8 + $0x694] sm:$0xf]  ;;  %v6819_v2 = vor.u32 %v8823_v53, %v6816_v47  ;;  %4795 = vmatpush.bf16.msra.mxu3 %v7139_v50  ;;  %4810 = vmatpush.bf16.msrb.mxu0 %v7331_v59  ;;  %v8732_v49 = vld [vmem:[#allocation8 + $0x174] sm:$0xf0]  ;;  %v4542_v50 = vpop.f32.mrf.mxu3  ;;  %v6759_v57 = vor.u32 %v8812_v45, %v6758_v44 }
 0x23d   :  { %v7104_v61 = vld [vmem:[#allocation8 + $0x6b0] sm:$0xf0]  ;;  %v6439_v59 = vor.u32 %v8732_v49, %v6438_v46  ;;  %v6630_v44 = vld [vmem:[#allocation8 + $0x2d8] sm:$0xf] }
 0x23e   :  { %v9023_v62 = vld [vmem:[#allocation8 + $0xa94] sm:$0xf]  ;;  %v7107_v8 = vor.u32 %v8895_v60, %v7104_v61  ;;  %4821 = vmatpush.bf16.msrb.mxu1 %v7651_v51  ;;  %4784 = vmatpush.bf16.msra.mxu2 %v6819_v2  ;;  %v8780_v45 = vld [vmem:[#allocation8 + $0x2f4] sm:$0xf0] }
 0x23f   :  { %v7616_v63 = vld [vmem:[#allocation8 + $0xab0] sm:$0xf0]  ;;  %v6310_v46 = vld [vmem:[#allocation8 + $0x58] sm:$0xf] }
 0x240   :  { %v8943_v55 = vld [vmem:[#allocation8 + $0x814] sm:$0xf]  ;;  %v7619_v14 = vor.u32 %v9023_v62, %v7616_v63  ;;  %4796 = vmatpush.bf16.msra.mxu3 %v7107_v8  ;;  %v6726_v62 = vld [vmem:[#allocation8 + $0x398] sm:$0xf] }
 0x241   :  { %v7296_v0 = vld [vmem:[#allocation8 + $0x830] sm:$0xf0]  ;;  %v8804_v63 = vld [vmem:[#allocation8 + $0x3b4] sm:$0xf0] }
 0x242   :  { %v8815_v10 = vld [vmem:[#allocation8 + $0x414] sm:$0xf]  ;;  %v7299_v15 = vor.u32 %v8943_v55, %v7296_v0  ;;  %4822 = vmatpush.bf16.msrb.mxu1 %v7619_v14  ;;  %v6406_v55 = vld [vmem:[#allocation8 + $0x118] sm:$0xf]  ;;  %v4618_v50 = vpop.f32.mrf.mxu1 }
 0x243   :  { %v6784_v41 = vld [vmem:[#allocation8 + $0x430] sm:$0xf0]  ;;  %v8724_v0 = vld [vmem:[#allocation8 + $0x134] sm:$0xf0] }
 0x244   :  { %v9127_v11 = vld [vmem:[#allocation8 + $0xdd4] sm:$0xf]  ;;  %v6787_v4 = vor.u32 %v8815_v10, %v6784_v41  ;;  %4811 = vmatpush.bf16.msrb.mxu0 %v7299_v15  ;;  %v6727_v10 = vor.u32 %v8804_v63, %v6726_v62  ;;  %v6407_v41 = vor.u32 %v8724_v0, %v6406_v55  ;;  %v6694_v14 = vld [vmem:[#allocation8 + $0x358] sm:$0xf] }
 0x245   :  { %v8032_v16 = vld [vmem:[#allocation8 + $0xdf0] sm:$0xf0]  ;;  %v8796_v15 = vld [vmem:[#allocation8 + $0x374] sm:$0xf0] }
 0x246   :  { %v8887_v37 = vld [vmem:[#allocation8 + $0x654] sm:$0xf]  ;;  %v8035_v29 = vor.u32 %v9127_v11, %v8032_v16  ;;  %4785 = vmatpush.bf16.msra.mxu2 %v6787_v4  ;;  %v6374_v16 = vld [vmem:[#allocation8 + $0xd8] sm:$0xf]  ;;  %v9694_v4 = vpop.f32.mrf.mxu0  ;;  %v6695_v24 = vor.u32 %v8796_v15, %v6694_v14 }
 0x247   :  { %v7072_v19 = vld [vmem:[#allocation8 + $0x670] sm:$0xf0]  ;;  %4812 = vmatmul.bf16.vlgmr.msrb.gmra.mxu0 %v9596_v31  ;;  %v8700_v49 = vld [vmem:[#allocation8 + $0x74] sm:$0xf0] }
 0x248   :  { %v9015_v1 = vld [vmem:[#allocation8 + $0xa54] sm:$0xf]  ;;  %v7075_v30 = vor.u32 %v8887_v37, %v7072_v19  ;;  %4856 = vmatpush.bf16.msra.mxu0 %v6503_v21  ;;  %v8716_v37 = vld [vmem:[#allocation8 + $0xf4] sm:$0xf0] }
 0x249   :  { %v7584_v22 = vld [vmem:[#allocation8 + $0xa70] sm:$0xf0]  ;;  %4786 = vmatmul.bf16.vlgmr.msra.gmra.mxu2 %v9588_v7  ;;  %v6375_v26 = vor.u32 %v8716_v37, %v6374_v16  ;;  %v6598_v63 = vld [vmem:[#allocation8 + $0x298] sm:$0xf] }
 0x24a   :  { %v9119_v34 = vld [vmem:[#allocation8 + $0xd94] sm:$0xf]  ;;  %v7587_v36 = vor.u32 %v9015_v1, %v7584_v22  ;;  %4830 = vmatpush.bf16.msrb.mxu2 %v8035_v29  ;;  %4797 = vmatpush.bf16.msra.mxu3 %v7075_v30  ;;  %v6662_v29 = vld [vmem:[#allocation8 + $0x318] sm:$0xf] }
 0x24b   :  { %v8000_v35 = vld [vmem:[#allocation8 + $0xdb0] sm:$0xf0]  ;;  %v8788_v30 = vld [vmem:[#allocation8 + $0x334] sm:$0xf0] }
 0x24c   :  { %v8879_v23 = vld [vmem:[#allocation8 + $0x614] sm:$0xf]  ;;  %v8003_v9 = vor.u32 %v9119_v34, %v8000_v35  ;;  %4823 = vmatpush.bf16.msrb.mxu1 %v7587_v36  ;;  %4857 = vmatpush.bf16.msra.mxu0 %v6471_v40  ;;  %v6342_v34 = vld [vmem:[#allocation8 + $0x98] sm:$0xf] }
 0x24d   :  { %v7040_v38 = vld [vmem:[#allocation8 + $0x630] sm:$0xf0]  ;;  %v8708_v35 = vld [vmem:[#allocation8 + $0xb4] sm:$0xf0] }
 0x24e   :  { %v9007_v32 = vld [vmem:[#allocation8 + $0xa14] sm:$0xf]  ;;  %v7043_v33 = vor.u32 %v8879_v23, %v7040_v38  ;;  %4831 = vmatpush.bf16.msrb.mxu2 %v8003_v9  ;;  %v6343_v40 = vor.u32 %v8708_v35, %v6342_v34  ;;  %v8772_v55 = vld [vmem:[#allocation8 + $0x2b4] sm:$0xf0]  ;;  %v4620_v34 = vpop.f32.mrf.mxu1 }
 0x24f   :  { %v7552_v39 = vld [vmem:[#allocation8 + $0xa30] sm:$0xf0]  ;;  %v6278_v0 = vld [vmem:[#allocation8 + $0x18] sm:$0xf]  ;;  %v6599_v14 = vor.u32 %v8772_v55, %v6598_v63 }
 0x250   :  { %v9191_v18 = vld [vmem:[#allocation8 + $0xfd4] sm:$0xf]  ;;  %v7555_v51 = vor.u32 %v9007_v32, %v7552_v39  ;;  %4798 = vmatpush.bf16.msra.mxu3 %v7043_v33  ;;  %4858 = vmatpush.bf16.msra.mxu0 %v6439_v59  ;;  %v6663_v39 = vor.u32 %v8788_v30, %v6662_v29  ;;  %v4579_v33 = vpop.f32.mrf.mxu2  ;;  %v6631_v59 = vor.u32 %v8780_v45, %v6630_v44  ;;  %v8876_v16 = vld [vmem:[#allocation8 + $0x5f4] sm:$0xf0] }
 0x251   :  { %v8288_v43 = vld [vmem:[#allocation8 + $0xff0] sm:$0xf0]  ;;  %v7270_v45 = vld [vmem:[#allocation8 + $0x7d8] sm:$0xf] }
 0x252   :  { %v8291_v53 = vor.u32 %v9191_v18, %v8288_v43  ;;  %v9111_v47 = vld [vmem:[#allocation8 + $0xd54] sm:$0xf]  ;;  %4824 = vmatpush.bf16.msrb.mxu1 %v7555_v51  ;;  %v7238_v63 = vld [vmem:[#allocation8 + $0x798] sm:$0xf] }
 0x253   :  { %v7968_v54 = vld [vmem:[#allocation8 + $0xd70] sm:$0xf0]  ;;  %4799 = vmatmul.bf16.vlgmr.msra.gmra.mxu3 %v9591_v42  ;;  %v8932_v55 = vld [vmem:[#allocation8 + $0x7b4] sm:$0xf0] }
 0x254   :  { %v9183_v60 = vld [vmem:[#allocation8 + $0xf94] sm:$0xf]  ;;  %v7971_v2 = vor.u32 %v9111_v47, %v7968_v54  ;;  %4843 = vmatpush.bf16.msrb.mxu3 %v8291_v53  ;;  %4859 = vmatpush.bf16.msra.mxu0 %v6407_v41  ;;  %v4580_v54 = vadd.f32 %v4579_v33, %v9686_v56  ;;  %v7014_v56 = vld [vmem:[#allocation8 + $0x5d8] sm:$0xf] }
 0x255   :  { %v8256_v61 = vld [vmem:[#allocation8 + $0xfb0] sm:$0xf0]  ;;  %4825 = vmatmul.bf16.vlgmr.msrb.gmra.mxu1 %v9599_v52  ;;  %v7015_v35 = vor.u32 %v8876_v16, %v7014_v56  ;;  %v7462_v33 = vld [vmem:[#allocation8 + $0x958] sm:$0xf] }
 0x256   :  { %v8259_v5 = vor.u32 %v9183_v60, %v8256_v61  ;;  %v9103_v6 = vld [vmem:[#allocation8 + $0xd14] sm:$0xf]  ;;  %4869 = vmatpush.bf16.msra.mxu1 %v6759_v57  ;;  %4832 = vmatpush.bf16.msrb.mxu2 %v7971_v2  ;;  %v4607_v57 = vpop.f32.mrf.mxu0  ;;  %v6311_v60 = vor.u32 %v8700_v49, %v6310_v46  ;;  %v8692_v2 = vld [vmem:[#allocation8 + $0x34] sm:$0xf0] }
 0x257   :  { %v7936_v8 = vld [vmem:[#allocation8 + $0xd30] sm:$0xf0]  ;;  %v6279_v15 = vor.u32 %v8692_v2, %v6278_v0  ;;  %v8940_v46 = vld [vmem:[#allocation8 + $0x7f4] sm:$0xf0] }
 0x258   :  { %v9175_v11 = vld [vmem:[#allocation8 + $0xf54] sm:$0xf]  ;;  %v7939_v19 = vor.u32 %v9103_v6, %v7936_v8  ;;  %4844 = vmatpush.bf16.msrb.mxu3 %v8259_v5  ;;  %4860 = vmatpush.bf16.msra.mxu0 %v6375_v26  ;;  %v7526_v6 = vld [vmem:[#allocation8 + $0x9d8] sm:$0xf]  ;;  %v4581_v30 = vpop.f32.mrf.mxu2 }
 0x259   :  { %v8224_v12 = vld [vmem:[#allocation8 + $0xf70] sm:$0xf0]  ;;  %v9004_v8 = vld [vmem:[#allocation8 + $0x9f4] sm:$0xf0] }
 0x25a   :  { %v8227_v21 = vor.u32 %v9175_v11, %v8224_v12  ;;  %v9095_v1 = vld [vmem:[#allocation8 + $0xcd4] sm:$0xf]  ;;  %4870 = vmatpush.bf16.msra.mxu1 %v6727_v10  ;;  %4833 = vmatpush.bf16.msrb.mxu2 %v7939_v19  ;;  %v4592_v12 = vpop.f32.mrf.mxu3  ;;  %v7782_v49 = vld [vmem:[#allocation8 + $0xbd8] sm:$0xf] }
 0x25b   :  { %v7904_v22 = vld [vmem:[#allocation8 + $0xcf0] sm:$0xf0]  ;;  %v7750_v0 = vld [vmem:[#allocation8 + $0xb98] sm:$0xf] }
 0x25c   :  { %v9167_v27 = vld [vmem:[#allocation8 + $0xf14] sm:$0xf]  ;;  %v7907_v23 = vor.u32 %v9095_v1, %v7904_v22  ;;  %4845 = vmatpush.bf16.msrb.mxu3 %v8227_v21  ;;  %4861 = vmatpush.bf16.msra.mxu0 %v6343_v40  ;;  %v4593_v21 = vadd.f32 %v4592_v12, %v4580_v54  ;;  %v7527_v1 = vor.u32 %v9004_v8, %v7526_v6  ;;  %v6566_v22 = vld [vmem:[#allocation8 + $0x258] sm:$0xf] }
 0x25d   :  { %v8192_v28 = vld [vmem:[#allocation8 + $0xf30] sm:$0xf0]  ;;  %v9060_v2 = vld [vmem:[#allocation8 + $0xbb4] sm:$0xf0] }
 0x25e   :  { %v8195_v36 = vor.u32 %v9167_v27, %v8192_v28  ;;  %v9087_v38 = vld [vmem:[#allocation8 + $0xc94] sm:$0xf]  ;;  %4871 = vmatpush.bf16.msra.mxu1 %v6695_v24  ;;  %4834 = vmatpush.bf16.msrb.mxu2 %v7907_v23  ;;  %v8764_v24 = vld [vmem:[#allocation8 + $0x274] sm:$0xf0]  ;;  %v4606_v29 = vadd.f32 %v9694_v4, %v4593_v21  ;;  %v7751_v56 = vor.u32 %v9060_v2, %v7750_v0 }
 0x25f   :  { %v7872_v32 = vld [vmem:[#allocation8 + $0xcb0] sm:$0xf0]  ;;  %v7494_v27 = vld [vmem:[#allocation8 + $0x998] sm:$0xf] }
 0x260   :  { %v9159_v18 = vld [vmem:[#allocation8 + $0xed4] sm:$0xf]  ;;  %v7875_v9 = vor.u32 %v9087_v38, %v7872_v32  ;;  %4846 = vmatpush.bf16.msrb.mxu3 %v8195_v36  ;;  %4862 = vmatpush.bf16.msra.mxu0 %v6311_v60  ;;  %v8996_v28 = vld [vmem:[#allocation8 + $0x9b4] sm:$0xf0]  ;;  %v9698_v4 = vadd.f32 %v4618_v50, %v4606_v29 }
 0x261   :  { %v8160_v43 = vld [vmem:[#allocation8 + $0xef0] sm:$0xf0]  ;;  %v6982_v36 = vld [vmem:[#allocation8 + $0x598] sm:$0xf]  ;;  %v7495_v44 = vor.u32 %v8996_v28, %v7494_v27  ;;  %v4657_v27 = vpop.f32.mrf.mxu0 }
 0x262   :  { %v8163_v51 = vor.u32 %v9159_v18, %v8160_v43  ;;  %v9079_v53 = vld [vmem:[#allocation8 + $0xc54] sm:$0xf]  ;;  %4872 = vmatpush.bf16.msra.mxu1 %v6663_v39  ;;  %4835 = vmatpush.bf16.msrb.mxu2 %v7875_v9  ;;  %v8868_v38 = vld [vmem:[#allocation8 + $0x5b4] sm:$0xf0]  ;;  %v6567_v39 = vor.u32 %v8764_v24, %v6566_v22  ;;  %v4594_v54 = vpop.f32.mrf.mxu3 }
 0x263   :  { %v7840_v47 = vld [vmem:[#allocation8 + $0xc70] sm:$0xf0]  ;;  %v6534_v18 = vld [vmem:[#allocation8 + $0x218] sm:$0xf] }
 0x264   :  { %v9151_v61 = vld [vmem:[#allocation8 + $0xe94] sm:$0xf]  ;;  %v7843_v5 = vor.u32 %v9079_v53, %v7840_v47  ;;  %4847 = vmatpush.bf16.msrb.mxu3 %v8163_v51  ;;  %4863 = vmatpush.bf16.msra.mxu0 %v6279_v15  ;;  %v8756_v43 = vld [vmem:[#allocation8 + $0x234] sm:$0xf0]  ;;  %v6983_v53 = vor.u32 %v8868_v38, %v6982_v36 }
 0x265   :  { %v8128_v62 = vld [vmem:[#allocation8 + $0xeb0] sm:$0xf0]  ;;  %v9068_v9 = vld [vmem:[#allocation8 + $0xbf4] sm:$0xf0]  ;;  %v6535_v57 = vor.u32 %v8756_v43, %v6534_v18 }
 0x266   :  { %v8131_v10 = vor.u32 %v9151_v61, %v8128_v62  ;;  %v9071_v41 = vld [vmem:[#allocation8 + $0xc14] sm:$0xf]  ;;  %4873 = vmatpush.bf16.msra.mxu1 %v6631_v59  ;;  %4836 = vmatpush.bf16.msrb.mxu2 %v7843_v5  ;;  %v8988_v51 = vld [vmem:[#allocation8 + $0x974] sm:$0xf0]  ;;  %v7271_v59 = vor.u32 %v8940_v46, %v7270_v45  ;;  %v7783_v50 = vor.u32 %v9068_v9, %v7782_v49 }
 0x267   :  { %v7808_v11 = vld [vmem:[#allocation8 + $0xc30] sm:$0xf0]  ;;  %4864 = vmatmul.bf16.vlgmr.msra.gmra.mxu0 %v9580_v25  ;;  %v6950_v60 = vld [vmem:[#allocation8 + $0x558] sm:$0xf]  ;;  %v7463_v62 = vor.u32 %v8988_v51, %v7462_v33 }
 0x268   :  { %v9143_v37 = vld [vmem:[#allocation8 + $0xe54] sm:$0xf]  ;;  %v7811_v26 = vor.u32 %v9071_v41, %v7808_v11  ;;  %4848 = vmatpush.bf16.msrb.mxu3 %v8131_v10  ;;  %4908 = vmatpush.bf16.msrb.mxu0 %v7527_v1  ;;  %v8860_v61 = vld [vmem:[#allocation8 + $0x574] sm:$0xf0]  ;;  %v7239_v10 = vor.u32 %v8932_v55, %v7238_v63 }
 0x269   :  { %v8096_v19 = vld [vmem:[#allocation8 + $0xe70] sm:$0xf0]  ;;  %v7430_v5 = vld [vmem:[#allocation8 + $0x918] sm:$0xf]  ;;  %v6951_v8 = vor.u32 %v8860_v61, %v6950_v60  ;;  %v4670_v60 = vpop.f32.mrf.mxu1  ;;  %v4659_v2 = vpop.f32.mrf.mxu0 }
 0x26a   :  { %v8099_v23 = vor.u32 %v9143_v37, %v8096_v19  ;;  %v9135_v32 = vld [vmem:[#allocation8 + $0xe14] sm:$0xf]  ;;  %4874 = vmatpush.bf16.msra.mxu1 %v6599_v14  ;;  %4837 = vmatpush.bf16.msrb.mxu2 %v7811_v26  ;;  %v8980_v6 = vld [vmem:[#allocation8 + $0x934] sm:$0xf0] }
 0x26b   :  { %v8064_v40 = vld [vmem:[#allocation8 + $0xe30] sm:$0xf0]  ;;  %v6918_v41 = vld [vmem:[#allocation8 + $0x518] sm:$0xf]  ;;  %v7431_v12 = vor.u32 %v8980_v6, %v7430_v5 }
 0x26c   :  { %4849 = vmatpush.bf16.msrb.mxu3 %v8099_v23  ;;  %v8067_v47 = vor.u32 %v9135_v32, %v8064_v40  ;;  %4909 = vmatpush.bf16.msrb.mxu0 %v7495_v44  ;;  %v8852_v11 = vld [vmem:[#allocation8 + $0x534] sm:$0xf0]  ;;  %v9704_v32 = vld [vmem:[#allocation10] sm:$0xff] }
 0x26d   :  { %4838 = vmatmul.bf16.vlgmr.msrb.gmra.mxu2 %v9606_v3  ;;  %v7206_v14 = vld [vmem:[#allocation8 + $0x758] sm:$0xf]  ;;  %v6919_v1 = vor.u32 %v8852_v11, %v6918_v41 }
 0x26e   :  { %4882 = vmatpush.bf16.msra.mxu2 %v7015_v35  ;;  %4875 = vmatpush.bf16.msra.mxu1 %v6567_v39  ;;  %v8924_v15 = vld [vmem:[#allocation8 + $0x774] sm:$0xf0]  ;;  %v1660_v39 = vperm.slane %v9704_v32, 4 }
 0x26f   :  { %v7718_v16 = vld [vmem:[#allocation8 + $0xb58] sm:$0xf]  ;;  %v7207_v22 = vor.u32 %v8924_v15, %v7206_v14  ;;  %v8744_v14 = vld [vmem:[#allocation8 + $0x1dc] sm:$0xf] }
 0x270   :  { %4850 = vmatpush.bf16.msrb.mxu3 %v8067_v47  ;;  %4910 = vmatpush.bf16.msrb.mxu0 %v7463_v62  ;;  %v9052_v37 = vld [vmem:[#allocation8 + $0xb74] sm:$0xf0]  ;;  %v4658_v54 = vadd.f32 %v4657_v27, %v1660_v39  ;;  %v6504_v15 = vld [vmem:[#allocation8 + $0x1f8] sm:$0xf0] }
 0x271   :  { %v7398_v19 = vld [vmem:[#allocation8 + $0x8d8] sm:$0xf]  ;;  %v7719_v28 = vor.u32 %v9052_v37, %v7718_v16  ;;  %v4672_v39 = vpop.f32.mrf.mxu1 }
 0x272   :  { %4883 = vmatpush.bf16.msra.mxu2 %v6983_v53  ;;  %4876 = vmatpush.bf16.msra.mxu1 %v6535_v57  ;;  %v8972_v21 = vld [vmem:[#allocation8 + $0x8f4] sm:$0xf0]  ;;  %v9708_v0 = vadd.f32 %v4670_v60, %v4658_v54  ;;  %v8808_v54 = vld [vmem:[#allocation8 + $0x3dc] sm:$0xf] }
 0x273   :  { %4851 = vmatmul.bf16.vlgmr.msrb.gmra.mxu3 %v9610_v13  ;;  %v6886_v24 = vld [vmem:[#allocation8 + $0x4d8] sm:$0xf]  ;;  %v7399_v29 = vor.u32 %v8972_v21, %v7398_v19  ;;  %v4644_v21 = vpop.f32.mrf.mxu3  ;;  %v6440_v60 = vld [vmem:[#allocation8 + $0x178] sm:$0xf0] }
 0x274   :  { %4895 = vmatpush.bf16.msra.mxu3 %v7271_v59  ;;  %v8844_v26 = vld [vmem:[#allocation8 + $0x4f4] sm:$0xf0]  ;;  %4911 = vmatpush.bf16.msrb.mxu0 %v7431_v12  ;;  %v4631_v59 = vpop.f32.mrf.mxu2 }
 0x275   :  { %4877 = vmatmul.bf16.vlgmr.msra.gmra.mxu1 %v9583_v58  ;;  %v7174_v30 = vld [vmem:[#allocation8 + $0x718] sm:$0xf]  ;;  %v6887_v40 = vor.u32 %v8844_v26, %v6886_v24  ;;  %v4632_v55 = vadd.f32 %v4631_v59, %v9698_v4  ;;  %v8728_v59 = vld [vmem:[#allocation8 + $0x15c] sm:$0xf] }
 0x276   :  { %4921 = vmatpush.bf16.msrb.mxu1 %v7783_v50  ;;  %4884 = vmatpush.bf16.msra.mxu2 %v6951_v8  ;;  %v8916_v34 = vld [vmem:[#allocation8 + $0x734] sm:$0xf0] }
 0x277   :  { %v7686_v35 = vld [vmem:[#allocation8 + $0xb18] sm:$0xf]  ;;  %v7175_v18 = vor.u32 %v8916_v34, %v7174_v30 }
 0x278   :  { %4896 = vmatpush.bf16.msra.mxu3 %v7239_v10  ;;  %v9044_v23 = vld [vmem:[#allocation8 + $0xb34] sm:$0xf0]  ;;  %4912 = vmatpush.bf16.msrb.mxu0 %v7399_v29  ;;  %v6507_v29 = vor.u32 %v8744_v14, %v6504_v15  ;;  %v6408_v14 = vld [vmem:[#allocation8 + $0x138] sm:$0xf0] }
 0x279   :  { %v7366_v36 = vld [vmem:[#allocation8 + $0x898] sm:$0xf]  ;;  %v7687_v46 = vor.u32 %v9044_v23, %v7686_v35  ;;  %v8736_v23 = vld [vmem:[#allocation8 + $0x19c] sm:$0xf] }
 0x27a   :  { %4922 = vmatpush.bf16.msrb.mxu1 %v7751_v56  ;;  %v8964_v38 = vld [vmem:[#allocation8 + $0x8b4] sm:$0xf0]  ;;  %4885 = vmatpush.bf16.msra.mxu2 %v6919_v1 }
 0x27b   :  { %v6854_v43 = vld [vmem:[#allocation8 + $0x498] sm:$0xf]  ;;  %v7367_v49 = vor.u32 %v8964_v38, %v7366_v36  ;;  %v6472_v36 = vld [vmem:[#allocation8 + $0x1b8] sm:$0xf0] }
 0x27c   :  { %4897 = vmatpush.bf16.msra.mxu3 %v7207_v22  ;;  %v8836_v44 = vld [vmem:[#allocation8 + $0x4b4] sm:$0xf0]  ;;  %v4633_v38 = vpop.f32.mrf.mxu2 }
 0x27d   :  { %v7142_v45 = vld [vmem:[#allocation8 + $0x6d8] sm:$0xf]  ;;  %v6855_v57 = vor.u32 %v8836_v44, %v6854_v43  ;;  %4913 = vmatpush.bf16.msrb.mxu0 %v7367_v49 }
 0x27e   :  { %4923 = vmatpush.bf16.msrb.mxu1 %v7719_v28  ;;  %v8908_v9 = vld [vmem:[#allocation8 + $0x6f4] sm:$0xf0]  ;;  %4886 = vmatpush.bf16.msra.mxu2 %v6887_v40  ;;  %v9710_v28 = vadd.f32 %v4644_v21, %v4632_v55 }
 0x27f   :  { %v7654_v33 = vld [vmem:[#allocation8 + $0xad8] sm:$0xf]  ;;  %v7143_v61 = vor.u32 %v8908_v9, %v7142_v45 }
 0x280   :  { %v9036_v51 = vld [vmem:[#allocation8 + $0xaf4] sm:$0xf0]  ;;  %4898 = vmatpush.bf16.msra.mxu3 %v7175_v18 }
 0x281   :  { %v7334_v53 = vld [vmem:[#allocation8 + $0x858] sm:$0xf]  ;;  %v7655_v50 = vor.u32 %v9036_v51, %v7654_v33  ;;  %v6475_v51 = vor.u32 %v8736_v23, %v6472_v36  ;;  %v9716_v36 = vpop.f32.mrf.mxu0 }
 0x282   :  { %v8956_v47 = vld [vmem:[#allocation8 + $0x874] sm:$0xf0]  ;;  %4924 = vmatpush.bf16.msrb.mxu1 %v7687_v46  ;;  %4887 = vmatpush.bf16.msra.mxu2 %v6855_v57  ;;  %v6760_v57 = vld [vmem:[#allocation8 + $0x3f8] sm:$0xf0] }
 0x283   :  { %v6822_v62 = vld [vmem:[#allocation8 + $0x458] sm:$0xf]  ;;  %v7335_v5 = vor.u32 %v8956_v47, %v7334_v53 }
 0x284   :  { %v8828_v63 = vld [vmem:[#allocation8 + $0x474] sm:$0xf0]  ;;  %4899 = vmatpush.bf16.msra.mxu3 %v7143_v61 }
 0x285   :  { %v7110_v6 = vld [vmem:[#allocation8 + $0x698] sm:$0xf]  ;;  %v6823_v12 = vor.u32 %v8828_v63, %v6822_v62  ;;  %4914 = vmatpush.bf16.msrb.mxu0 %v7335_v5  ;;  %v4646_v62 = vpop.f32.mrf.mxu3 }
 0x286   :  { %v8900_v8 = vld [vmem:[#allocation8 + $0x6b4] sm:$0xf0]  ;;  %4925 = vmatpush.bf16.msrb.mxu1 %v7655_v50 }
 0x287   :  { %v7622_v10 = vld [vmem:[#allocation8 + $0xa98] sm:$0xf]  ;;  %v7111_v16 = vor.u32 %v8900_v8, %v7110_v6  ;;  %4888 = vmatpush.bf16.msra.mxu2 %v6823_v12  ;;  %v6763_v6 = vor.u32 %v8808_v54, %v6760_v57  ;;  %v6443_v8 = vor.u32 %v8728_v59, %v6440_v60  ;;  %v8720_v12 = vld [vmem:[#allocation8 + $0x11c] sm:$0xf] }
 0x288   :  { %v9028_v41 = vld [vmem:[#allocation8 + $0xab4] sm:$0xf0]  ;;  %v6411_v21 = vor.u32 %v8720_v12, %v6408_v14  ;;  %v8776_v59 = vld [vmem:[#allocation8 + $0x2dc] sm:$0xf] }
 0x289   :  { %v7302_v11 = vld [vmem:[#allocation8 + $0x818] sm:$0xf]  ;;  %v7623_v1 = vor.u32 %v9028_v41, %v7622_v10  ;;  %4900 = vmatpush.bf16.msra.mxu3 %v7111_v16  ;;  %v6632_v60 = vld [vmem:[#allocation8 + $0x2f8] sm:$0xf0] }
 0x28a   :  { %v8948_v56 = vld [vmem:[#allocation8 + $0x834] sm:$0xf0]  ;;  %v8768_v14 = vld [vmem:[#allocation8 + $0x29c] sm:$0xf] }
 0x28b   :  { %v6790_v37 = vld [vmem:[#allocation8 + $0x418] sm:$0xf]  ;;  %v7303_v22 = vor.u32 %v8948_v56, %v7302_v11  ;;  %4926 = vmatpush.bf16.msrb.mxu1 %v7623_v1  ;;  %v8800_v11 = vld [vmem:[#allocation8 + $0x39c] sm:$0xf] }
 0x28c   :  { %v8820_v4 = vld [vmem:[#allocation8 + $0x434] sm:$0xf0]  ;;  %v6728_v56 = vld [vmem:[#allocation8 + $0x3b8] sm:$0xf0] }
 0x28d   :  { %v8038_v19 = vld [vmem:[#allocation8 + $0xdd8] sm:$0xf]  ;;  %v6791_v35 = vor.u32 %v8820_v4, %v6790_v37  ;;  %4915 = vmatpush.bf16.msrb.mxu0 %v7303_v22 }
 0x28e   :  { %v9132_v24 = vld [vmem:[#allocation8 + $0xdf4] sm:$0xf0] }
 0x28f   :  { %v7078_v26 = vld [vmem:[#allocation8 + $0x658] sm:$0xf]  ;;  %v8039_v40 = vor.u32 %v9132_v24, %v8038_v19  ;;  %4889 = vmatpush.bf16.msra.mxu2 %v6791_v35  ;;  %v6731_v19 = vor.u32 %v8800_v11, %v6728_v56  ;;  %v8792_v24 = vld [vmem:[#allocation8 + $0x35c] sm:$0xf] }
 0x290   :  { %v8892_v27 = vld [vmem:[#allocation8 + $0x674] sm:$0xf0]  ;;  %4916 = vmatmul.bf16.vlgmr.msrb.gmra.mxu0 %v9596_v31 }
 0x291   :  { %v7590_v30 = vld [vmem:[#allocation8 + $0xa58] sm:$0xf]  ;;  %v7079_v18 = vor.u32 %v8892_v27, %v7078_v26  ;;  %4960 = vmatpush.bf16.msra.mxu0 %v6507_v29  ;;  %v6696_v26 = vld [vmem:[#allocation8 + $0x378] sm:$0xf0] }
 0x292   :  { %v9020_v34 = vld [vmem:[#allocation8 + $0xa74] sm:$0xf0]  ;;  %4890 = vmatmul.bf16.vlgmr.msra.gmra.mxu2 %v9588_v7  ;;  %v8712_v27 = vld [vmem:[#allocation8 + $0xdc] sm:$0xf]  ;;  %v6699_v38 = vor.u32 %v8792_v24, %v6696_v26  ;;  %v4696_v26 = vpop.f32.mrf.mxu3 }
 0x293   :  { %v8006_v43 = vld [vmem:[#allocation8 + $0xd98] sm:$0xf]  ;;  %v7591_v46 = vor.u32 %v9020_v34, %v7590_v30  ;;  %4934 = vmatpush.bf16.msrb.mxu2 %v8039_v40  ;;  %4901 = vmatpush.bf16.msra.mxu3 %v7079_v18  ;;  %v6376_v29 = vld [vmem:[#allocation8 + $0xf8] sm:$0xf0] }
 0x294   :  { %v9124_v44 = vld [vmem:[#allocation8 + $0xdb4] sm:$0xf0]  ;;  %v6379_v39 = vor.u32 %v8712_v27, %v6376_v29 }
 0x295   :  { %v7046_v45 = vld [vmem:[#allocation8 + $0x618] sm:$0xf]  ;;  %v8007_v61 = vor.u32 %v9124_v44, %v8006_v43  ;;  %4927 = vmatpush.bf16.msrb.mxu1 %v7591_v46  ;;  %4961 = vmatpush.bf16.msra.mxu0 %v6475_v51  ;;  %v8784_v43 = vld [vmem:[#allocation8 + $0x31c] sm:$0xf] }
 0x296   :  { %v8884_v49 = vld [vmem:[#allocation8 + $0x634] sm:$0xf0]  ;;  %v6664_v44 = vld [vmem:[#allocation8 + $0x338] sm:$0xf0] }
 0x297   :  { %v7558_v9 = vld [vmem:[#allocation8 + $0xa18] sm:$0xf]  ;;  %v7047_v50 = vor.u32 %v8884_v49, %v7046_v45  ;;  %4935 = vmatpush.bf16.msrb.mxu2 %v8007_v61  ;;  %v8704_v45 = vld [vmem:[#allocation8 + $0x9c] sm:$0xf] }
 0x298   :  { %v9012_v33 = vld [vmem:[#allocation8 + $0xa34] sm:$0xf0]  ;;  %v6344_v46 = vld [vmem:[#allocation8 + $0xb8] sm:$0xf0] }
 0x299   :  { %v8294_v53 = vld [vmem:[#allocation8 + $0xfd8] sm:$0xf]  ;;  %v7559_v63 = vor.u32 %v9012_v33, %v7558_v9  ;;  %4902 = vmatpush.bf16.msra.mxu3 %v7047_v50  ;;  %4962 = vmatpush.bf16.msra.mxu0 %v6443_v8  ;;  %v8696_v61 = vld [vmem:[#allocation8 + $0x5c] sm:$0xf] }
 0x29a   :  { %v9196_v47 = vld [vmem:[#allocation8 + $0xff4] sm:$0xf0]  ;;  %v6312_v50 = vld [vmem:[#allocation8 + $0x78] sm:$0xf0] }
 0x29b   :  { %v8295_v55 = vor.u32 %v9196_v47, %v8294_v53  ;;  %v7974_v2 = vld [vmem:[#allocation8 + $0xd58] sm:$0xf]  ;;  %4928 = vmatpush.bf16.msrb.mxu1 %v7559_v63  ;;  %v6667_v53 = vor.u32 %v8784_v43, %v6664_v44  ;;  %v6347_v47 = vor.u32 %v8704_v45, %v6344_v46  ;;  %v4683_v63 = vpop.f32.mrf.mxu2  ;;  %v6315_v11 = vor.u32 %v8696_v61, %v6312_v50  ;;  %v8992_v43 = vld [vmem:[#allocation8 + $0x99c] sm:$0xf] }
 0x29c   :  { %v9116_v5 = vld [vmem:[#allocation8 + $0xd74] sm:$0xf0]  ;;  %4903 = vmatmul.bf16.vlgmr.msra.gmra.mxu3 %v9591_v42  ;;  %v4684_v8 = vadd.f32 %v4683_v63, %v9708_v0  ;;  %v8872_v0 = vld [vmem:[#allocation8 + $0x5dc] sm:$0xf] }
 0x29d   :  { %v8262_v10 = vld [vmem:[#allocation8 + $0xf98] sm:$0xf]  ;;  %v7975_v15 = vor.u32 %v9116_v5, %v7974_v2  ;;  %4947 = vmatpush.bf16.msrb.mxu3 %v8295_v55  ;;  %4963 = vmatpush.bf16.msra.mxu0 %v6411_v21  ;;  %v4722_v55 = vpop.f32.mrf.mxu1  ;;  %v7528_v21 = vld [vmem:[#allocation8 + $0x9f8] sm:$0xf0] }
 0x29e   :  { %v9188_v41 = vld [vmem:[#allocation8 + $0xfb4] sm:$0xf0]  ;;  %4929 = vmatmul.bf16.vlgmr.msrb.gmra.mxu1 %v9599_v52  ;;  %v7496_v44 = vld [vmem:[#allocation8 + $0x9b8] sm:$0xf0] }
 0x29f   :  { %v8263_v16 = vor.u32 %v9188_v41, %v8262_v10  ;;  %v7942_v37 = vld [vmem:[#allocation8 + $0xd18] sm:$0xf]  ;;  %4973 = vmatpush.bf16.msra.mxu1 %v6763_v6  ;;  %4936 = vmatpush.bf16.msrb.mxu2 %v7975_v15  ;;  %v4711_v10 = vpop.f32.mrf.mxu0  ;;  %v6635_v41 = vor.u32 %v8776_v59, %v6632_v60  ;;  %v6600_v15 = vld [vmem:[#allocation8 + $0x2b8] sm:$0xf0]  ;;  %v7499_v61 = vor.u32 %v8992_v43, %v7496_v44 }
 0x2a0   :  { %v9108_v4 = vld [vmem:[#allocation8 + $0xd34] sm:$0xf0]  ;;  %v6603_v27 = vor.u32 %v8768_v14, %v6600_v15  ;;  %v8752_v59 = vld [vmem:[#allocation8 + $0x21c] sm:$0xf] }
 0x2a1   :  { %v8230_v1 = vld [vmem:[#allocation8 + $0xf58] sm:$0xf]  ;;  %v7943_v30 = vor.u32 %v9108_v4, %v7942_v37  ;;  %4948 = vmatpush.bf16.msrb.mxu3 %v8263_v16  ;;  %4964 = vmatpush.bf16.msra.mxu0 %v6379_v39  ;;  %v8688_v16 = vld [vmem:[#allocation8 + $0x1c] sm:$0xf] }
 0x2a2   :  { %v9180_v22 = vld [vmem:[#allocation8 + $0xf74] sm:$0xf0]  ;;  %v6280_v37 = vld [vmem:[#allocation8 + $0x38] sm:$0xf0] }
 0x2a3   :  { %v8231_v34 = vor.u32 %v9180_v22, %v8230_v1  ;;  %v7910_v35 = vld [vmem:[#allocation8 + $0xcd8] sm:$0xf]  ;;  %4974 = vmatpush.bf16.msra.mxu1 %v6731_v19  ;;  %4937 = vmatpush.bf16.msrb.mxu2 %v7943_v30  ;;  %v9000_v19 = vld [vmem:[#allocation8 + $0x9dc] sm:$0xf]  ;;  %v6283_v29 = vor.u32 %v8688_v16, %v6280_v37  ;;  %v4685_v46 = vpop.f32.mrf.mxu2 }
 0x2a4   :  { %v9100_v23 = vld [vmem:[#allocation8 + $0xcf4] sm:$0xf0]  ;;  %v7016_v30 = vld [vmem:[#allocation8 + $0x5f8] sm:$0xf0] }
 0x2a5   :  { %v8198_v40 = vld [vmem:[#allocation8 + $0xf18] sm:$0xf]  ;;  %v7911_v49 = vor.u32 %v9100_v23, %v7910_v35  ;;  %4949 = vmatpush.bf16.msrb.mxu3 %v8231_v34  ;;  %4965 = vmatpush.bf16.msra.mxu0 %v6347_v47  ;;  %v4697_v23 = vadd.f32 %v4696_v26, %v4684_v8  ;;  %v8760_v39 = vld [vmem:[#allocation8 + $0x25c] sm:$0xf] }
 0x2a6   :  { %v9172_v18 = vld [vmem:[#allocation8 + $0xf34] sm:$0xf0]  ;;  %v6536_v60 = vld [vmem:[#allocation8 + $0x238] sm:$0xf0] }
 0x2a7   :  { %v8199_v9 = vor.u32 %v9172_v18, %v8198_v40  ;;  %v7878_v33 = vld [vmem:[#allocation8 + $0xc98] sm:$0xf]  ;;  %4975 = vmatpush.bf16.msra.mxu1 %v6699_v38  ;;  %4938 = vmatpush.bf16.msrb.mxu2 %v7911_v49  ;;  %v7531_v38 = vor.u32 %v9000_v19, %v7528_v21  ;;  %v6568_v40 = vld [vmem:[#allocation8 + $0x278] sm:$0xf0]  ;;  %v4710_v45 = vadd.f32 %v9716_v36, %v4697_v23  ;;  %v4724_v49 = vpop.f32.mrf.mxu1  ;;  %v9726_v44 = vpop.f32.mrf.mxu0 }
 0x2a8   :  { %v9092_v51 = vld [vmem:[#allocation8 + $0xcb4] sm:$0xf0]  ;;  %v8936_v50 = vld [vmem:[#allocation8 + $0x7dc] sm:$0xf] }
 0x2a9   :  { %v8166_v54 = vld [vmem:[#allocation8 + $0xed8] sm:$0xf]  ;;  %v7879_v62 = vor.u32 %v9092_v51, %v7878_v33  ;;  %4950 = vmatpush.bf16.msrb.mxu3 %v8199_v9  ;;  %4966 = vmatpush.bf16.msra.mxu0 %v6315_v11  ;;  %v7019_v9 = vor.u32 %v8872_v0, %v7016_v30  ;;  %v8864_v51 = vld [vmem:[#allocation8 + $0x59c] sm:$0xf]  ;;  %v9720_v36 = vadd.f32 %v4722_v55, %v4710_v45 }
 0x2aa   :  { %v9164_v57 = vld [vmem:[#allocation8 + $0xef4] sm:$0xf0]  ;;  %v9064_v63 = vld [vmem:[#allocation8 + $0xbdc] sm:$0xf]  ;;  %v6539_v11 = vor.u32 %v8752_v59, %v6536_v60 }
 0x2ab   :  { %v8167_v2 = vor.u32 %v9164_v57, %v8166_v54  ;;  %v7846_v5 = vld [vmem:[#allocation8 + $0xc58] sm:$0xf]  ;;  %4976 = vmatpush.bf16.msra.mxu1 %v6667_v53  ;;  %4939 = vmatpush.bf16.msrb.mxu2 %v7879_v62  ;;  %v6984_v53 = vld [vmem:[#allocation8 + $0x5b8] sm:$0xf0]  ;;  %v6571_v54 = vor.u32 %v8760_v39, %v6568_v40 }
 0x2ac   :  { %v9084_v6 = vld [vmem:[#allocation8 + $0xc74] sm:$0xf0]  ;;  %v7272_v62 = vld [vmem:[#allocation8 + $0x7f8] sm:$0xf0]  ;;  %v6987_v8 = vor.u32 %v8864_v51, %v6984_v53 }
 0x2ad   :  { %v8134_v56 = vld [vmem:[#allocation8 + $0xe98] sm:$0xf]  ;;  %v7847_v4 = vor.u32 %v9084_v6, %v7846_v5  ;;  %4951 = vmatpush.bf16.msrb.mxu3 %v8167_v2  ;;  %4967 = vmatpush.bf16.msra.mxu0 %v6283_v29  ;;  %v7784_v2 = vld [vmem:[#allocation8 + $0xbf8] sm:$0xf0] }
 0x2ae   :  { %v9156_v12 = vld [vmem:[#allocation8 + $0xeb4] sm:$0xf0]  ;;  %v8984_v5 = vld [vmem:[#allocation8 + $0x95c] sm:$0xf]  ;;  %v7787_v55 = vor.u32 %v9064_v63, %v7784_v2 }
 0x2af   :  { %v8135_v1 = vor.u32 %v9156_v12, %v8134_v56  ;;  %v7814_v22 = vld [vmem:[#allocation8 + $0xc18] sm:$0xf]  ;;  %4977 = vmatpush.bf16.msra.mxu1 %v6635_v41  ;;  %4940 = vmatpush.bf16.msrb.mxu2 %v7847_v4  ;;  %v7464_v6 = vld [vmem:[#allocation8 + $0x978] sm:$0xf0]  ;;  %v4698_v41 = vpop.f32.mrf.mxu3  ;;  %v7275_v56 = vor.u32 %v8936_v50, %v7272_v62 }
 0x2b0   :  { %v9076_v24 = vld [vmem:[#allocation8 + $0xc34] sm:$0xf0]  ;;  %4968 = vmatmul.bf16.vlgmr.msra.gmra.mxu0 %v9580_v25  ;;  %v8856_v12 = vld [vmem:[#allocation8 + $0x55c] sm:$0xf]  ;;  %v7467_v15 = vor.u32 %v8984_v5, %v7464_v6  ;;  %v9730_v41 = vpop.f32.mrf.mxu1 }
 0x2b1   :  { %v8102_v34 = vld [vmem:[#allocation8 + $0xe58] sm:$0xf]  ;;  %v7815_v18 = vor.u32 %v9076_v24, %v7814_v22  ;;  %4952 = vmatpush.bf16.msrb.mxu3 %v8135_v1  ;;  %5012 = vmatpush.bf16.msrb.mxu0 %v7531_v38  ;;  %v6952_v14 = vld [vmem:[#allocation8 + $0x578] sm:$0xf0] }
 0x2b2   :  { %v9148_v35 = vld [vmem:[#allocation8 + $0xe74] sm:$0xf0]  ;;  %v8928_v16 = vld [vmem:[#allocation8 + $0x79c] sm:$0xf]  ;;  %v6955_v22 = vor.u32 %v8856_v12, %v6952_v14  ;;  %v4763_v14 = vpop.f32.mrf.mxu0 }
 0x2b3   :  { %v8103_v33 = vor.u32 %v9148_v35, %v8102_v34  ;;  %v8070_v47 = vld [vmem:[#allocation8 + $0xe18] sm:$0xf]  ;;  %4978 = vmatpush.bf16.msra.mxu1 %v6603_v27  ;;  %4941 = vmatpush.bf16.msrb.mxu2 %v7815_v18  ;;  %v7240_v37 = vld [vmem:[#allocation8 + $0x7b8] sm:$0xf0] }
 0x2b4   :  { %v9140_v57 = vld [vmem:[#allocation8 + $0xe34] sm:$0xf0]  ;;  %v9056_v4 = vld [vmem:[#allocation8 + $0xb9c] sm:$0xf]  ;;  %v7243_v25 = vor.u32 %v8928_v16, %v7240_v37 }
 0x2b5   :  { %4953 = vmatpush.bf16.msrb.mxu3 %v8103_v33  ;;  %v8071_v10 = vor.u32 %v9140_v57, %v8070_v47  ;;  %5013 = vmatpush.bf16.msrb.mxu0 %v7499_v61  ;;  %v7752_v19 = vld [vmem:[#allocation8 + $0xbb8] sm:$0xf0] }
 0x2b6   :  { %4942 = vmatmul.bf16.vlgmr.msrb.gmra.mxu2 %v9606_v3  ;;  %v8976_v21 = vld [vmem:[#allocation8 + $0x91c] sm:$0xf]  ;;  %v7755_v26 = vor.u32 %v9056_v4, %v7752_v19 }
 0x2b7   :  { %4986 = vmatpush.bf16.msra.mxu2 %v7019_v9  ;;  %4979 = vmatpush.bf16.msra.mxu1 %v6571_v54  ;;  %v7432_v1 = vld [vmem:[#allocation8 + $0x938] sm:$0xf0] }
 0x2b8   :  { %v8848_v24 = vld [vmem:[#allocation8 + $0x51c] sm:$0xf]  ;;  %v7435_v27 = vor.u32 %v8976_v21, %v7432_v1 }
 0x2b9   :  { %4954 = vmatpush.bf16.msrb.mxu3 %v8071_v10  ;;  %v6920_v0 = vld [vmem:[#allocation8 + $0x538] sm:$0xf0]  ;;  %5014 = vmatpush.bf16.msrb.mxu0 %v7467_v15  ;;  %v9728_v10 = vpop.f32.mrf.mxu2 }
 0x2ba   :  { %v8920_v29 = vld [vmem:[#allocation8 + $0x75c] sm:$0xf]  ;;  %v6923_v39 = vor.u32 %v8848_v24, %v6920_v0 }
 0x2bb   :  { %4987 = vmatpush.bf16.msra.mxu2 %v6987_v8  ;;  %4980 = vmatpush.bf16.msra.mxu1 %v6539_v11  ;;  %v7208_v30 = vld [vmem:[#allocation8 + $0x778] sm:$0xf0] }
 0x2bc   :  { %v9048_v34 = vld [vmem:[#allocation8 + $0xb5c] sm:$0xf]  ;;  %4955 = vmatmul.bf16.vlgmr.msrb.gmra.mxu3 %v9610_v13  ;;  %v7211_v40 = vor.u32 %v8920_v29, %v7208_v30 }
 0x2bd   :  { %4999 = vmatpush.bf16.msra.mxu3 %v7275_v56  ;;  %v7720_v35 = vld [vmem:[#allocation8 + $0xb78] sm:$0xf0]  ;;  %5015 = vmatpush.bf16.msrb.mxu0 %v7435_v27  ;;  %v9732_v27 = vpop.f32.mrf.mxu3 }
 0x2be   :  { %v8968_v23 = vld [vmem:[#allocation8 + $0x8dc] sm:$0xf]  ;;  %4981 = vmatmul.bf16.vlgmr.msra.gmra.mxu1 %v9583_v58  ;;  %v7723_v45 = vor.u32 %v9048_v34, %v7720_v35 }
 0x2bf   :  { %5025 = vmatpush.bf16.msrb.mxu1 %v7787_v55  ;;  %v7400_v38 = vld [vmem:[#allocation8 + $0x8f8] sm:$0xf0]  ;;  %4988 = vmatpush.bf16.msra.mxu2 %v6955_v22 }
 0x2c0   :  { %v8840_v18 = vld [vmem:[#allocation8 + $0x4dc] sm:$0xf]  ;;  %v7403_v46 = vor.u32 %v8968_v23, %v7400_v38  ;;  %v9204_v38 = vld [vmem:[#allocation11 + $0x38] sm:$0xff] }
 0x2c1   :  { %5000 = vmatpush.bf16.msra.mxu3 %v7243_v25  ;;  %v6888_v43 = vld [vmem:[#allocation8 + $0x4f8] sm:$0xf0] }
 0x2c2   :  { %v8912_v49 = vld [vmem:[#allocation8 + $0x71c] sm:$0xf]  ;;  %v6891_v58 = vor.u32 %v8840_v18, %v6888_v43  ;;  %5016 = vmatpush.bf16.msrb.mxu0 %v7403_v46  ;;  %v4737_v43 = vpop.f32.mrf.mxu2 }
 0x2c3   :  { %5026 = vmatpush.bf16.msrb.mxu1 %v7755_v26  ;;  %v7176_v9 = vld [vmem:[#allocation8 + $0x738] sm:$0xf0]  ;;  %4989 = vmatpush.bf16.msra.mxu2 %v6923_v39 }
 0x2c4   :  { %v9040_v33 = vld [vmem:[#allocation8 + $0xb1c] sm:$0xf]  ;;  %v7179_v54 = vor.u32 %v8912_v49, %v7176_v9 }
 0x2c5   :  { %v7688_v51 = vld [vmem:[#allocation8 + $0xb38] sm:$0xf0]  ;;  %5001 = vmatpush.bf16.msra.mxu3 %v7211_v40 }
 0x2c6   :  { %v8960_v53 = vld [vmem:[#allocation8 + $0x89c] sm:$0xf]  ;;  %v7691_v60 = vor.u32 %v9040_v33, %v7688_v51 }
 0x2c7   :  { %v7368_v47 = vld [vmem:[#allocation8 + $0x8b8] sm:$0xf0]  ;;  %5027 = vmatpush.bf16.msrb.mxu1 %v7723_v45  ;;  %4990 = vmatpush.bf16.msra.mxu2 %v6891_v58  ;;  %v4776_v45 = vpop.f32.mrf.mxu1 }
 0x2c8   :  { %v8832_v57 = vld [vmem:[#allocation8 + $0x49c] sm:$0xf]  ;;  %v7371_v61 = vor.u32 %v8960_v53, %v7368_v47 }
 0x2c9   :  { %v6856_v59 = vld [vmem:[#allocation8 + $0x4b8] sm:$0xf0]  ;;  %5002 = vmatpush.bf16.msra.mxu3 %v7179_v54 }
 0x2ca   :  { %v8904_v50 = vld [vmem:[#allocation8 + $0x6dc] sm:$0xf]  ;;  %v6859_v8 = vor.u32 %v8832_v57, %v6856_v59  ;;  %5017 = vmatpush.bf16.msrb.mxu0 %v7371_v61 }
 0x2cb   :  { %v7144_v62 = vld [vmem:[#allocation8 + $0x6f8] sm:$0xf0]  ;;  %5028 = vmatpush.bf16.msrb.mxu1 %v7691_v60 }
 0x2cc   :  { %v9032_v63 = vld [vmem:[#allocation8 + $0xadc] sm:$0xf]  ;;  %v7147_v11 = vor.u32 %v8904_v50, %v7144_v62  ;;  %4991 = vmatpush.bf16.msra.mxu2 %v6859_v8  ;;  %v4750_v62 = vpop.f32.mrf.mxu3 }
 0x2cd   :  { %v7656_v2 = vld [vmem:[#allocation8 + $0xaf8] sm:$0xf0] }
 0x2ce   :  { %v8952_v5 = vld [vmem:[#allocation8 + $0x85c] sm:$0xf]  ;;  %v7659_v55 = vor.u32 %v9032_v63, %v7656_v2  ;;  %5003 = vmatpush.bf16.msra.mxu3 %v7147_v11  ;;  %v9202_v11 = vld [vmem:[#allocation11 + $0x28] sm:$0xff] }
 0x2cf   :  { %v7336_v6 = vld [vmem:[#allocation8 + $0x878] sm:$0xf0] }
 0x2d0   :  { %v8824_v56 = vld [vmem:[#allocation8 + $0x45c] sm:$0xf]  ;;  %v7339_v15 = vor.u32 %v8952_v5, %v7336_v6  ;;  %5029 = vmatpush.bf16.msrb.mxu1 %v7659_v55  ;;  %v9212_v5 = vld [vmem:[#allocation11 + $0x78] sm:$0xff] }
 0x2d1   :  { %v6824_v12 = vld [vmem:[#allocation8 + $0x478] sm:$0xf0] }
 0x2d2   :  { %v8896_v16 = vld [vmem:[#allocation8 + $0x69c] sm:$0xf]  ;;  %v6827_v22 = vor.u32 %v8824_v56, %v6824_v12  ;;  %5018 = vmatpush.bf16.msrb.mxu0 %v7339_v15  ;;  %v9742_v43 = vpop.f32.mrf.mxu1 }
 0x2d3   :  { %v7112_v37 = vld [vmem:[#allocation8 + $0x6b8] sm:$0xf0] }
 0x2d4   :  { %v9024_v4 = vld [vmem:[#allocation8 + $0xa9c] sm:$0xf]  ;;  %v7115_v25 = vor.u32 %v8896_v16, %v7112_v37  ;;  %4992 = vmatpush.bf16.msra.mxu2 %v6827_v22  ;;  %v9201_v37 = vld [vmem:[#allocation11 + $0x20] sm:$0xff] }
 0x2d5   :  { %v7624_v19 = vld [vmem:[#allocation8 + $0xab8] sm:$0xf0] }
 0x2d6   :  { %v8944_v21 = vld [vmem:[#allocation8 + $0x81c] sm:$0xf]  ;;  %v7627_v29 = vor.u32 %v9024_v4, %v7624_v19  ;;  %5004 = vmatpush.bf16.msra.mxu3 %v7115_v25 }
 0x2d7   :  { %v7304_v1 = vld [vmem:[#allocation8 + $0x838] sm:$0xf0] }
 0x2d8   :  { %v8816_v24 = vld [vmem:[#allocation8 + $0x41c] sm:$0xf]  ;;  %v7307_v30 = vor.u32 %v8944_v21, %v7304_v1  ;;  %5030 = vmatpush.bf16.msrb.mxu1 %v7627_v29  ;;  %v9210_v1 = vld [vmem:[#allocation11 + $0x68] sm:$0xff] }
 0x2d9   :  { %v6792_v0 = vld [vmem:[#allocation8 + $0x438] sm:$0xf0] }
 0x2da   :  { %v9128_v26 = vld [vmem:[#allocation8 + $0xddc] sm:$0xf]  ;;  %v6795_v18 = vor.u32 %v8816_v24, %v6792_v0  ;;  %5019 = vmatpush.bf16.msrb.mxu0 %v7307_v30  ;;  %v9738_v24 = vpop.f32.mrf.mxu0  ;;  %v9200_v0 = vld [vmem:[#allocation11 + $0x18] sm:$0xff] }
 0x2db   :  { %v8040_v34 = vld [vmem:[#allocation8 + $0xdf8] sm:$0xf0] }
 0x2dc   :  { %v8888_v35 = vld [vmem:[#allocation8 + $0x65c] sm:$0xf]  ;;  %v8043_v46 = vor.u32 %v9128_v26, %v8040_v34  ;;  %4993 = vmatpush.bf16.msra.mxu2 %v6795_v18  ;;  %v9209_v34 = vld [vmem:[#allocation11 + $0x60] sm:$0xff]  ;;  %v9740_v18 = vpop.f32.mrf.mxu2 }
 0x2dd   :  { %v7080_v23 = vld [vmem:[#allocation8 + $0x678] sm:$0xf0]  ;;  %5020 = vmatmul.bf16.vlgmr.msrb.gmra.mxu0 %v9596_v31 }
 0x2de   :  { %v9016_v39 = vld [vmem:[#allocation8 + $0xa5c] sm:$0xf]  ;;  %v7083_v49 = vor.u32 %v8888_v35, %v7080_v23  ;;  %5596 = vmatpush.bf16.msra.mxu0 %v9204_v38 }
 0x2df   :  { %v7592_v40 = vld [vmem:[#allocation8 + $0xa78] sm:$0xf0]  ;;  %4994 = vmatmul.bf16.vlgmr.msra.gmra.mxu2 %v9588_v7 }
 0x2e0   :  { %v9120_v9 = vld [vmem:[#allocation8 + $0xd9c] sm:$0xf]  ;;  %v7595_v53 = vor.u32 %v9016_v39, %v7592_v40  ;;  %5038 = vmatpush.bf16.msrb.mxu2 %v8043_v46  ;;  %5005 = vmatpush.bf16.msra.mxu3 %v7083_v49  ;;  %v9208_v46 = vld [vmem:[#allocation11 + $0x58] sm:$0xff] }
 0x2e1   :  { %v8008_v33 = vld [vmem:[#allocation8 + $0xdb8] sm:$0xf0] }
 0x2e2   :  { %v9203_v51 = vld [vmem:[#allocation11 + $0x30] sm:$0xff]  ;;  %v8011_v61 = vor.u32 %v9120_v9, %v8008_v33  ;;  %5031 = vmatpush.bf16.msrb.mxu1 %v7595_v53  ;;  %v4815_v33 = vpop.f32.mrf.mxu0 }
 0x2e3   :  { %v8880_v47 = vld [vmem:[#allocation8 + $0x61c] sm:$0xf]  ;;  %5597 = vmatpush.bf16.msra.mxu0 %v9203_v51  ;;  %v9198_v51 = vld [vmem:[#allocation11 + $0x8] sm:$0xff] }
 0x2e4   :  { %v7048_v58 = vld [vmem:[#allocation8 + $0x638] sm:$0xf0]  ;;  %5039 = vmatpush.bf16.msrb.mxu2 %v8011_v61  ;;  %v9744_v61 = vpop.f32.mrf.mxu3 }
 0x2e5   :  { %v9008_v54 = vld [vmem:[#allocation8 + $0xa1c] sm:$0xf]  ;;  %v7051_v50 = vor.u32 %v8880_v47, %v7048_v58 }
 0x2e6   :  { %v7560_v57 = vld [vmem:[#allocation8 + $0xa38] sm:$0xf0] }
 0x2e7   :  { %v9192_v59 = vld [vmem:[#allocation8 + $0xfdc] sm:$0xf]  ;;  %v7563_v63 = vor.u32 %v9008_v54, %v7560_v57  ;;  %5006 = vmatpush.bf16.msra.mxu3 %v7051_v50  ;;  %5598 = vmatpush.bf16.msra.mxu0 %v9202_v11  ;;  %v9197_v50 = vld [vmem:[#allocation11] sm:$0xff]  ;;  %v4828_v11 = vpop.f32.mrf.mxu1 }
 0x2e8   :  { %v8296_v60 = vld [vmem:[#allocation8 + $0xff8] sm:$0xf0] }
 0x2e9   :  { %v8299_v2 = vor.u32 %v9192_v59, %v8296_v60  ;;  %v9112_v6 = vld [vmem:[#allocation8 + $0xd5c] sm:$0xf]  ;;  %5032 = vmatpush.bf16.msrb.mxu1 %v7563_v63 }
 0x2ea   :  { %v7976_v8 = vld [vmem:[#allocation8 + $0xd78] sm:$0xf0]  ;;  %5007 = vmatmul.bf16.vlgmr.msra.gmra.mxu3 %v9591_v42 }
 0x2eb   :  { %v9184_v56 = vld [vmem:[#allocation8 + $0xf9c] sm:$0xf]  ;;  %v7979_v14 = vor.u32 %v9112_v6, %v7976_v8  ;;  %5051 = vmatpush.bf16.msrb.mxu3 %v8299_v2  ;;  %5599 = vmatpush.bf16.msra.mxu0 %v9201_v37  ;;  %v9236_v2 = vld [vmem:[#allocation11 + $0x138] sm:$0xff]  ;;  %v4789_v8 = vpop.f32.mrf.mxu2 }
 0x2ec   :  { %v8264_v12 = vld [vmem:[#allocation8 + $0xfb8] sm:$0xf0]  ;;  %5033 = vmatmul.bf16.vlgmr.msrb.gmra.mxu1 %v9599_v52 }
 0x2ed   :  { %v8267_v55 = vor.u32 %v9184_v56, %v8264_v12  ;;  %v9211_v15 = vld [vmem:[#allocation11 + $0x70] sm:$0xff]  ;;  %5609 = vmatpush.bf16.msra.mxu1 %v9212_v5  ;;  %5040 = vmatpush.bf16.msrb.mxu2 %v7979_v14  ;;  %v5064_v5 = vmax.f32 %v9651_v48, 0.0  ;;  %v9220_v56 = vld [vmem:[#allocation11 + $0xb8] sm:$0xff]  ;;  %v9206_v14 = vld [vmem:[#allocation11 + $0x48] sm:$0xff] }
 0x2ee   :  { %v9104_v16 = vld [vmem:[#allocation8 + $0xd1c] sm:$0xf] }
 0x2ef   :  { %v7944_v31 = vld [vmem:[#allocation8 + $0xd38] sm:$0xf0]  ;;  %5052 = vmatpush.bf16.msrb.mxu3 %v8267_v55  ;;  %5600 = vmatpush.bf16.msra.mxu0 %v9200_v0  ;;  %v1661_v0 = vperm.slane %v9704_v32, 5  ;;  %v9242_v32 = vld [vmem:[#allocation11 + $0x168] sm:$0xff] }
 0x2f0   :  { %v9176_v4 = vld [vmem:[#allocation8 + $0xf5c] sm:$0xf]  ;;  %v7947_v7 = vor.u32 %v9104_v16, %v7944_v31  ;;  %v5072_v31 = vpack.c.bf16 %v5064_v5, %v5064_v5  ;;  %v9238_v5 = vld [vmem:[#allocation11 + $0x148] sm:$0xff] }
 0x2f1   :  { %v8232_v19 = vld [vmem:[#allocation8 + $0xf78] sm:$0xf0]  ;;  %5610 = vmatpush.bf16.msra.mxu1 %v9211_v15 }
 0x2f2   :  { %v8235_v21 = vor.u32 %v9176_v4, %v8232_v19  ;;  %v9096_v22 = vld [vmem:[#allocation8 + $0xcdc] sm:$0xf]  ;;  %5041 = vmatpush.bf16.msrb.mxu2 %v7947_v7  ;;  %v4802_v4 = vpop.f32.mrf.mxu3  ;;  %v9205_v19 = vld [vmem:[#allocation11 + $0x40] sm:$0xff]  ;;  %v9228_v7 = vld [vmem:[#allocation11 + $0xf8] sm:$0xff]  ;;  %v9759_v33 = vpop.f32.mrf.mxu1 }
 0x2f3   :  { %v7912_v25 = vld [vmem:[#allocation8 + $0xcf8] sm:$0xf0] }
 0x2f4   :  { %v9168_v26 = vld [vmem:[#allocation8 + $0xf1c] sm:$0xf]  ;;  %v7915_v30 = vor.u32 %v9096_v22, %v7912_v25  ;;  %5053 = vmatpush.bf16.msrb.mxu3 %v8235_v21  ;;  %v5065_v21 = vmax.f32 %v9665_v17, 0.0  ;;  %v9234_v22 = vld [vmem:[#allocation11 + $0x128] sm:$0xff]  ;;  %v4762_v17 = vadd.f32 %v9726_v44, %v1661_v0 }
 0x2f5   :  { %v8200_v29 = vld [vmem:[#allocation8 + $0xf38] sm:$0xf0]  ;;  %5611 = vmatpush.bf16.msra.mxu1 %v9210_v1  ;;  %v9244_v1 = vld [vmem:[#allocation11 + $0x178] sm:$0xff]  ;;  %v9218_v25 = vld [vmem:[#allocation11 + $0xa8] sm:$0xff] }
 0x2f6   :  { %v8203_v42 = vor.u32 %v9168_v26, %v8200_v29  ;;  %v9088_v52 = vld [vmem:[#allocation8 + $0xc9c] sm:$0xf]  ;;  %5042 = vmatpush.bf16.msrb.mxu2 %v7915_v30  ;;  %v5073_v29 = vpack.c.bf16 %v5065_v21, %v5065_v21 }
 0x2f7   :  { %v7880_v35 = vld [vmem:[#allocation8 + $0xcb8] sm:$0xf0] }
 0x2f8   :  { %v9199_v23 = vld [vmem:[#allocation11 + $0x10] sm:$0xff]  ;;  %v7883_v40 = vor.u32 %v9088_v52, %v7880_v35  ;;  %5054 = vmatpush.bf16.msrb.mxu3 %v8203_v42  ;;  %v9233_v42 = vld [vmem:[#allocation11 + $0x120] sm:$0xff]  ;;  %v9752_v52 = vpop.f32.mrf.mxu0  ;;  %v9232_v35 = vld [vmem:[#allocation11 + $0x118] sm:$0xff] }
 0x2f9   :  { %v9160_v38 = vld [vmem:[#allocation8 + $0xedc] sm:$0xf]  ;;  %5612 = vmatpush.bf16.msra.mxu1 %v9209_v34  ;;  %5601 = vmatpush.bf16.msra.mxu0 %v9199_v23  ;;  %v9226_v34 = vld [vmem:[#allocation11 + $0xe8] sm:$0xff]  ;;  %v4775_v23 = vadd.f32 %v9730_v41, %v4762_v17  ;;  %v9224_v41 = vld [vmem:[#allocation11 + $0xd8] sm:$0xff] }
 0x2fa   :  { %v8168_v39 = vld [vmem:[#allocation8 + $0xef8] sm:$0xf0]  ;;  %5043 = vmatpush.bf16.msrb.mxu2 %v7883_v40  ;;  %v9241_v40 = vld [vmem:[#allocation11 + $0x160] sm:$0xff] }
 0x2fb   :  { %v8171_v45 = vor.u32 %v9160_v38, %v8168_v39  ;;  %v9080_v49 = vld [vmem:[#allocation8 + $0xc5c] sm:$0xf]  ;;  %v9216_v38 = vld [vmem:[#allocation11 + $0x98] sm:$0xff]  ;;  %v4788_v39 = vadd.f32 %v9740_v18, %v4775_v23 }
 0x2fc   :  { %v7848_v9 = vld [vmem:[#allocation8 + $0xc78] sm:$0xf0] }
 0x2fd   :  { %v9152_v53 = vld [vmem:[#allocation8 + $0xe9c] sm:$0xf]  ;;  %v7851_v58 = vor.u32 %v9080_v49, %v7848_v9  ;;  %5055 = vmatpush.bf16.msrb.mxu3 %v8171_v45  ;;  %5613 = vmatpush.bf16.msra.mxu1 %v9208_v46  ;;  %v4801_v45 = vadd.f32 %v9744_v61, %v4788_v39  ;;  %v4736_v49 = vadd.f32 %v9728_v10, %v9720_v36  ;;  %v4839_v9 = vpop.f32.mrf.mxu2  ;;  %v4852_v36 = vpop.f32.mrf.mxu3 }
 0x2fe   :  { %v8136_v47 = vld [vmem:[#allocation8 + $0xeb8] sm:$0xf0]  ;;  %5602 = vmatpush.bf16.msra.mxu0 %v9198_v51  ;;  %v9240_v51 = vld [vmem:[#allocation11 + $0x158] sm:$0xff] }
 0x2ff   :  { %v8139_v54 = vor.u32 %v9152_v53, %v8136_v47  ;;  %v9207_v57 = vld [vmem:[#allocation11 + $0x50] sm:$0xff]  ;;  %5044 = vmatpush.bf16.msrb.mxu2 %v7851_v58  ;;  %v9230_v53 = vld [vmem:[#allocation11 + $0x108] sm:$0xff]  ;;  %v4749_v47 = vadd.f32 %v9732_v27, %v4736_v49  ;;  %v4814_v58 = vadd.f32 %v9738_v24, %v4801_v45  ;;  %v9260_v49 = vld [vmem:[#allocation11 + $0x1f8] sm:$0xff] }
 0x300   :  { %v9072_v59 = vld [vmem:[#allocation8 + $0xc1c] sm:$0xf]  ;;  %v4867_v18 = vpop.f32.mrf.mxu0  ;;  %v9222_v24 = vld [vmem:[#allocation11 + $0xc8] sm:$0xff] }
 0x301   :  { %v7816_v60 = vld [vmem:[#allocation8 + $0xc38] sm:$0xf0]  ;;  %5056 = vmatpush.bf16.msrb.mxu3 %v8139_v54  ;;  %5614 = vmatpush.bf16.msra.mxu1 %v9207_v57  ;;  %v9214_v54 = vld [vmem:[#allocation11 + $0x88] sm:$0xff]  ;;  %v4827_v61 = vadd.f32 %v9742_v43, %v4814_v58  ;;  %v9221_v43 = vld [vmem:[#allocation11 + $0xc0] sm:$0xff] }
 0x302   :  { %v9144_v62 = vld [vmem:[#allocation8 + $0xe5c] sm:$0xf]  ;;  %v7819_v6 = vor.u32 %v9072_v59, %v7816_v60  ;;  %5603 = vmatpush.bf16.msra.mxu0 %v9197_v50  ;;  %v9229_v59 = vld [vmem:[#allocation11 + $0x100] sm:$0xff]  ;;  %v5068_v60 = vmax.f32 %v4749_v47, 0.0 }
 0x303   :  { %v8104_v63 = vld [vmem:[#allocation8 + $0xe78] sm:$0xf0]  ;;  %v9213_v50 = vld [vmem:[#allocation11 + $0x80] sm:$0xff] }
 0x304   :  { %v8107_v12 = vor.u32 %v9144_v62, %v8104_v63  ;;  %v9136_v55 = vld [vmem:[#allocation8 + $0xe1c] sm:$0xf]  ;;  %5045 = vmatpush.bf16.msrb.mxu2 %v7819_v6  ;;  %v5066_v62 = vmax.f32 %v9688_v20, 0.0  ;;  %v4840_v63 = vadd.f32 %v4839_v9, %v4827_v61  ;;  %v9252_v6 = vld [vmem:[#allocation11 + $0x1b8] sm:$0xff]  ;;  %v5076_v8 = vpack.c.bf16 %v5068_v60, %v5068_v60  ;;  %v9257_v58 = vld [vmem:[#allocation11 + $0x1e0] sm:$0xff] }
 0x305   :  { %v8072_v15 = vld [vmem:[#allocation8 + $0xe38] sm:$0xf0]  ;;  %5615 = vmatpush.bf16.msra.mxu1 %v9206_v14  ;;  %5604 = vmatmul.bf16.vlgmr.msra.gmra.mxu0 %v5072_v31  ;;  %v4841_v27 = vpop.f32.mrf.mxu2  ;;  %v4854_v20 = vpop.f32.mrf.mxu3  ;;  %v9237_v14 = vld [vmem:[#allocation11 + $0x140] sm:$0xff]  ;;  %v9250_v31 = vld [vmem:[#allocation11 + $0x1a8] sm:$0xff] }
 0x306   :  { %5648 = vmatpush.bf16.msrb.mxu0 %v9236_v2  ;;  %v9235_v16 = vld [vmem:[#allocation11 + $0x130] sm:$0xff]  ;;  %5057 = vmatpush.bf16.msrb.mxu3 %v8107_v12  ;;  %v8075_v48 = vor.u32 %v9136_v55, %v8072_v15  ;;  %v4880_v2 = vpop.f32.mrf.mxu1  ;;  %v4853_v11 = vadd.f32 %v4852_v36, %v4840_v63  ;;  %v5067_v12 = vmax.f32 %v9710_v28, 0.0  ;;  %v9248_v28 = vld [vmem:[#allocation11 + $0x198] sm:$0xff]  ;;  %v9254_v61 = vld [vmem:[#allocation11 + $0x1c8] sm:$0xff] }
 0x307   :  { %v9219_v37 = vld [vmem:[#allocation11 + $0xb0] sm:$0xff]  ;;  %5046 = vmatmul.bf16.vlgmr.msrb.gmra.mxu2 %v9606_v3  ;;  %v9217_v3 = vld [vmem:[#allocation11 + $0xa0] sm:$0xff] }
 0x308   :  { %5622 = vmatpush.bf16.msra.mxu2 %v9220_v56  ;;  %v9227_v26 = vld [vmem:[#allocation11 + $0xf0] sm:$0xff]  ;;  %v5074_v56 = vpack.c.bf16 %v5066_v62, %v5066_v62  ;;  %v5069_v15 = vmax.f32 %v4853_v11, 0.0  ;;  %v9253_v62 = vld [vmem:[#allocation11 + $0x1c0] sm:$0xff] }
 0x309   :  { %5616 = vmatpush.bf16.msra.mxu1 %v9205_v19  ;;  %v9243_v30 = vld [vmem:[#allocation11 + $0x170] sm:$0xff] }
 0x30a   :  { %5649 = vmatpush.bf16.msrb.mxu0 %v9235_v16  ;;  %5058 = vmatpush.bf16.msrb.mxu3 %v8075_v48  ;;  %v9231_v44 = vld [vmem:[#allocation11 + $0x110] sm:$0xff]  ;;  %v5075_v16 = vpack.c.bf16 %v5067_v12, %v5067_v12  ;;  %v9249_v48 = vld [vmem:[#allocation11 + $0x1a0] sm:$0xff] }
 0x30b   :  { %v9215_v46 = vld [vmem:[#allocation11 + $0x90] sm:$0xff] }
 0x30c   :  { %5623 = vmatpush.bf16.msra.mxu2 %v9219_v37  ;;  %5617 = vmatmul.bf16.vlgmr.msra.gmra.mxu1 %v5073_v29  ;;  %v9223_v57 = vld [vmem:[#allocation11 + $0xd0] sm:$0xff]  ;;  %v5077_v37 = vpack.c.bf16 %v5069_v15, %v5069_v15  ;;  %v9245_v29 = vld [vmem:[#allocation11 + $0x180] sm:$0xff] }
 0x30d   :  { %5661 = vmatpush.bf16.msrb.mxu1 %v9244_v1  ;;  %5059 = vmatmul.bf16.vlgmr.msrb.gmra.mxu3 %v9610_v13  ;;  %v9225_v13 = vld [vmem:[#allocation11 + $0xe0] sm:$0xff]  ;;  %v9239_v10 = vld [vmem:[#allocation11 + $0x150] sm:$0xff]  ;;  %v4917_v4 = vpop.f32.mrf.mxu0 }
 0x30e   :  { %5635 = vmatpush.bf16.msra.mxu3 %v9228_v7  ;;  %5650 = vmatpush.bf16.msrb.mxu0 %v9234_v22  ;;  %v9251_v55 = vld [vmem:[#allocation11 + $0x1b0] sm:$0xff]  ;;  %v9246_v22 = vld [vmem:[#allocation11 + $0x188] sm:$0xff] }
 0x30f   :  { %v9247_v21 = vld [vmem:[#allocation11 + $0x190] sm:$0xff] }
 0x310   :  { %5624 = vmatpush.bf16.msra.mxu2 %v9218_v25  ;;  %v9255_v36 = vld [vmem:[#allocation11 + $0x1d0] sm:$0xff] }
 0x311   :  { %5662 = vmatpush.bf16.msrb.mxu1 %v9243_v30  ;;  %v9280_v30 = vld [vmem:[#allocation10] sm:$0xff] }
 0x312   :  { %5636 = vmatpush.bf16.msra.mxu3 %v9227_v26  ;;  %5651 = vmatpush.bf16.msrb.mxu0 %v9233_v42  ;;  %v1662_v42 = vperm.slane %v9280_v30, 6  ;;  %v1663_v2 = vperm.slane %v9280_v30, 7 }
 0x314   :  { %5625 = vmatpush.bf16.msra.mxu2 %v9217_v3  ;;  %v4866_v17 = vadd.f32 %v9752_v52, %v1662_v42  ;;  %v9259_v52 = vld [vmem:[#allocation11 + $0x1f0] sm:$0xff] }
 0x315   :  { %5663 = vmatpush.bf16.msrb.mxu1 %v9242_v32  ;;  %v4891_v19 = vpop.f32.mrf.mxu2  ;;  %v4919_v1 = vpop.f32.mrf.mxu0 }
 0x316   :  { %5637 = vmatpush.bf16.msra.mxu3 %v9226_v34  ;;  %5652 = vmatpush.bf16.msrb.mxu0 %v9232_v35  ;;  %v4879_v34 = vadd.f32 %v9759_v33, %v4866_v17  ;;  %v9258_v33 = vld [vmem:[#allocation11 + $0x1e8] sm:$0xff] }
 0x318   :  { %5626 = vmatpush.bf16.msra.mxu2 %v9216_v38  ;;  %v4892_v32 = vadd.f32 %v4891_v19, %v4879_v34 }
 0x319   :  { %5664 = vmatpush.bf16.msrb.mxu1 %v9241_v40 }
 0x31a   :  { %5638 = vmatpush.bf16.msra.mxu3 %v9225_v13  ;;  %5653 = vmatpush.bf16.msrb.mxu0 %v9231_v44 }
 0x31b   :  { %v4930_v7 = vpop.f32.mrf.mxu1 }
 0x31c   :  { %5627 = vmatpush.bf16.msra.mxu2 %v9215_v46 }
 0x31d   :  { %5665 = vmatpush.bf16.msrb.mxu1 %v9240_v51  ;;  %v4893_v0 = vpop.f32.mrf.mxu2 }
 0x31e   :  { %5639 = vmatpush.bf16.msra.mxu3 %v9224_v41  ;;  %5654 = vmatpush.bf16.msrb.mxu0 %v9230_v53 }
 0x31f   :  { %v4904_v25 = vpop.f32.mrf.mxu3 }
 0x320   :  { %5628 = vmatpush.bf16.msra.mxu2 %v9214_v54  ;;  %v4905_v23 = vadd.f32 %v4904_v25, %v4892_v32  ;;  %v9256_v54 = vld [vmem:[#allocation11 + $0x1d8] sm:$0xff] }
 0x321   :  { %5666 = vmatpush.bf16.msrb.mxu1 %v9239_v10 }
 0x322   :  { %5640 = vmatpush.bf16.msra.mxu3 %v9223_v57  ;;  %5655 = vmatpush.bf16.msrb.mxu0 %v9229_v59  ;;  %v4918_v38 = vadd.f32 %v4917_v4, %v4905_v23 }
 0x323   :  { %v4932_v26 = vpop.f32.mrf.mxu1 }
 0x324   :  { %5629 = vmatpush.bf16.msra.mxu2 %v9213_v50  ;;  %v4931_v44 = vadd.f32 %v4930_v7, %v4918_v38 }
 0x325   :  { %5656 = vmatmul.bf16.vlgmr.msrb.gmra.mxu0 %v5076_v8  ;;  %5667 = vmatpush.bf16.msrb.mxu1 %v9238_v5 }
 0x326   :  { %5641 = vmatpush.bf16.msra.mxu3 %v9222_v24 }
 0x327   :  { %5630 = vmatmul.bf16.vlgmr.msra.gmra.mxu2 %v5074_v56  ;;  %v4906_v3 = vpop.f32.mrf.mxu3 }
 0x328   :  { %5674 = vmatpush.bf16.msrb.mxu2 %v9252_v6 }
 0x329   :  { %5668 = vmatpush.bf16.msrb.mxu1 %v9237_v14 }
 0x32a   :  { %5642 = vmatpush.bf16.msra.mxu3 %v9221_v43  ;;  %v9273_v43 = vld [vmem:[#allocation13] ss:$0 sm:$0xff] }
 0x32c   :  { %5675 = vmatpush.bf16.msrb.mxu2 %v9251_v55  ;;  %5669 = vmatmul.bf16.vlgmr.msrb.gmra.mxu1 %v5077_v37 }
 0x32d   :  { %5643 = vmatmul.bf16.vlgmr.msra.gmra.mxu3 %v5075_v16  ;;  %v4969_v35 = vpop.f32.mrf.mxu0 }
 0x32e   :  { %5687 = vmatpush.bf16.msrb.mxu3 %v9260_v49  ;;  %v4970_v5 = vadd.f32 %v4969_v35, %v1663_v2 }
 0x330   :  { %5676 = vmatpush.bf16.msrb.mxu2 %v9250_v31 }
 0x332   :  { %5688 = vmatpush.bf16.msrb.mxu3 %v9259_v52 }
 0x334   :  { %5677 = vmatpush.bf16.msrb.mxu2 %v9249_v48 }
 0x335   :  { %v4971_v40 = vpop.f32.mrf.mxu0 }
 0x336   :  { %5689 = vmatpush.bf16.msrb.mxu3 %v9258_v33 }
 0x338   :  { %5678 = vmatpush.bf16.msrb.mxu2 %v9248_v28 }
 0x339   :  { %v4943_v39 = vpop.f32.mrf.mxu2 }
 0x33a   :  { %v4944_v45 = vadd.f32 %v4943_v39, %v4931_v44  ;;  %5690 = vmatpush.bf16.msrb.mxu3 %v9257_v58 }
 0x33b   :  { %v4982_v13 = vpop.f32.mrf.mxu1 }
 0x33c   :  { %5679 = vmatpush.bf16.msrb.mxu2 %v9247_v21  ;;  %v4983_v6 = vadd.f32 %v4982_v13, %v4970_v5 }
 0x33e   :  { %5691 = vmatpush.bf16.msrb.mxu3 %v9256_v54 }
 0x33f   :  { %v4956_v46 = vpop.f32.mrf.mxu3 }
 0x340   :  { %5680 = vmatpush.bf16.msrb.mxu2 %v9246_v22  ;;  %v4957_v9 = vadd.f32 %v4956_v46, %v4944_v45 }
 0x341   :  { %v4945_v18 = vpop.f32.mrf.mxu2 }
 0x342   :  { %v5070_v41 = vmax.f32 %v4957_v9, 0.0  ;;  %5692 = vmatpush.bf16.msrb.mxu3 %v9255_v36 }
 0x343   :  { %v4984_v51 = vpop.f32.mrf.mxu1 }
 0x344   :  { %5681 = vmatpush.bf16.msrb.mxu2 %v9245_v29  ;;  %v5078_v53 = vpack.c.bf16 %v5070_v41, %v5070_v41 }
 0x346   :  { %5693 = vmatpush.bf16.msrb.mxu3 %v9254_v61 }
 0x347   :  { %5682 = vmatmul.bf16.vlgmr.msrb.gmra.mxu2 %v5078_v53  ;;  %v4958_v47 = vpop.f32.mrf.mxu3 }
 0x34a   :  { %5694 = vmatpush.bf16.msrb.mxu3 %v9253_v62 }
 0x35a   :  { %v5021_v57 = vpop.f32.mrf.mxu0 }
 0x362   :  { %v4995_v10 = vpop.f32.mrf.mxu2  ;;  %v5023_v60 = vpop.f32.mrf.mxu0 }
 0x363   :  { %v4996_v8 = vadd.f32 %v4995_v10, %v4983_v6 }
 0x369   :  { %v5034_v59 = vpop.f32.mrf.mxu1 }
 0x36a   :  { %v4997_v63 = vpop.f32.mrf.mxu2 }
 0x36d   :  { %v5008_v50 = vpop.f32.mrf.mxu3 }
 0x36e   :  { %v5009_v56 = vadd.f32 %v5008_v50, %v4996_v8 }
 0x370   :  { %v5022_v12 = vadd.f32 %v5021_v57, %v5009_v56 }
 0x371   :  { %v5036_v27 = vpop.f32.mrf.mxu1 }
 0x372   :  { %v5035_v31 = vadd.f32 %v5034_v59, %v5022_v12 }
 0x375   :  { %v5010_v24 = vpop.f32.mrf.mxu3 }
 0x382   :  { %v5605_v11 = vpop.f32.mrf.mxu0 }
 0x383   :  { %v5606_v20 = vadd.f32 %v9273_v43, %v5605_v11 }
 0x389   :  { %v5618_v55 = vpop.f32.mrf.mxu1 }
 0x38a   :  { %v5047_v14 = vpop.f32.mrf.mxu2  ;;  %v5619_v15 = vadd.f32 %v5618_v55, %v5606_v20  ;;  %v5607_v16 = vpop.f32.mrf.mxu0 }
 0x38b   :  { %v5048_v37 = vadd.f32 %v5047_v14, %v5035_v31 }
 0x390   :  { %v5060_v48 = vpop.f32.mrf.mxu3 }
 0x391   :  { %v5061_v4 = vadd.f32 %v5060_v48, %v5048_v37  ;;  %v5620_v7 = vpop.f32.mrf.mxu1 }
 0x392   :  { %v5049_v19 = vpop.f32.mrf.mxu2 }
 0x393   :  { %v5071_v28 = vmax.f32 %v5061_v4, 0.0 }
 0x395   :  { %v5079_v21 = vpack.c.bf16 %v5071_v28, %v5071_v28 }
 0x397   :  { %5695 = vmatmul.bf16.vlgmr.msrb.gmra.mxu3 %v5079_v21 }
 0x398   :  { %v5062_v1 = vpop.f32.mrf.mxu3 }
 0x3a2   :  { %v5657_v22 = vpop.f32.mrf.mxu0 }
 0x3a9   :  { %v5670_v0 = vpop.f32.mrf.mxu1 }
 0x3aa   :  { %v5631_v25 = vpop.f32.mrf.mxu2  ;;  %v5659_v29 = vpop.f32.mrf.mxu0 }
 0x3ab   :  { %v5632_v26 = vadd.f32 %v5631_v25, %v5619_v15 }
 0x3b0   :  { %v5644_v30 = vpop.f32.mrf.mxu3 }
 0x3b1   :  { %v5645_v42 = vadd.f32 %v5644_v30, %v5632_v26  ;;  %v5672_v34 = vpop.f32.mrf.mxu1 }
 0x3b2   :  { %v5633_v17 = vpop.f32.mrf.mxu2 }
 0x3b3   :  { %v5658_v3 = vadd.f32 %v5657_v22, %v5645_v42 }
 0x3b5   :  { %v5671_v32 = vadd.f32 %v5670_v0, %v5658_v3 }
 0x3b8   :  { %v5646_v35 = vpop.f32.mrf.mxu3 }
 0x3ca   :  { %v5683_v23 = vpop.f32.mrf.mxu2 }
 0x3cb   :  { %v5684_v39 = vadd.f32 %v5683_v23, %v5671_v32 }
 0x3d2   :  { %v5685_v38 = vpop.f32.mrf.mxu2 }
 0x41a   :  { %v5696_v13 = vpop.f32.mrf.mxu3 }
 0x41b   :  { %v5697_v40 = vadd.f32 %v5696_v13, %v5684_v39 }
 0x41d   :  { %v8556_v44 = vmul.f32 -1.442695, %v5697_v40 }
 0x41f   :  { %9274 = vpow2.f32 %v8556_v44 }
 0x422   :  { %v5698_v45 = vpop.f32.mrf.mxu3 }
 0x425   :  { %v9275_v46 = vpop.eup %9274 }
 0x426   :  { %v5703_v49 = vadd.f32 1.0, %v9275_v46 }
 0x428   :  { %9276 = vrcp.f32 %v5703_v49  ;;  %v5715_v51 = vand.u32 2147483648, %v5703_v49  ;;  %v5713_v52 = vand.u32 2147483647, %v5703_v49  ;;  %vm5709_vm1 = vweird.f32 %v5703_v49 }
 0x42a   :  { %v5716_v47 = vor.u32 1.1754944e-38, %v5715_v51  ;;  %vm5714_vm3 = vcmp.eq.f32.partialorder %v5713_v52, 8.507059e+37 }
 0x42e   :  { %v9277_v9 = vpop.eup %9276 }
 0x42f   :  { %v5705_v41 = vmul.f32 %v9277_v9, %v5703_v49  ;;  %vm5710_vm0 = vweird.f32 %v9277_v9 }
 0x430   :  { %vm5711_vm2 = vmor %vm5709_vm1, %vm5710_vm0 }
 0x431   :  { %v5706_v18 = vsub.f32 1.0, %v5705_v41 }
 0x433   :  { %v5707_v53 = vmul.f32 %v9277_v9, %v5706_v18 }
 0x435   :  { %v5708_v33 = vadd.f32 %v9277_v9, %v5707_v53 }
 0x437   :  { %v5712_v58 = vsel %vm5711_vm2, %v9277_v9, %v5708_v33 }
 0x438   :  { %v5717_v54 = vsel %vm5714_vm3, %v5716_v47, %v5712_v58 }
 0x439   :  { %5719 = vst [vmem:[#allocation14] sm:$0xff] %v5717_v54 }
 0x43a   :  { %5730 = dma.vmem_to_hbm [thread:$0]  %s5726_s6, 128, %s5728_s14, [#allocation4]  }
 0x43b   :  { %9481 = dma.done.wait [#allocation4], 128  }
 0x43c   :  { %9482 = vsyncadd [#allocation4], 4294967168 }
 0x43d   :  { %5735 = vsyncpa [#allocation3], 1 }
 0x43e   :  { %5736 = vsyncpa [#allocation6], 1 }
 0x43f   :  { %5737 = vsyncpa [#allocation9], 1 }
 0x440   :  { %5738 = vsyncpa [#allocation12], 1 }
 0x441   :  { %5739 = vsyncpa [#allocation4], 1 }

</bundles_post_ra>
